<compile_context>
chip_gen: v7x
topology: tpu7x:2x2x1
jax: 0.10.0
libtpu: 0.0.40
codegen_flags: <defaults>
</compile_context>

<pallas_src>
import jax
import jax.numpy as jnp
from jax.experimental import pallas as pl
from jax.experimental.pallas import tpu as pltpu


def _im2col_3x3(pad_ref, H, W, C, dtype):
    """Read the 9 shifted (H, W, C) views of the padded scratch and fold the
    taps into the contraction dim: returns (H*W, 9*C), K ordered (dy, dx, cin)."""
    cols = [pad_ref[dy:dy + H, dx:dx + W, :]
            for dy in range(3) for dx in range(3)]
    return jnp.concatenate(cols, axis=-1).reshape(H * W, 9 * C).astype(dtype)


def _rcu_kernel(x_ref, w1_ref, b1_ref, w2_ref, b2_ref, out_ref, pad_ref):
    # One grid step = one batch element; all spatial work stays in VMEM.
    _, H, W, C = x_ref.shape
    HW = H * W
    mm_dtype = w1_ref.dtype

    # Zero only the 1-pixel halo of the padded scratch (the interior is always
    # overwritten below).  Done every grid step so it is correct even when the
    # parallel batch axis is split across TensorCores (per-core scratch).
    zrow = jnp.zeros((1, W + 2, C), jnp.float32)
    pad_ref[0:1, :, :] = zrow
    pad_ref[H + 1:H + 2, :, :] = zrow
    zcol = jnp.zeros((H, 1, C), jnp.float32)
    pad_ref[1:H + 1, 0:1, :] = zcol
    pad_ref[1:H + 1, W + 1:W + 2, :] = zcol

    x = x_ref[0]                                           # (H, W, C) f32

    # ---- conv1 on relu(x): taps folded into K -> single (HW,9C)x(9C,C) dot --
    pad_ref[1:1 + H, 1:1 + W, :] = jnp.maximum(x, 0.0)
    a1 = _im2col_3x3(pad_ref, H, W, C, mm_dtype)           # (HW, 9C) bf16
    h1 = jnp.dot(a1, w1_ref[...], preferred_element_type=jnp.float32)
    h1 = jnp.maximum(h1 + b1_ref[...], 0.0)                # (HW, C) f32

    # ---- conv2 (reuse the same scratch; halo is still zero) ----------------
    pad_ref[1:1 + H, 1:1 + W, :] = h1.reshape(H, W, C)
    a2 = _im2col_3x3(pad_ref, H, W, C, mm_dtype)           # (HW, 9C) bf16
    y = jnp.dot(a2, w2_ref[...], preferred_element_type=jnp.float32)

    # ---- residual add; lane-dense (C multiple of 128) output store ---------
    out_ref[0] = (y + b2_ref[...] + x.reshape(HW, C)).reshape(H, W, C)


def residual_conv_unit(x_nchw, params, *, mm_dtype=jnp.bfloat16):
    """ResidualConvUnit forward.  x: (B, C, H, W) f32 -> (B, C, H, W) f32.

    params = (w1, b1, w2, b2); conv weights in HWIO layout (3, 3, C, C)."""
    B, C, H, W = x_nchw.shape
    w1, b1, w2, b2 = params

    # NCHW -> NHWC (channels on the lane axis); fuses with XLA around the call.
    x = jnp.transpose(x_nchw, (0, 2, 3, 1)).astype(jnp.float32)

    # Fold the 3x3 taps into K host-side: (3,3,Cin,Cout) -> (9*Cin, Cout),
    # K ordered (dy, dx, cin) to match the in-kernel im2col ordering.
    w1m = w1.reshape(9 * C, C).astype(mm_dtype)
    w2m = w2.reshape(9 * C, C).astype(mm_dtype)
    b1m = b1.reshape(1, C).astype(jnp.float32)
    b2m = b2.reshape(1, C).astype(jnp.float32)

    def full2d(arr):
        return pl.BlockSpec(arr.shape, lambda b: (0, 0))

    out_nhwc = pl.pallas_call(
        _rcu_kernel,
        out_shape=jax.ShapeDtypeStruct((B, H, W, C), jnp.float32),
        grid_spec=pltpu.PrefetchScalarGridSpec(
            num_scalar_prefetch=0,
            grid=(B,),
            in_specs=[
                pl.BlockSpec((1, H, W, C), lambda b: (b, 0, 0, 0)),
                full2d(w1m), full2d(b1m), full2d(w2m), full2d(b2m),
            ],
            out_specs=pl.BlockSpec((1, H, W, C), lambda b: (b, 0, 0, 0)),
            scratch_shapes=[
                pltpu.VMEM((H + 2, W + 2, C), jnp.float32),  # shared pad buf
            ],
        ),
        compiler_params=pltpu.CompilerParams(
            dimension_semantics=("parallel",)),
    )(x, w1m, b1m, w2m, b2m)

    # NHWC -> NCHW to match the PyTorch output convention.
    return jnp.transpose(out_nhwc, (0, 3, 1, 2))


# ------------------------- pure-JAX reference ------------------------------
def reference_forward(x_nchw, params, mm_dtype=jnp.bfloat16):
    """Same numerics policy as the kernel: conv operands in bf16, f32 accum,
    bias/ReLU/residual in f32."""
    w1, b1, w2, b2 = params
    x = jnp.transpose(x_nchw, (0, 2, 3, 1)).astype(jnp.float32)

    def conv(inp, w, b):
        y = jax.lax.conv_general_dilated(
            inp.astype(mm_dtype), w.astype(mm_dtype),
            window_strides=(1, 1), padding=[(1, 1), (1, 1)],
            dimension_numbers=("NHWC", "HWIO", "NHWC"),
            preferred_element_type=jnp.float32)
        return y + b

    r = jax.nn.relu(x)
    h = jax.nn.relu(conv(r, w1, b1))
    y = conv(h, w2, b2)
    return jnp.transpose(y + x, (0, 3, 1, 2))


# ------------------------------- main ---------------------------------------
if __name__ == "__main__":
    B, C, H, W = 2, 128, 16, 16   # features=128 -> lane-dense channels

    key = jax.random.PRNGKey(0)
    k_w1, k_b1, k_w2, k_b2, k_x = jax.random.split(key, 5)

    fan_in = 9 * C

    def winit(k, shape):
        return jax.random.normal(k, shape, jnp.float32) / jnp.sqrt(fan_in)

    # Conv weights in HWIO layout (3, 3, Cin, Cout), biases (C,).
    w1 = winit(k_w1, (3, 3, C, C))
    b1 = winit(k_b1, (C,))
    w2 = winit(k_w2, (3, 3, C, C))
    b2 = winit(k_b2, (C,))
    params = (w1, b1, w2, b2)

    x = jax.random.normal(k_x, (B, C, H, W), jnp.float32)

    out = jax.jit(residual_conv_unit)(x, params)
    out = jax.block_until_ready(out)
    assert out.shape == (B, C, H, W), out.shape

    ref = jax.block_until_ready(reference_forward(x, params))
    max_err = float(jnp.max(jnp.abs(out - ref)))
    # bf16 MXU operands + f32 accumulation on both sides; residual summation
    # order differences keep the gap well below this bound.
    assert max_err < 1e-2, f"max abs error {max_err}"

    print("KERNEL_OK")
</pallas_src>

<mosaic_0001>
module attributes {stable_mosaic.version = 11 : i64} {
  func.func @_rcu_kernel(%arg0: i32, %arg1: memref<1x16x16x128xf32, #tpu.memory_space<vmem>>, %arg2: memref<1152x128xbf16, #tpu.memory_space<vmem>>, %arg3: memref<1x128xf32, #tpu.memory_space<vmem>>, %arg4: memref<1152x128xbf16, #tpu.memory_space<vmem>>, %arg5: memref<1x128xf32, #tpu.memory_space<vmem>>, %arg6: memref<1x16x16x128xf32, #tpu.memory_space<vmem>>, %arg7: memref<18x18x128xf32, #tpu.memory_space<vmem>>) attributes {dimension_semantics = [#tpu.dimension_semantics<parallel>], iteration_bounds = array<i64: 2>, scalar_prefetch = 0 : i64, scratch_operands = 1 : i64, tpu.core_type = #tpu.core_type<tc>, window_params = [{transform_indices = @transform_0, window_bounds = array<i64: 1, 16, 16, 128>}, {pipeline_mode = #tpu.pipeline_mode<synchronous>, transform_indices = @transform_1, window_bounds = array<i64: 1152, 128>}, {pipeline_mode = #tpu.pipeline_mode<synchronous>, transform_indices = @transform_2, window_bounds = array<i64: 1, 128>}, {pipeline_mode = #tpu.pipeline_mode<synchronous>, transform_indices = @transform_3, window_bounds = array<i64: 1152, 128>}, {pipeline_mode = #tpu.pipeline_mode<synchronous>, transform_indices = @transform_4, window_bounds = array<i64: 1, 128>}, {transform_indices = @transform_5, window_bounds = array<i64: 1, 16, 16, 128>}]} {
    %cst = arith.constant 0.000000e+00 : f32
    %0 = vector.broadcast %cst : f32 to vector<1x18x128xf32>
    %c0 = arith.constant 0 : index
    %c0_0 = arith.constant 0 : index
    %c0_1 = arith.constant 0 : index
    %1 = vector.load %arg7[%c0, %c0_0, %c0_1] : memref<18x18x128xf32, #tpu.memory_space<vmem>>, vector<1x18x128xf32>
    tpu.vector_store %arg7[%c0, %c0_0, %c0_1], %0 {strides = array<i32>} : memref<18x18x128xf32, #tpu.memory_space<vmem>>, vector<1x18x128xf32>,
    %c17 = arith.constant 17 : index
    %c0_2 = arith.constant 0 : index
    %c0_3 = arith.constant 0 : index
    %2 = vector.load %arg7[%c17, %c0_2, %c0_3] : memref<18x18x128xf32, #tpu.memory_space<vmem>>, vector<1x18x128xf32>
    tpu.vector_store %arg7[%c17, %c0_2, %c0_3], %0 {strides = array<i32>} : memref<18x18x128xf32, #tpu.memory_space<vmem>>, vector<1x18x128xf32>,
    %cst_4 = arith.constant 0.000000e+00 : f32
    %3 = vector.broadcast %cst_4 : f32 to vector<16x1x128xf32>
    %c1 = arith.constant 1 : index
    %c0_5 = arith.constant 0 : index
    %c0_6 = arith.constant 0 : index
    %4 = vector.load %arg7[%c1, %c0_5, %c0_6] : memref<18x18x128xf32, #tpu.memory_space<vmem>>, vector<16x1x128xf32>
    tpu.vector_store %arg7[%c1, %c0_5, %c0_6], %3 {strides = array<i32>} : memref<18x18x128xf32, #tpu.memory_space<vmem>>, vector<16x1x128xf32>,
    %c1_7 = arith.constant 1 : index
    %c17_8 = arith.constant 17 : index
    %c0_9 = arith.constant 0 : index
    %5 = vector.load %arg7[%c1_7, %c17_8, %c0_9] : memref<18x18x128xf32, #tpu.memory_space<vmem>>, vector<16x1x128xf32>
    tpu.vector_store %arg7[%c1_7, %c17_8, %c0_9], %3 {strides = array<i32>} : memref<18x18x128xf32, #tpu.memory_space<vmem>>, vector<16x1x128xf32>,
    %c0_10 = arith.constant 0 : index
    %c0_11 = arith.constant 0 : index
    %c0_12 = arith.constant 0 : index
    %c0_13 = arith.constant 0 : index
    %6 = vector.load %arg1[%c0_10, %c0_11, %c0_12, %c0_13] : memref<1x16x16x128xf32, #tpu.memory_space<vmem>>, vector<1x16x16x128xf32>
    %7 = vector.shape_cast %6 : vector<1x16x16x128xf32> to vector<16x16x128xf32>
    %cst_14 = arith.constant 0.000000e+00 : f32
    %8 = vector.broadcast %cst_14 : f32 to vector<16x16x128xf32>
    %9 = arith.maximumf %7, %8 : vector<16x16x128xf32>
    %c1_15 = arith.constant 1 : index
    %c1_16 = arith.constant 1 : index
    %c0_17 = arith.constant 0 : index
    %10 = vector.load %arg7[%c1_15, %c1_16, %c0_17] : memref<18x18x128xf32, #tpu.memory_space<vmem>>, vector<16x16x128xf32>
    tpu.vector_store %arg7[%c1_15, %c1_16, %c0_17], %9 {strides = array<i32>} : memref<18x18x128xf32, #tpu.memory_space<vmem>>, vector<16x16x128xf32>,
    %c0_18 = arith.constant 0 : index
    %c0_19 = arith.constant 0 : index
    %c0_20 = arith.constant 0 : index
    %11 = vector.load %arg7[%c0_18, %c0_19, %c0_20] : memref<18x18x128xf32, #tpu.memory_space<vmem>>, vector<16x16x128xf32>
    %c0_21 = arith.constant 0 : index
    %c1_22 = arith.constant 1 : index
    %c0_23 = arith.constant 0 : index
    %12 = vector.load %arg7[%c0_21, %c1_22, %c0_23] : memref<18x18x128xf32, #tpu.memory_space<vmem>>, vector<16x16x128xf32>
    %c0_24 = arith.constant 0 : index
    %c2 = arith.constant 2 : index
    %c0_25 = arith.constant 0 : index
    %13 = vector.load %arg7[%c0_24, %c2, %c0_25] : memref<18x18x128xf32, #tpu.memory_space<vmem>>, vector<16x16x128xf32>
    %c1_26 = arith.constant 1 : index
    %c0_27 = arith.constant 0 : index
    %c0_28 = arith.constant 0 : index
    %14 = vector.load %arg7[%c1_26, %c0_27, %c0_28] : memref<18x18x128xf32, #tpu.memory_space<vmem>>, vector<16x16x128xf32>
    %c1_29 = arith.constant 1 : index
    %c1_30 = arith.constant 1 : index
    %c0_31 = arith.constant 0 : index
    %15 = vector.load %arg7[%c1_29, %c1_30, %c0_31] : memref<18x18x128xf32, #tpu.memory_space<vmem>>, vector<16x16x128xf32>
    %c1_32 = arith.constant 1 : index
    %c2_33 = arith.constant 2 : index
    %c0_34 = arith.constant 0 : index
    %16 = vector.load %arg7[%c1_32, %c2_33, %c0_34] : memref<18x18x128xf32, #tpu.memory_space<vmem>>, vector<16x16x128xf32>
    %c2_35 = arith.constant 2 : index
    %c0_36 = arith.constant 0 : index
    %c0_37 = arith.constant 0 : index
    %17 = vector.load %arg7[%c2_35, %c0_36, %c0_37] : memref<18x18x128xf32, #tpu.memory_space<vmem>>, vector<16x16x128xf32>
    %c2_38 = arith.constant 2 : index
    %c1_39 = arith.constant 1 : index
    %c0_40 = arith.constant 0 : index
    %18 = vector.load %arg7[%c2_38, %c1_39, %c0_40] : memref<18x18x128xf32, #tpu.memory_space<vmem>>, vector<16x16x128xf32>
    %c2_41 = arith.constant 2 : index
    %c2_42 = arith.constant 2 : index
    %c0_43 = arith.constant 0 : index
    %19 = vector.load %arg7[%c2_41, %c2_42, %c0_43] : memref<18x18x128xf32, #tpu.memory_space<vmem>>, vector<16x16x128xf32>
    %20 = tpu.concatenate %11, %12, %13, %14, %15, %16, %17, %18, %19 in 2 : vector<16x16x128xf32>, vector<16x16x128xf32>, vector<16x16x128xf32>, vector<16x16x128xf32>, vector<16x16x128xf32>, vector<16x16x128xf32>, vector<16x16x128xf32>, vector<16x16x128xf32>, vector<16x16x128xf32> -> vector<16x16x1152xf32>
    %21 = vector.shape_cast %20 : vector<16x16x1152xf32> to vector<256x1152xf32>
    %22 = arith.truncf %21 : vector<256x1152xf32> to vector<256x1152xbf16>
    %c0_44 = arith.constant 0 : index
    %c0_45 = arith.constant 0 : index
    %23 = vector.load %arg2[%c0_44, %c0_45] : memref<1152x128xbf16, #tpu.memory_space<vmem>>, vector<1152x128xbf16>
    %cst_46 = arith.constant dense<0.000000e+00> : vector<256x128xf32>
    %24 = tpu.matmul %22, %23, %cst_46 {dimension_numbers = #tpu.dot_dimension_numbers<[1], [0], [0], [1], [0, 0, 1, 1], [], []>} : vector<256x1152xbf16>, vector<1152x128xbf16>, vector<256x128xf32> -> vector<256x128xf32>
    %c0_47 = arith.constant 0 : index
    %c0_48 = arith.constant 0 : index
    %25 = vector.load %arg3[%c0_47, %c0_48] : memref<1x128xf32, #tpu.memory_space<vmem>>, vector<1x128xf32>
    %26 = vector.broadcast %25 : vector<1x128xf32> to vector<256x128xf32>
    %27 = arith.addf %24, %26 : vector<256x128xf32>
    %cst_49 = arith.constant 0.000000e+00 : f32
    %28 = vector.broadcast %cst_49 : f32 to vector<256x128xf32>
    %29 = arith.maximumf %27, %28 : vector<256x128xf32>
    %30 = vector.shape_cast %29 : vector<256x128xf32> to vector<16x16x128xf32>
    %c1_50 = arith.constant 1 : index
    %c1_51 = arith.constant 1 : index
    %c0_52 = arith.constant 0 : index
    %31 = vector.load %arg7[%c1_50, %c1_51, %c0_52] : memref<18x18x128xf32, #tpu.memory_space<vmem>>, vector<16x16x128xf32>
    tpu.vector_store %arg7[%c1_50, %c1_51, %c0_52], %30 {strides = array<i32>} : memref<18x18x128xf32, #tpu.memory_space<vmem>>, vector<16x16x128xf32>,
    %c0_53 = arith.constant 0 : index
    %c0_54 = arith.constant 0 : index
    %c0_55 = arith.constant 0 : index
    %32 = vector.load %arg7[%c0_53, %c0_54, %c0_55] : memref<18x18x128xf32, #tpu.memory_space<vmem>>, vector<16x16x128xf32>
    %c0_56 = arith.constant 0 : index
    %c1_57 = arith.constant 1 : index
    %c0_58 = arith.constant 0 : index
    %33 = vector.load %arg7[%c0_56, %c1_57, %c0_58] : memref<18x18x128xf32, #tpu.memory_space<vmem>>, vector<16x16x128xf32>
    %c0_59 = arith.constant 0 : index
    %c2_60 = arith.constant 2 : index
    %c0_61 = arith.constant 0 : index
    %34 = vector.load %arg7[%c0_59, %c2_60, %c0_61] : memref<18x18x128xf32, #tpu.memory_space<vmem>>, vector<16x16x128xf32>
    %c1_62 = arith.constant 1 : index
    %c0_63 = arith.constant 0 : index
    %c0_64 = arith.constant 0 : index
    %35 = vector.load %arg7[%c1_62, %c0_63, %c0_64] : memref<18x18x128xf32, #tpu.memory_space<vmem>>, vector<16x16x128xf32>
    %c1_65 = arith.constant 1 : index
    %c1_66 = arith.constant 1 : index
    %c0_67 = arith.constant 0 : index
    %36 = vector.load %arg7[%c1_65, %c1_66, %c0_67] : memref<18x18x128xf32, #tpu.memory_space<vmem>>, vector<16x16x128xf32>
    %c1_68 = arith.constant 1 : index
    %c2_69 = arith.constant 2 : index
    %c0_70 = arith.constant 0 : index
    %37 = vector.load %arg7[%c1_68, %c2_69, %c0_70] : memref<18x18x128xf32, #tpu.memory_space<vmem>>, vector<16x16x128xf32>
    %c2_71 = arith.constant 2 : index
    %c0_72 = arith.constant 0 : index
    %c0_73 = arith.constant 0 : index
    %38 = vector.load %arg7[%c2_71, %c0_72, %c0_73] : memref<18x18x128xf32, #tpu.memory_space<vmem>>, vector<16x16x128xf32>
    %c2_74 = arith.constant 2 : index
    %c1_75 = arith.constant 1 : index
    %c0_76 = arith.constant 0 : index
    %39 = vector.load %arg7[%c2_74, %c1_75, %c0_76] : memref<18x18x128xf32, #tpu.memory_space<vmem>>, vector<16x16x128xf32>
    %c2_77 = arith.constant 2 : index
    %c2_78 = arith.constant 2 : index
    %c0_79 = arith.constant 0 : index
    %40 = vector.load %arg7[%c2_77, %c2_78, %c0_79] : memref<18x18x128xf32, #tpu.memory_space<vmem>>, vector<16x16x128xf32>
    %41 = tpu.concatenate %32, %33, %34, %35, %36, %37, %38, %39, %40 in 2 : vector<16x16x128xf32>, vector<16x16x128xf32>, vector<16x16x128xf32>, vector<16x16x128xf32>, vector<16x16x128xf32>, vector<16x16x128xf32>, vector<16x16x128xf32>, vector<16x16x128xf32>, vector<16x16x128xf32> -> vector<16x16x1152xf32>
    %42 = vector.shape_cast %41 : vector<16x16x1152xf32> to vector<256x1152xf32>
    %43 = arith.truncf %42 : vector<256x1152xf32> to vector<256x1152xbf16>
    %c0_80 = arith.constant 0 : index
    %c0_81 = arith.constant 0 : index
    %44 = vector.load %arg4[%c0_80, %c0_81] : memref<1152x128xbf16, #tpu.memory_space<vmem>>, vector<1152x128xbf16>
    %cst_82 = arith.constant dense<0.000000e+00> : vector<256x128xf32>
    %45 = tpu.matmul %43, %44, %cst_82 {dimension_numbers = #tpu.dot_dimension_numbers<[1], [0], [0], [1], [0, 0, 1, 1], [], []>} : vector<256x1152xbf16>, vector<1152x128xbf16>, vector<256x128xf32> -> vector<256x128xf32>
    %c0_83 = arith.constant 0 : index
    %c0_84 = arith.constant 0 : index
    %46 = vector.load %arg5[%c0_83, %c0_84] : memref<1x128xf32, #tpu.memory_space<vmem>>, vector<1x128xf32>
    %47 = vector.broadcast %46 : vector<1x128xf32> to vector<256x128xf32>
    %48 = arith.addf %45, %47 : vector<256x128xf32>
    %49 = vector.shape_cast %7 : vector<16x16x128xf32> to vector<256x128xf32>
    %50 = arith.addf %48, %49 : vector<256x128xf32>
    %51 = vector.shape_cast %50 : vector<256x128xf32> to vector<16x16x128xf32>
    %c0_85 = arith.constant 0 : index
    %c0_86 = arith.constant 0 : index
    %c0_87 = arith.constant 0 : index
    %c0_88 = arith.constant 0 : index
    %52 = vector.load %arg6[%c0_85, %c0_86, %c0_87, %c0_88] : memref<1x16x16x128xf32, #tpu.memory_space<vmem>>, vector<1x16x16x128xf32>
    %53 = vector.shape_cast %52 : vector<1x16x16x128xf32> to vector<16x16x128xf32>
    %54 = vector.shape_cast %51 : vector<16x16x128xf32> to vector<1x16x16x128xf32>
    tpu.vector_store %arg6[%c0_85, %c0_86, %c0_87, %c0_88], %54 {strides = array<i32>} : memref<1x16x16x128xf32, #tpu.memory_space<vmem>>, vector<1x16x16x128xf32>,
    return
  }
  func.func @transform_0(%arg0: i32) -> (i32, i32, i32, i32) {
    %c0_i32 = arith.constant 0 : i32
    %c0_i32_0 = arith.constant 0 : i32
    %c0_i32_1 = arith.constant 0 : i32
    %c0_i32_2 = arith.constant 0 : i32
    return %arg0, %c0_i32, %c0_i32_0, %c0_i32_1 : i32, i32, i32, i32
  }
  func.func @transform_1(%arg0: i32) -> (i32, i32) {
    %c0_i32 = arith.constant 0 : i32
    %c0_i32_0 = arith.constant 0 : i32
    %c0_i32_1 = arith.constant 0 : i32
    return %c0_i32, %c0_i32_0 : i32, i32
  }
  func.func @transform_2(%arg0: i32) -> (i32, i32) {
    %c0_i32 = arith.constant 0 : i32
    %c0_i32_0 = arith.constant 0 : i32
    %c0_i32_1 = arith.constant 0 : i32
    return %c0_i32, %c0_i32_0 : i32, i32
  }
  func.func @transform_3(%arg0: i32) -> (i32, i32) {
    %c0_i32 = arith.constant 0 : i32
    %c0_i32_0 = arith.constant 0 : i32
    %c0_i32_1 = arith.constant 0 : i32
    return %c0_i32, %c0_i32_0 : i32, i32
  }
  func.func @transform_4(%arg0: i32) -> (i32, i32) {
    %c0_i32 = arith.constant 0 : i32
    %c0_i32_0 = arith.constant 0 : i32
    %c0_i32_1 = arith.constant 0 : i32
    return %c0_i32, %c0_i32_0 : i32, i32
  }
  func.func @transform_5(%arg0: i32) -> (i32, i32, i32, i32) {
    %c0_i32 = arith.constant 0 : i32
    %c0_i32_0 = arith.constant 0 : i32
    %c0_i32_1 = arith.constant 0 : i32
    %c0_i32_2 = arith.constant 0 : i32
    return %arg0, %c0_i32, %c0_i32_0, %c0_i32_1 : i32, i32, i32, i32
  }
}

</mosaic_0001>

<bundles_post_ra>
// kernel: residual_conv_unit.1
= control target key start
LH: loop header
LB: loop body
LE: loop exit
PB: predicated region body
PF: predicated region fallthrough
CT: control target
= control target key end

     0   :  { %10 = vsyncpa [#allocation4], 0  ;;  %s7398_s0 = inlined_call_operand.vmem [shape: f32[2,16,16,128], index: 0, kind: input, shape index: {}]   ;;  %s7399_s1 = inlined_call_operand.vmem [shape: bf16[1152,128], index: 1, kind: input, shape index: {}]   ;;  %s7400_s2 = inlined_call_operand.vmem [shape: f32[1,128], index: 2, kind: input, shape index: {}]   ;;  %s7401_s3 = inlined_call_operand.vmem [shape: bf16[1152,128], index: 3, kind: input, shape index: {}]   ;;  %s7402_s4 = inlined_call_operand.vmem [shape: f32[1,128], index: 4, kind: input, shape index: {}]   ;;  %s7403_s5 = inlined_call_operand.hbm [shape: f32[2,16,16,128], index: 5, kind: output, shape index: {}]  }
   0x1   :  { %12 = vsyncpa [#allocation4 + $0x1], 0  ;;  %s5724_s18 = smov 0   ;;  %s5726_s19 = smov 0  }
   0x2   :  { %s5728_s20 = smov 0   ;;  %s5730_s21 = smov 0  }
   0x3 LB: > { %s5745_s22 = sadd.s32 4294967295, %s5687_s21   ;;  %s4205_s23 = sadd.s32 4294967294, %s5687_s21   ;;  %s5687_s21 = sphi %s5730_s21, %s7409_s21   ;;  %s5683_s20 = sphi %s5728_s20, %s7408_s20   ;;  %s5679_s19 = sphi %s5726_s19, %s7407_s19   ;;  %s5675_s18 = sphi %s5724_s18, %s7406_s18  }
   0x4   : > { %s5749_s24 = sadd.s32 1, %s5687_s21   ;;  %s135_s25 = sadd.s32 1, %s5683_s20 }
   0x5   : > { %s132_s26 = ssub.s32 %s5687_s21, %s5749_s24  ;;  %p145_p0 = scmp.ne.s32.totalorder %s5683_s20, %s5679_s19 }
   0x6   : > { %p133_p1 = scmp.eq.s32.totalorder %s132_s26, 0  ;;  %p146_p2 = scmp.eq.s32.totalorder %s5745_s22, 1 }
   0x7   : > { %p151_p3 = scmp.ne.s32.totalorder %s5679_s19, %s5675_s18  ;;  %p152_p4 = scmp.eq.s32.totalorder %s4205_s23, 1 }
   0x8   : > { %s5760_s27 = scalar_select %p133_p1, %s5683_s20, %s135_s25  }
   0x9   : > { %p5762_p5 = por %p146_p2, %p145_p0  ;;  %p5766_p6 = por %p152_p4, %p151_p3 }
   0xa   : > { %p4208_p7 = scmp.ge.s32.totalorder %s5687_s21, 1  ;;  %p190_p8 = scmp.lt.s32.totalorder %s5687_s21, 3 }
   0xc   : > { %p191_p9 = pnand %p4208_p7, %p190_p8 }
   0xd   : > { %v5447_v0 = vld [vmem:[%s7399_s1 + $0x40] sm:$0xff] (!%p191_p9)   ;;  %v5689_v2 = vmov (!%p191_p9), 0.0   ;;  %v5451_v5 = vld [vmem:[%s7399_s1 + $0x48] sm:$0xff] (!%p191_p9)   ;;  %v5455_v9 = vld [vmem:[%s7399_s1 + $0x50] sm:$0xff] (!%p191_p9)   ;;  %p218_p10 = scmp.lt.s32.totalorder (!%p191_p9), %s5745_s22, 1  ;;  %v5690_v40 = vmov (!%p191_p9), 0.0|0.0  }
   0xe   : > { %194 = sbr.rel (%p191_p9) target bundleno = 1069 (0x42d), region = 40  ;;  %v5448_v1 = vld [vmem:[%s7399_s1] sm:$0xff] (!%p191_p9)   ;;  %224 = vst [vmem:[#allocation2] sm:$0xff] (!%p191_p9), %v5689_v2  ;;  %225 = vst [vmem:[#allocation2 + $0x8] sm:$0xff] (!%p191_p9), %v5689_v2  ;;  %4365 = vmatprep.subr.bf16.mxu0 (!%p191_p9), %v5447_v0  ;;  %v5452_v6 = vld [vmem:[%s7399_s1 + $0x8] sm:$0xff] (!%p191_p9)   ;;  %s215_s13 = sand.u32 (!%p191_p9), 1, %s5679_s19  }
   0xf   : > { %226 = vst [vmem:[#allocation2 + $0x10] sm:$0x3] (!%p191_p9), %v5689_v2  ;;  %228 = vst [vmem:[#allocation2 + $0x198] sm:$0xff] (!%p191_p9), %v5689_v2  ;;  %v5449_v3 = vld [vmem:[%s7399_s1 + $0xc0] sm:$0xff] (!%p191_p9)   ;;  %4366 = vmatpush3.bf16.msra.mxu0 (!%p191_p9), %v5448_v1  ;;  %v5453_v7 = vld [vmem:[%s7399_s1 + $0xc8] sm:$0xff] (!%p191_p9)   ;;  %s4364_s16 = sshll.u32 (!%p191_p9), %s5745_s22, 12 }
  0x10   : > { %229 = vst [vmem:[#allocation2 + $0x1a0] sm:$0xff] (!%p191_p9), %v5689_v2  ;;  %230 = vst [vmem:[#allocation2 + $0x1a8] sm:$0x3] (!%p191_p9), %v5689_v2  ;;  %v5450_v4 = vld [vmem:[%s7399_s1 + $0x80] sm:$0xff] (!%p191_p9)   ;;  %4477 = vmatprep.subr.bf16.mxu1 (!%p191_p9), %v5449_v3  ;;  %4367 = vmatprep.subr.bf16.mxu0 (!%p191_p9), %v5451_v5  ;;  %v5454_v8 = vld [vmem:[%s7399_s1 + $0x88] sm:$0xff] (!%p191_p9)   ;;  %s7357_s26 = scalar_lea.sflag (!%p191_p9), [#allocation4], %s215_s13 }
  0x11   : > { %232 = vst [vmem:[#allocation2 + $0x18] sm:$0x1] (!%p191_p9), %v5689_v2  ;;  %233 = vst [vmem:[#allocation2 + $0x30] sm:$0x1] (!%p191_p9), %v5689_v2  ;;  %4478 = vmatpush3.bf16.msra.mxu1 (!%p191_p9), %v5450_v4  ;;  %v5456_v10 = vld [vmem:[%s7399_s1 + $0x10] sm:$0xff] (!%p191_p9)   ;;  %v5459_v13 = vld [vmem:[%s7399_s1 + $0x58] sm:$0xff] (!%p191_p9)  }
  0x12   : > { %234 = vst [vmem:[#allocation2 + $0x48] sm:$0x1] (!%p191_p9), %v5689_v2  ;;  %235 = vst [vmem:[#allocation2 + $0x60] sm:$0x1] (!%p191_p9), %v5689_v2  ;;  %4479 = vmatprep.subr.bf16.mxu1 (!%p191_p9), %v5453_v7  ;;  %v5457_v11 = vld [vmem:[%s7399_s1 + $0xd0] sm:$0xff] (!%p191_p9)   ;;  %v5460_v14 = vld [vmem:[%s7399_s1 + $0x18] sm:$0xff] (!%p191_p9)  }
  0x13   : > { %236 = vst [vmem:[#allocation2 + $0x78] sm:$0x1] (!%p191_p9), %v5689_v2  ;;  %237 = vst [vmem:[#allocation2 + $0x90] sm:$0x1] (!%p191_p9), %v5689_v2  ;;  %4368 = vmatpush3.bf16.msra.mxu0 (!%p191_p9), %v5452_v6  ;;  %v5458_v12 = vld [vmem:[%s7399_s1 + $0x90] sm:$0xff] (!%p191_p9)   ;;  %v5461_v15 = vld [vmem:[%s7399_s1 + $0xd8] sm:$0xff] (!%p191_p9)  }
  0x14   : > { %238 = vst [vmem:[#allocation2 + $0xa8] sm:$0x1] (!%p191_p9), %v5689_v2  ;;  %239 = vst [vmem:[#allocation2 + $0xc0] sm:$0x1] (!%p191_p9), %v5689_v2  ;;  %4369 = vmatprep.subr.bf16.mxu0 (!%p191_p9), %v5455_v9  ;;  %v5462_v16 = vld [vmem:[%s7399_s1 + $0x98] sm:$0xff] (!%p191_p9)   ;;  %v5463_v17 = vld [vmem:[%s7399_s1 + $0x60] sm:$0xff] (!%p191_p9)  }
  0x15   : > { %240 = vst [vmem:[#allocation2 + $0xd8] sm:$0x1] %v5689_v2  ;;  %241 = vst [vmem:[#allocation2 + $0xf0] sm:$0x1] %v5689_v2  ;;  %4480 = vmatpush3.bf16.msra.mxu1 %v5454_v8  ;;  %v5464_v18 = vld [vmem:[%s7399_s1 + $0x20] sm:$0xff]   ;;  %v5467_v21 = vld [vmem:[%s7399_s1 + $0x68] sm:$0xff]  }
  0x16   : > { %242 = vst [vmem:[#allocation2 + $0x108] sm:$0x1] %v5689_v2  ;;  %243 = vst [vmem:[#allocation2 + $0x120] sm:$0x1] %v5689_v2  ;;  %4481 = vmatprep.subr.bf16.mxu1 %v5457_v11  ;;  %v5465_v19 = vld [vmem:[%s7399_s1 + $0xe0] sm:$0xff]   ;;  %v5468_v22 = vld [vmem:[%s7399_s1 + $0x28] sm:$0xff]  }
  0x17   : > { %244 = vst [vmem:[#allocation2 + $0x138] sm:$0x1] %v5689_v2  ;;  %245 = vst [vmem:[#allocation2 + $0x150] sm:$0x1] %v5689_v2  ;;  %4370 = vmatpush3.bf16.msra.mxu0 %v5456_v10  ;;  %v5466_v20 = vld [vmem:[%s7399_s1 + $0xa0] sm:$0xff]   ;;  %v5469_v23 = vld [vmem:[%s7399_s1 + $0xe8] sm:$0xff]  }
  0x18   : > { %246 = vst [vmem:[#allocation2 + $0x168] sm:$0x1] %v5689_v2  ;;  %247 = vst [vmem:[#allocation2 + $0x180] sm:$0x1] %v5689_v2  ;;  %4371 = vmatprep.subr.bf16.mxu0 %v5459_v13  ;;  %v5470_v24 = vld [vmem:[%s7399_s1 + $0xa8] sm:$0xff]   ;;  %s219_s30 = scalar_select %p218_p10, %s5745_s22, 1 }
  0x19   : > { %248 = vst [vmem:[#allocation2 + $0x29] sm:$0x1] %v5689_v2  ;;  %249 = vst [vmem:[#allocation2 + $0x41] sm:$0x1] %v5689_v2  ;;  %4482 = vmatpush3.bf16.msra.mxu1 %v5458_v12  ;;  %v5471_v25 = vld [vmem:[%s7399_s1 + $0x70] sm:$0xff]   ;;  %v5475_v29 = vld [vmem:[%s7399_s1 + $0x78] sm:$0xff]   ;;  %s7347_s22 = scalar_lea.hbm %s7403_s5, %s4364_s16 }
  0x1a   : > { %250 = vst [vmem:[#allocation2 + $0x59] sm:$0x1] %v5689_v2  ;;  %251 = vst [vmem:[#allocation2 + $0x71] sm:$0x1] %v5689_v2  ;;  %4483 = vmatprep.subr.bf16.mxu1 %v5461_v15  ;;  %v5472_v26 = vld [vmem:[%s7399_s1 + $0x30] sm:$0xff]   ;;  %s4363_s14 = sshll.u32 %s219_s30, 8 }
  0x1b   : > { %252 = vst [vmem:[#allocation2 + $0x89] sm:$0x1] %v5689_v2  ;;  %253 = vst [vmem:[#allocation2 + $0xa1] sm:$0x1] %v5689_v2  ;;  %4372 = vmatpush3.bf16.msra.mxu0 %v5460_v14  ;;  %v5473_v27 = vld [vmem:[%s7399_s1 + $0xf0] sm:$0xff]   ;;  %v5476_v30 = vld [vmem:[%s7399_s1 + $0x38] sm:$0xff]   ;;  %s5870_s8 = scalar_lea.vmem %s7398_s0, %s4363_s14 }
  0x1c   : > { %254 = vst [vmem:[#allocation2 + $0xb9] sm:$0x1] %v5689_v2  ;;  %255 = vst [vmem:[#allocation2 + $0xd1] sm:$0x1] %v5689_v2  ;;  %4373 = vmatprep.subr.bf16.mxu0 %v5463_v17  ;;  %v5474_v28 = vld [vmem:[%s7399_s1 + $0xb0] sm:$0xff]   ;;  %v5477_v31 = vld [vmem:[%s7399_s1 + $0xf8] sm:$0xff]  }
  0x1d   : > { %256 = vst [vmem:[#allocation2 + $0xe9] sm:$0x1] %v5689_v2  ;;  %257 = vst [vmem:[#allocation2 + $0x101] sm:$0x1] %v5689_v2  ;;  %4484 = vmatpush3.bf16.msra.mxu1 %v5462_v16  ;;  %v392_v32 = vld [vmem:[#allocation2 + $0x1] sm:$0xff]  ;;  %v393_v33 = vld [vmem:[#allocation2 + $0x9] sm:$0xff] }
  0x1e   : > { %258 = vst [vmem:[#allocation2 + $0x119] sm:$0x1] %v5689_v2  ;;  %259 = vst [vmem:[#allocation2 + $0x131] sm:$0x1] %v5689_v2  ;;  %4485 = vmatprep.subr.bf16.mxu1 %v5465_v19  ;;  %v650_v34 = vpack.c.bf16 %v393_v33, %v392_v32  ;;  %v5478_v35 = vld [vmem:[%s7399_s1 + $0xb8] sm:$0xff]   ;;  %v5479_v36 = vld [vmem:[%s7399_s1 + $0x140] sm:$0xff]  }
  0x1f   : > { %260 = vst [vmem:[#allocation2 + $0x149] sm:$0x1] %v5689_v2  ;;  %261 = vst [vmem:[#allocation2 + $0x161] sm:$0x1] %v5689_v2  ;;  %4374 = vmatpush3.bf16.msra.mxu0 %v5464_v18  ;;  %v264_v37 = vld [vmem:[%s5870_s8] sm:$0xff]  ;;  %v265_v38 = vld [vmem:[%s5870_s8 + $0x8] sm:$0xff] }
  0x20   : > { %262 = vst [vmem:[#allocation2 + $0x179] sm:$0x1] %v5689_v2  ;;  %263 = vst [vmem:[#allocation2 + $0x191] sm:$0x1] %v5689_v2  ;;  %4375 = vmatprep.subr.bf16.mxu0 %v5467_v21  ;;  %1408 = vmatprep.mubr.bf16.mxu0 %v650_v34  ;;  %v296_v39 = vmax.f32 %v264_v37, 0.0  ;;  %v297_v41 = vmax.f32 %v265_v38, 0.0 }
  0x21   : > { %4486 = vmatpush3.bf16.msra.mxu1 %v5466_v20  ;;  %v5480_v42 = vld [vmem:[%s7399_s1 + $0x100] sm:$0xff]   ;;  %v266_v43 = vld [vmem:[%s5870_s8 + $0x10] sm:$0xff]  ;;  %v267_v44 = vld [vmem:[%s5870_s8 + $0x18] sm:$0xff]  ;;  %s4209_s14 = sshll.u32 %s215_s13, 8  ;;  %s5691_s7 = smov [#allocation3]  }
  0x22   : > { %4487 = vmatprep.subr.bf16.mxu1 %v5469_v23  ;;  %328 = vst [vmem:[#allocation2 + $0x19] sm:$0xff] %v296_v39  ;;  %329 = vst [vmem:[#allocation2 + $0x21] sm:$0xff] %v297_v41  ;;  %v5885_v45 = vpack.c.bf16 %v297_v41, %v296_v39  ;;  %v298_v46 = vmax.f32 %v266_v43, 0.0  ;;  %v299_v47 = vmax.f32 %v267_v44, 0.0  ;;  %v5481_v48 = vld [vmem:[%s7399_s1 + $0x148] sm:$0xff]   ;;  %v268_v49 = vld [vmem:[%s5870_s8 + $0x20] sm:$0xff] }
  0x23   : > { %4376 = vmatpush3.bf16.msra.mxu0 %v5468_v22  ;;  %v269_v50 = vld [vmem:[%s5870_s8 + $0x28] sm:$0xff]  ;;  %v300_v51 = vmax.f32 %v268_v49, 0.0  ;;  %v5897_v56 = vld [vmem:[%s5870_s8 + $0x30] sm:$0xff]  ;;  %v5900_v57 = vld [vmem:[%s5870_s8 + $0x38] sm:$0xff]  ;;  %s7250_s15 = scalar_lea.vmem [#allocation3], %s4209_s14  ;;  %s5629_s30 = sshll.u32 %s5691_s7, 4  ;;  %s5630_s30 = int_to_ptr.vmem [resolvable:$false] %s5629_s30 }
  0x24   : > { %4377 = vmatprep.subr.bf16.mxu0 %v5471_v25  ;;  %v424_v52 = vld [vmem:[#allocation2 + $0x2] sm:$0xff]  ;;  %v425_v53 = vld [vmem:[#allocation2 + $0xa] sm:$0xff]  ;;  %330 = vst [vmem:[#allocation2 + $0x31] sm:$0xff] %v298_v46  ;;  %331 = vst [vmem:[#allocation2 + $0x39] sm:$0xff] %v299_v47  ;;  %v301_v54 = vmax.f32 %v269_v50, 0.0  ;;  %v302_v58 = vmax.f32 %v5897_v56, 0.0  ;;  %v5925_v6 = vpack.c.bf16 %v299_v47, %v298_v46 }
  0x25   : > { %4488 = vmatpush3.bf16.msra.mxu1 %v5470_v24  ;;  %v5482_v55 = vld [vmem:[%s7399_s1 + $0x108] sm:$0xff]   ;;  %332 = vst [vmem:[#allocation2 + $0x49] sm:$0xff] %v300_v51  ;;  %v303_v59 = vmax.f32 %v5900_v57, 0.0  ;;  %v5483_v60 = vld [vmem:[%s7399_s1 + $0x150] sm:$0xff]   ;;  %v5908_v61 = vld [vmem:[%s5870_s8 + $0x40] sm:$0xff]  ;;  %v651_v5 = vpack.c.bf16 %v425_v53, %v424_v52  ;;  %s4143_s17 = sshll.u32 %s7250_s15, 4  ;;  %s7349_s17 = int_to_ptr.vmem [resolvable:$true] %s4143_s17 }
  0x26   : > { %4489 = vmatprep.subr.bf16.mxu1 %v5473_v27  ;;  %333 = vst [vmem:[#allocation2 + $0x51] sm:$0xff] %v301_v54  ;;  %v5911_v62 = vld [vmem:[%s5870_s8 + $0x48] sm:$0xff]  ;;  %334 = vst [vmem:[#allocation2 + $0x61] sm:$0xff] %v302_v58  ;;  %v304_v63 = vmax.f32 %v5908_v61, 0.0  ;;  %v5484_v2 = vld [vmem:[%s7399_s1 + $0x110] sm:$0xff]   ;;  %v5957_v24 = vpack.c.bf16 %v301_v54, %v300_v51  ;;  %s5625_s6 = scalar_lea.vmem %s7349_s17, 4096  ;;  %p5632_p0 = scmp.lt.s32.totalorder %s7349_s17, %s5630_s30 }
  0x27   : > { %4378 = vmatpush3.bf16.msra.mxu0 %v5472_v26  ;;  %335 = vst [vmem:[#allocation2 + $0x69] sm:$0xff] %v303_v59  ;;  %v305_v0 = vmax.f32 %v5911_v62, 0.0  ;;  %v5923_v3 = vld [vmem:[%s5870_s8 + $0x50] sm:$0xff]  ;;  %v5933_v9 = vld [vmem:[%s5870_s8 + $0x58] sm:$0xff]  ;;  %v5948_v19 = vld [vmem:[%s5870_s8 + $0x60] sm:$0xff]  ;;  %v6016_v47 = vpack.c.bf16 %v303_v59, %v302_v58  ;;  %p5626_p11 = scmp.ne.s32.totalorder %s7349_s17, %s5625_s6  ;;  %s5631_s9 = scalar_lea.vmem %s5630_s30, 8192 }
  0x28   : > { %4379 = vmatprep.subr.bf16.mxu0 %v5475_v29  ;;  %336 = vst [vmem:[#allocation2 + $0x79] sm:$0xff] %v304_v63  ;;  %v306_v7 = vmax.f32 %v5923_v3, 0.0  ;;  %v307_v12 = vmax.f32 %v5933_v9, 0.0  ;;  %v5485_v14 = vld [vmem:[%s7399_s1 + $0x158] sm:$0xff]   ;;  %v5951_v20 = vld [vmem:[%s5870_s8 + $0x68] sm:$0xff]  ;;  %v308_v21 = vmax.f32 %v5948_v19, 0.0  ;;  %p5633_p1 = scmp.lt.s32.totalorder %s5631_s9, %s5625_s6 }
  0x29   : > { %4490 = vmatpush3.bf16.msra.mxu1 %v5474_v28  ;;  %v456_v1 = vld [vmem:[#allocation2 + $0x18] sm:$0xff]  ;;  %v457_v4 = vld [vmem:[#allocation2 + $0x20] sm:$0xff]  ;;  %337 = vst [vmem:[#allocation2 + $0x81] sm:$0xff] %v305_v0  ;;  %v309_v22 = vmax.f32 %v5951_v20, 0.0  ;;  %v5969_v27 = vld [vmem:[%s5870_s8 + $0x70] sm:$0xff]  ;;  %p5627_p12 = pnand %p5626_p11, %p5762_p5 }
  0x2a   : > { %4491 = vmatprep.subr.bf16.mxu1 %v5477_v31  ;;  %v652_v8 = vpack.c.bf16 %v457_v4, %v456_v1  ;;  %338 = vst [vmem:[#allocation2 + $0x91] sm:$0xff] %v306_v7  ;;  %339 = vst [vmem:[#allocation2 + $0x99] sm:$0xff] %v307_v12  ;;  %v426_v15 = vld [vmem:[#allocation2 + $0x1a] sm:$0xff]  ;;  %v427_v16 = vld [vmem:[#allocation2 + $0x22] sm:$0xff]  ;;  %v310_v29 = vmax.f32 %v5969_v27, 0.0  ;;  %p5634_p2 = por %p5633_p1, %p5632_p0 }
  0x2b   : > { %4380 = vmatpush3.bf16.msra.mxu0 %v5476_v30  ;;  %v458_v10 = vld [vmem:[#allocation2 + $0x30] sm:$0xff]  ;;  %v459_v11 = vld [vmem:[#allocation2 + $0x38] sm:$0xff]  ;;  %v5955_v23 = vpack.c.bf16 %v427_v16, %v426_v15  ;;  %340 = vst [vmem:[#allocation2 + $0xa9] sm:$0xff] %v308_v21  ;;  %341 = vst [vmem:[#allocation2 + $0xb1] sm:$0xff] %v309_v22  ;;  %p5628_p13 = pneg %p5627_p12 }
  0x2c   : > { %4589 = vmatprep.subr.bf16.mxu0 %v5479_v36  ;;  %1569 = vmatprep.mubr.bf16.mxu1 %v652_v8  ;;  %v5938_v13 = vpack.c.bf16 %v459_v11, %v458_v10  ;;  %v460_v17 = vld [vmem:[#allocation2 + $0x48] sm:$0xff]  ;;  %v5486_v26 = vld [vmem:[%s7399_s1 + $0x118] sm:$0xff]   ;;  %342 = vst [vmem:[#allocation2 + $0xc1] sm:$0xff] %v310_v29  ;;  %v5985_v36 = vld [vmem:[%s5870_s8 + $0x80] sm:$0xff]  ;;  %v6068_v10 = vpack.c.bf16 %v305_v0, %v304_v63 }
  0x2d   : > { %4492 = vmatpush3.bf16.msra.mxu1 %v5478_v35  ;;  %v461_v18 = vld [vmem:[#allocation2 + $0x50] sm:$0xff]  ;;  %v5972_v28 = vld [vmem:[%s5870_s8 + $0x78] sm:$0xff]  ;;  %v462_v33 = vld [vmem:[#allocation2 + $0x60] sm:$0xff]  ;;  %v312_v38 = vmax.f32 %v5985_v36, 0.0  ;;  %p5635_p3 = pnand %p5634_p2, %p5628_p13 }
  0x2e   : > { %1409 = vmatmul.mubr.bf16.vlgmr.msra.gmra.mrb[0].mxu0 %v5690_v40  ;;  %v5959_v25 = vpack.c.bf16 %v461_v18, %v460_v17  ;;  %v428_v30 = vld [vmem:[#allocation2 + $0x32] sm:$0xff]  ;;  %v429_v31 = vld [vmem:[#allocation2 + $0x3a] sm:$0xff]  ;;  %v311_v32 = vmax.f32 %v5972_v28, 0.0  ;;  %v463_v34 = vld [vmem:[#allocation2 + $0x68] sm:$0xff] }
  0x2f   : > { %4590 = vmatpush3.bf16.msra.mxu0 %v5480_v42  ;;  %1416 = vmatprep.mubr.bf16.mxu0 %v5885_v45  ;;  %v5487_v35 = vld [vmem:[%s7399_s1 + $0x160] sm:$0xff]   ;;  %v5988_v37 = vld [vmem:[%s5870_s8 + $0x88] sm:$0xff]  ;;  %v5999_v41 = vld [vmem:[%s5870_s8 + $0x90] sm:$0xff]  ;;  %344 = vst [vmem:[#allocation2 + $0xd9] sm:$0xff] %v312_v38  ;;  %v6010_v46 = vpack.c.bf16 %v429_v31, %v428_v30  ;;  %v6102_v31 = vpack.c.bf16 %v307_v12, %v306_v7 }
  0x30   : > { %4591 = vmatprep.subr.bf16.mxu0 %v5481_v48  ;;  %1570 = vmatmul.mubr.bf16.vlgmr.msra.gmra.mrb[0].mxu1 %v651_v5  ;;  %343 = vst [vmem:[#allocation2 + $0xc9] sm:$0xff] %v311_v32  ;;  %v313_v39 = vmax.f32 %v5988_v37, 0.0  ;;  %v5488_v40 = vld [vmem:[%s7399_s1 + $0x120] sm:$0xff]   ;;  %v6002_v42 = vld [vmem:[%s5870_s8 + $0x98] sm:$0xff]  ;;  %v314_v43 = vmax.f32 %v5999_v41, 0.0  ;;  %v6018_v48 = vpack.c.bf16 %v463_v34, %v462_v33  ;;  %v5489_v49 = vld [vmem:[%s7399_s1 + $0x168] sm:$0xff]  }
  0x31   : > { %1577 = vmatprep.mubr.bf16.mxu1 %v5938_v13  ;;  %v315_v44 = vmax.f32 %v6002_v42, 0.0  ;;  %v6028_v50 = vld [vmem:[%s5870_s8 + $0xa0] sm:$0xff]  ;;  %v6031_v51 = vld [vmem:[%s5870_s8 + $0xa8] sm:$0xff]  ;;  %v431_v57 = vld [vmem:[#allocation2 + $0x52] sm:$0xff] }
  0x32   : > { %345 = vst [vmem:[#allocation2 + $0xe1] sm:$0xff] %v313_v39  ;;  %346 = vst [vmem:[#allocation2 + $0xf1] sm:$0xff] %v314_v43  ;;  %v316_v52 = vmax.f32 %v6028_v50, 0.0  ;;  %v317_v53 = vmax.f32 %v6031_v51, 0.0  ;;  %v5490_v54 = vld [vmem:[%s7399_s1 + $0x128] sm:$0xff]   ;;  %v6051_v59 = vld [vmem:[%s5870_s8 + $0xb8] sm:$0xff] }
  0x33   : > { %4592 = vmatpush3.bf16.msra.mxu0 %v5482_v55  ;;  %347 = vst [vmem:[#allocation2 + $0xf9] sm:$0xff] %v315_v44  ;;  %v6040_v55 = vld [vmem:[%s5870_s8 + $0xb0] sm:$0xff]  ;;  %v465_v1 = vld [vmem:[#allocation2 + $0x80] sm:$0xff]  ;;  %v6076_v15 = vld [vmem:[%s5870_s8 + $0xc8] sm:$0xff] }
  0x34   : > { %4593 = vmatprep.subr.bf16.mxu0 %v5483_v60  ;;  %v430_v56 = vld [vmem:[#allocation2 + $0x4a] sm:$0xff]  ;;  %348 = vst [vmem:[#allocation2 + $0x109] sm:$0xff] %v316_v52  ;;  %v318_v58 = vmax.f32 %v6040_v55, 0.0  ;;  %349 = vst [vmem:[#allocation2 + $0x111] sm:$0xff] %v317_v53  ;;  %v464_v60 = vld [vmem:[#allocation2 + $0x78] sm:$0xff]  ;;  %v321_v16 = vmax.f32 %v6076_v15, 0.0  ;;  %v6254_v41 = vpack.c.bf16 %v317_v53, %v316_v52 }
  0x35   : > { %v5491_v4 = vld [vmem:[%s7399_s1 + $0x170] sm:$0xff]   ;;  %v6060_v5 = vld [vmem:[%s5870_s8 + $0xc0] sm:$0xff]  ;;  %v467_v18 = vld [vmem:[#allocation2 + $0x98] sm:$0xff] }
  0x36   : > { %1417 = vmatmul.mubr.bf16.gmra.mrb[4].mxu0 %v652_v8  ;;  %350 = vst [vmem:[#allocation2 + $0x121] sm:$0xff] %v318_v58  ;;  %v6062_v8 = vpack.c.bf16 %v431_v57, %v430_v56  ;;  %v320_v11 = vmax.f32 %v6060_v5, 0.0  ;;  %v5492_v61 = vld [vmem:[%s7399_s1 + $0x130] sm:$0xff]   ;;  %v5493_v62 = vld [vmem:[%s7399_s1 + $0x1c0] sm:$0xff]   ;;  %353 = vst [vmem:[#allocation2 + $0x141] sm:$0xff] %v321_v16 }
  0x37   : > { %4594 = vmatpush3.bf16.msra.mxu0 %v5484_v2  ;;  %1424 = vmatprep.mubr.bf16.mxu0 %v5925_v6  ;;  %v319_v2 = vmax.f32 %v6051_v59, 0.0  ;;  %v432_v63 = vld [vmem:[#allocation2 + $0x62] sm:$0xff]  ;;  %v433_v0 = vld [vmem:[#allocation2 + $0x6a] sm:$0xff]  ;;  %v434_v7 = vld [vmem:[#allocation2 + $0x7a] sm:$0xff] }
  0x38   : > { %4595 = vmatprep.subr.bf16.mxu0 %v5485_v14  ;;  %1578 = vmatmul.mubr.bf16.gmra.mrb[4].mxu1 %v5955_v23  ;;  %v6073_v14 = vpack.c.bf16 %v465_v1, %v464_v60  ;;  %352 = vst [vmem:[#allocation2 + $0x139] sm:$0xff] %v320_v11  ;;  %v466_v17 = vld [vmem:[#allocation2 + $0x90] sm:$0xff]  ;;  %v6096_v30 = vpack.c.bf16 %v433_v0, %v432_v63  ;;  %v5495_v33 = vld [vmem:[%s7399_s1 + $0x1c8] sm:$0xff]   ;;  %v5499_v1 = vld [vmem:[%s7399_s1 + $0x1d8] sm:$0xff]  }
  0x39   : > { %1585 = vmatprep.mubr.bf16.mxu1 %v5959_v25  ;;  %351 = vst [vmem:[#allocation2 + $0x129] sm:$0xff] %v319_v2  ;;  %4701 = vmatprep.subr.bf16.mxu1 %v5493_v62  ;;  %v6107_v34 = vpack.c.bf16 %v467_v18, %v466_v17  ;;  %v435_v9 = vld [vmem:[#allocation2 + $0x82] sm:$0xff]  ;;  %v469_v56 = vld [vmem:[#allocation2 + $0xb0] sm:$0xff]  ;;  %v6146_v62 = vpack.c.bf16 %v309_v22, %v308_v21  ;;  %v5501_v63 = vld [vmem:[%s7399_s1 + $0x178] sm:$0xff]  }
  0x3a   : > { %v5497_v57 = vld [vmem:[%s7399_s1 + $0x1d0] sm:$0xff]   ;;  %v292_v0 = vld [vmem:[%s5870_s8 + $0xe0] sm:$0xff]  ;;  %v293_v17 = vld [vmem:[%s5870_s8 + $0xe8] sm:$0xff]  ;;  %v6268_v50 = vpack.c.bf16 %v319_v2, %v318_v58  ;;  %v6282_v55 = vpack.c.bf16 %v321_v16, %v320_v11 }
  0x3b   : > { %4596 = vmatpush3.bf16.msra.mxu0 %v5486_v26  ;;  %v5494_v26 = vld [vmem:[%s7399_s1 + $0x180] sm:$0xff]   ;;  %v5498_v60 = vld [vmem:[%s7399_s1 + $0x190] sm:$0xff]   ;;  %v5502_v19 = vld [vmem:[%s7399_s1 + $0x138] sm:$0xff]  }
  0x3c   : > { %4597 = vmatprep.subr.bf16.mxu0 %v5487_v35  ;;  %4702 = vmatpush3.bf16.msra.mxu1 %v5494_v26  ;;  %v5496_v35 = vld [vmem:[%s7399_s1 + $0x188] sm:$0xff]   ;;  %v324_v26 = vmax.f32 %v292_v0, 0.0  ;;  %v436_v20 = vld [vmem:[#allocation2 + $0x92] sm:$0xff]  ;;  %v5503_v21 = vld [vmem:[%s7399_s1 + $0x1e0] sm:$0xff]  }
  0x3d   : > { %4703 = vmatprep.subr.bf16.mxu1 %v5495_v33  ;;  %v325_v33 = vmax.f32 %v293_v17, 0.0  ;;  %v5506_v17 = vld [vmem:[%s7399_s1 + $0x1a8] sm:$0xff]   ;;  %v5507_v27 = vld [vmem:[%s7399_s1 + $0x1f0] sm:$0xff]   ;;  %v475_v37 = vld [vmem:[#allocation2 + $0xf8] sm:$0xff] }
  0x3e   : > { %1425 = vmatmul.mubr.bf16.gmra.mrb[8].mxu0 %v5938_v13  ;;  %356 = vst [vmem:[#allocation2 + $0x169] sm:$0xff] %v324_v26  ;;  %v438_v28 = vld [vmem:[#allocation2 + $0xaa] sm:$0xff]  ;;  %v447_v53 = vld [vmem:[#allocation2 + $0x112] sm:$0xff]  ;;  %v451_v16 = vld [vmem:[#allocation2 + $0x142] sm:$0xff] }
  0x3f   : > { %1432 = vmatprep.mubr.bf16.mxu0 %v5957_v24  ;;  %4598 = vmatpush3.bf16.msra.mxu0 %v5488_v40  ;;  %v6113_v40 = vld [vmem:[%s5870_s8 + $0xd0] sm:$0xff]  ;;  %357 = vst [vmem:[#allocation2 + $0x171] sm:$0xff] %v325_v33  ;;  %v6162_v22 = vpack.c.bf16 %v325_v33, %v324_v26  ;;  %v473_v33 = vld [vmem:[#allocation2 + $0xe0] sm:$0xff] }
  0x40   : > { %4599 = vmatprep.subr.bf16.mxu0 %v5489_v49  ;;  %1586 = vmatmul.mubr.bf16.gmra.mrb[8].mxu1 %v6010_v46  ;;  %v6116_v49 = vld [vmem:[%s5870_s8 + $0xd8] sm:$0xff]  ;;  %v322_v3 = vmax.f32 %v6113_v40, 0.0  ;;  %v474_v36 = vld [vmem:[#allocation2 + $0xf0] sm:$0xff]  ;;  %v448_v59 = vld [vmem:[#allocation2 + $0x122] sm:$0xff] }
  0x41   : > { %1593 = vmatprep.mubr.bf16.mxu1 %v6018_v48  ;;  %v323_v12 = vmax.f32 %v6116_v49, 0.0  ;;  %4704 = vmatpush3.bf16.msra.mxu1 %v5496_v35  ;;  %v437_v35 = vld [vmem:[#allocation2 + $0x9a] sm:$0xff]  ;;  %v446_v52 = vld [vmem:[#allocation2 + $0x10a] sm:$0xff] }
  0x42   : > { %354 = vst [vmem:[#allocation2 + $0x151] sm:$0xff] %v322_v3  ;;  %4705 = vmatprep.subr.bf16.mxu1 %v5497_v57  ;;  %v6174_v57 = vld [vmem:[%s5870_s8 + $0xf0] sm:$0xff]  ;;  %v450_v15 = vld [vmem:[#allocation2 + $0x13a] sm:$0xff] }
  0x43   : > { %4600 = vmatpush3.bf16.msra.mxu0 %v5490_v54  ;;  %v468_v54 = vld [vmem:[#allocation2 + $0xa8] sm:$0xff]  ;;  %355 = vst [vmem:[#allocation2 + $0x159] sm:$0xff] %v323_v12  ;;  %v6296_v5 = vpack.c.bf16 %v323_v12, %v322_v3 }
  0x44   : > { %4601 = vmatprep.subr.bf16.mxu0 %v5491_v4  ;;  %v5500_v4 = vld [vmem:[%s7399_s1 + $0x198] sm:$0xff]   ;;  %v6153_v18 = vpack.c.bf16 %v469_v56, %v468_v54  ;;  %v5504_v54 = vld [vmem:[%s7399_s1 + $0x1a0] sm:$0xff]   ;;  %v5505_v56 = vld [vmem:[%s7399_s1 + $0x1e8] sm:$0xff]  }
  0x45   : > { %4706 = vmatpush3.bf16.msra.mxu1 %v5498_v60  ;;  %v6176_v60 = vpack.c.bf16 %v437_v35, %v436_v20  ;;  %v5509_v20 = vld [vmem:[%s7399_s1 + $0x1f8] sm:$0xff]   ;;  %v449_v2 = vld [vmem:[#allocation2 + $0x12a] sm:$0xff] }
  0x46   : > { %1433 = vmatmul.mubr.bf16.gmra.mrb[12].mxu0 %v5959_v25  ;;  %4707 = vmatprep.subr.bf16.mxu1 %v5499_v1  ;;  %v6182_v1 = vpack.c.bf16 %v311_v32, %v310_v29  ;;  %v439_v29 = vld [vmem:[#allocation2 + $0xb2] sm:$0xff] }
  0x47   : > { %1440 = vmatprep.mubr.bf16.mxu0 %v6016_v47  ;;  %4602 = vmatpush3.bf16.msra.mxu0 %v5492_v61  ;;  %v6140_v61 = vpack.c.bf16 %v435_v9, %v434_v7  ;;  %v470_v7 = vld [vmem:[#allocation2 + $0xc0] sm:$0xff]  ;;  %v471_v9 = vld [vmem:[#allocation2 + $0xc8] sm:$0xff]  ;;  %v472_v32 = vld [vmem:[#allocation2 + $0xd8] sm:$0xff]  ;;  %v6216_v35 = vpack.c.bf16 %v439_v29, %v438_v28 }
  0x48   : > { %1594 = vmatmul.mubr.bf16.gmra.mrb[12].mxu1 %v6062_v8  ;;  %4603 = vmatprep.subr.bf16.mxu0 %v5501_v63  ;;  %v326_v63 = vmax.f32 %v6174_v57, 0.0  ;;  %v6188_v0 = vpack.c.bf16 %v471_v9, %v470_v7  ;;  %v6222_v7 = vpack.c.bf16 %v313_v39, %v312_v38  ;;  %v6225_v9 = vpack.c.bf16 %v473_v33, %v472_v32  ;;  %v442_v28 = vld [vmem:[#allocation2 + $0xda] sm:$0xff]  ;;  %v443_v29 = vld [vmem:[#allocation2 + $0xe2] sm:$0xff]  ;;  %v477_v33 = vld [vmem:[#allocation2 + $0x110] sm:$0xff] }
  0x49   : > { %1601 = vmatprep.mubr.bf16.mxu1 %v6073_v14  ;;  %4708 = vmatpush3.bf16.msra.mxu1 %v5500_v4  ;;  %v6185_v4 = vld [vmem:[%s5870_s8 + $0xf8] sm:$0xff]  ;;  %v6240_v39 = vpack.c.bf16 %v315_v44, %v314_v43  ;;  %v476_v32 = vld [vmem:[#allocation2 + $0x108] sm:$0xff] }
  0x4a   : > { %4709 = vmatprep.subr.bf16.mxu1 %v5503_v21  ;;  %v327_v26 = vmax.f32 %v6185_v4, 0.0  ;;  %358 = vst [vmem:[#allocation2 + $0x181] sm:$0xff] %v326_v63  ;;  %v6214_v21 = vld [vmem:[%s7399_s1 + $0x200] sm:$0xff]   ;;  %v6256_v42 = vpack.c.bf16 %v477_v33, %v476_v32  ;;  %v444_v43 = vld [vmem:[#allocation2 + $0xf2] sm:$0xff]  ;;  %v6290_v32 = vpack.c.bf16 %v449_v2, %v448_v59  ;;  %v484_v33 = vld [vmem:[#allocation2 + $0x168] sm:$0xff] }
  0x4b   : > { %4604 = vmatpush3.bf16.msra.mxu0 %v5502_v19  ;;  %v5508_v19 = vld [vmem:[%s7399_s1 + $0x1b0] sm:$0xff]   ;;  %v445_v44 = vld [vmem:[#allocation2 + $0xfa] sm:$0xff]  ;;  %v5512_v57 = vld [vmem:[%s7399_s1 + $0x208] sm:$0xff]  }
  0x4c   : > { %359 = vst [vmem:[#allocation2 + $0x189] sm:$0xff] %v327_v26  ;;  %5309 = vmatprep.subr.bf16.mxu0 %v6214_v21  ;;  %v452_v49 = vld [vmem:[#allocation2 + $0x152] sm:$0xff]  ;;  %v453_v3 = vld [vmem:[#allocation2 + $0x15a] sm:$0xff] }
  0x4d   : > { %4710 = vmatpush3.bf16.msra.mxu1 %v5504_v54  ;;  %v5510_v54 = vld [vmem:[%s7399_s1 + $0x1b8] sm:$0xff]  }
  0x4e   : > { %1441 = vmatmul.mubr.bf16.gmra.mrb[16].mxu0 %v6018_v48  ;;  %4711 = vmatprep.subr.bf16.mxu1 %v5505_v56  ;;  %v440_v56 = vld [vmem:[#allocation2 + $0xc2] sm:$0xff]  ;;  %v5514_v4 = vld [vmem:[%s7399_s1 + $0x218] sm:$0xff]  }
  0x4f   : > { %1448 = vmatprep.mubr.bf16.mxu0 %v6068_v10 }
  0x50   : > { %1602 = vmatmul.mubr.bf16.gmra.mrb[16].mxu1 %v6096_v30 }
  0x51   : > { %1609 = vmatprep.mubr.bf16.mxu1 %v6107_v34  ;;  %4712 = vmatpush3.bf16.msra.mxu1 %v5506_v17  ;;  %v441_v17 = vld [vmem:[#allocation2 + $0xca] sm:$0xff]  ;;  %v486_v12 = vld [vmem:[#allocation2 + $0x180] sm:$0xff] }
  0x52   : > { %4713 = vmatprep.subr.bf16.mxu1 %v5507_v27  ;;  %v6234_v38 = vpack.c.bf16 %v441_v17, %v440_v56  ;;  %v6242_v27 = vpack.c.bf16 %v475_v37, %v474_v36  ;;  %v6262_v56 = vpack.c.bf16 %v445_v44, %v444_v43  ;;  %v480_v17 = vld [vmem:[#allocation2 + $0x138] sm:$0xff]  ;;  %v481_v36 = vld [vmem:[#allocation2 + $0x140] sm:$0xff]  ;;  %v6276_v37 = vpack.c.bf16 %v447_v53, %v446_v52  ;;  %v485_v43 = vld [vmem:[#allocation2 + $0x170] sm:$0xff] }
  0x53   : > { %v6284_v58 = vpack.c.bf16 %v481_v36, %v480_v17  ;;  %v6304_v44 = vpack.c.bf16 %v451_v16, %v450_v15  ;;  %v6306_v40 = vpack.c.bf16 %v485_v43, %v484_v33  ;;  %v6320_v53 = vpack.c.bf16 %v327_v26, %v326_v63  ;;  %v454_v17 = vld [vmem:[#allocation2 + $0x16a] sm:$0xff]  ;;  %v455_v36 = vld [vmem:[#allocation2 + $0x172] sm:$0xff]  ;;  %v550_v33 = vld [vmem:[#allocation2 + $0x182] sm:$0xff] }
  0x54   : > { %v6326_v59 = vpack.c.bf16 %v455_v36, %v454_v17  ;;  %v551_v43 = vld [vmem:[#allocation2 + $0x18a] sm:$0xff] }
  0x55   : > { %4714 = vmatpush3.bf16.msra.mxu1 %v5508_v19  ;;  %v6248_v19 = vpack.c.bf16 %v443_v29, %v442_v28  ;;  %v482_v28 = vld [vmem:[#allocation2 + $0x150] sm:$0xff]  ;;  %v483_v29 = vld [vmem:[#allocation2 + $0x158] sm:$0xff]  ;;  %v6430_v36 = vpack.c.bf16 %v551_v43, %v550_v33 }
  0x56   : > { %1449 = vmatmul.mubr.bf16.gmra.mrb[20].mxu0 %v6073_v14  ;;  %4715 = vmatprep.subr.bf16.mxu1 %v5509_v20  ;;  %v478_v20 = vld [vmem:[#allocation2 + $0x120] sm:$0xff]  ;;  %v6298_v11 = vpack.c.bf16 %v483_v29, %v482_v28 }
  0x57   : > { %1456 = vmatprep.mubr.bf16.mxu0 %v6102_v31  ;;  %v5520_v28 = vld [vmem:[%s7401_s3] sm:$0xff]  }
  0x58   : > { %1610 = vmatmul.mubr.bf16.gmra.mrb[20].mxu1 %v6140_v61 }
  0x59   : > { %1617 = vmatprep.mubr.bf16.mxu1 %v6153_v18  ;;  %4716 = vmatpush3.bf16.msra.mxu1 %v5510_v54  ;;  %v479_v54 = vld [vmem:[#allocation2 + $0x128] sm:$0xff] }
  0x5a   : > { %v6270_v51 = vpack.c.bf16 %v479_v54, %v478_v20  ;;  %v487_v20 = vld [vmem:[#allocation2 + $0x188] sm:$0xff]  ;;  %v6312_v54 = vpack.c.bf16 %v453_v3, %v452_v49 }
  0x5b   : > { %v6314_v52 = vpack.c.bf16 %v487_v20, %v486_v12 }
  0x5e   : > { %1457 = vmatmul.mubr.bf16.gmra.mrb[24].mxu0 %v6107_v34 }
  0x5f   : > { %1464 = vmatprep.mubr.bf16.mxu0 %v6146_v62 }
  0x60   : > { %1618 = vmatmul.mubr.bf16.gmra.mrb[24].mxu1 %v6176_v60 }
  0x61   : > { %1625 = vmatprep.mubr.bf16.mxu1 %v6188_v0 }
  0x66   : > { %1465 = vmatmul.mubr.bf16.gmra.mrb[28].mxu0 %v6153_v18 }
  0x67   : > { %1472 = vmatprep.mubr.bf16.mxu0 %v6182_v1 }
  0x68   : > { %1626 = vmatmul.mubr.bf16.gmra.mrb[28].mxu1 %v6216_v35 }
  0x69   : > { %1633 = vmatprep.mubr.bf16.mxu1 %v6225_v9 }
  0x6e   : > { %1473 = vmatmul.mubr.bf16.gmra.mrb[32].mxu0 %v6188_v0 }
  0x6f   : > { %1480 = vmatprep.mubr.bf16.mxu0 %v6222_v7 }
  0x70   : > { %1634 = vmatmul.mubr.bf16.gmra.mrb[32].mxu1 %v6234_v38 }
  0x71   : > { %1641 = vmatprep.mubr.bf16.mxu1 %v6242_v27 }
  0x76   : > { %1481 = vmatmul.mubr.bf16.gmra.mrb[36].mxu0 %v6225_v9 }
  0x77   : > { %1488 = vmatprep.mubr.bf16.mxu0 %v6240_v39 }
  0x78   : > { %1642 = vmatmul.mubr.bf16.gmra.mrb[36].mxu1 %v6248_v19 }
  0x79   : > { %1649 = vmatprep.mubr.bf16.mxu1 %v6256_v42 }
  0x7e   : > { %1489 = vmatmul.mubr.bf16.gmra.mrb[40].mxu0 %v6242_v27 }
  0x7f   : > { %1496 = vmatprep.mubr.bf16.mxu0 %v6254_v41 }
  0x80   : > { %1650 = vmatmul.mubr.bf16.gmra.mrb[40].mxu1 %v6262_v56 }
  0x81   : > { %1657 = vmatprep.mubr.bf16.mxu1 %v6270_v51 }
  0x86   : > { %1497 = vmatmul.mubr.bf16.gmra.mrb[44].mxu0 %v6256_v42 }
  0x87   : > { %1504 = vmatprep.mubr.bf16.mxu0 %v6268_v50 }
  0x88   : > { %1658 = vmatmul.mubr.bf16.gmra.mrb[44].mxu1 %v6276_v37 }
  0x89   : > { %1665 = vmatprep.mubr.bf16.mxu1 %v6284_v58 }
  0x8e   : > { %1505 = vmatmul.mubr.bf16.gmra.mrb[48].mxu0 %v6270_v51 }
  0x8f   : > { %1512 = vmatprep.mubr.bf16.mxu0 %v6282_v55 }
  0x90   : > { %1666 = vmatmul.mubr.bf16.gmra.mrb[48].mxu1 %v6290_v32 }
  0x91   : > { %1673 = vmatprep.mubr.bf16.mxu1 %v6298_v11 }
  0x96   : > { %1513 = vmatmul.mubr.bf16.gmra.mrb[52].mxu0 %v6284_v58 }
  0x97   : > { %1520 = vmatprep.mubr.bf16.mxu0 %v6296_v5 }
  0x98   : > { %1674 = vmatmul.mubr.bf16.gmra.mrb[52].mxu1 %v6304_v44 }
  0x99   : > { %1681 = vmatprep.mubr.bf16.mxu1 %v6306_v40 }
  0x9e   : > { %1521 = vmatmul.mubr.bf16.gmra.mrb[56].mxu0 %v6298_v11 }
  0x9f   : > { %1528 = vmatprep.mubr.bf16.mxu0 %v6162_v22 }
  0xa0   : > { %1682 = vmatmul.mubr.bf16.gmra.mrb[56].mxu1 %v6312_v54 }
  0xa1   : > { %1689 = vmatprep.mubr.bf16.mxu1 %v6314_v52 }
  0xa6   : > { %1529 = vmatmul.mubr.bf16.gmra.mrb[60].mxu0 %v6306_v40 }
  0xa7   : > { %1730 = vmatprep.mubr.bf16.mxu0 %v5955_v23  ;;  %v5513_v23 = vld [vmem:[%s7399_s1 + $0x210] sm:$0xff]  }
  0xa8   : > { %1690 = vmatmul.mubr.bf16.gmra.mrb[60].mxu1 %v6326_v59 }
  0xa9   : > { %1891 = vmatprep.mubr.bf16.mxu1 %v5925_v6 }
  0xae   : > { %1731 = vmatmul.mubr.bf16.vlgmr.msra.gmra.mrb[64].mxu0 %v5885_v45  ;;  %v5515_v45 = vld [vmem:[%s7399_s1 + $0x220] sm:$0xff]  }
  0xaf   : > { %5310 = vmatpush3.bf16.msra.mxu0 %v6214_v21  ;;  %1738 = vmatprep.mubr.bf16.mxu0 %v6010_v46  ;;  %v5516_v46 = vld [vmem:[%s7399_s1 + $0x228] sm:$0xff]  }
  0xb0   : > { %5311 = vmatprep.subr.bf16.mxu0 %v5512_v57  ;;  %1892 = vmatmul.mubr.bf16.vlgmr.msra.gmra.mrb[64].mxu1 %v5938_v13  ;;  %v5518_v13 = vld [vmem:[%s7399_s1 + $0x238] sm:$0xff]  }
  0xb1   : > { %1899 = vmatprep.mubr.bf16.mxu1 %v5957_v24 }
  0xb3   : > { %5312 = vmatpush3.bf16.msra.mxu0 %v5512_v57 }
  0xb4   : > { %5313 = vmatprep.subr.bf16.mxu0 %v5513_v23 }
  0xb6   : > { %1739 = vmatmul.mubr.bf16.gmra.mrb[68].mxu0 %v5925_v6  ;;  %v5517_v6 = vld [vmem:[%s7399_s1 + $0x230] sm:$0xff]  }
  0xb7   : > { %1746 = vmatprep.mubr.bf16.mxu0 %v6062_v8  ;;  %5314 = vmatpush3.bf16.msra.mxu0 %v5513_v23 }
  0xb8   : > { %5315 = vmatprep.subr.bf16.mxu0 %v5514_v4  ;;  %1900 = vmatmul.mubr.bf16.gmra.mrb[68].mxu1 %v5959_v25 }
  0xb9   : > { %1907 = vmatprep.mubr.bf16.mxu1 %v6016_v47 }
  0xbb   : > { %5316 = vmatpush3.bf16.msra.mxu0 %v5514_v4 }
  0xbc   : > { %5317 = vmatprep.subr.bf16.mxu0 %v5515_v45 }
  0xbe   : > { %1747 = vmatmul.mubr.bf16.gmra.mrb[72].mxu0 %v5957_v24 }
  0xbf   : > { %1754 = vmatprep.mubr.bf16.mxu0 %v6096_v30  ;;  %5318 = vmatpush3.bf16.msra.mxu0 %v5515_v45 }
  0xc0   : > { %5319 = vmatprep.subr.bf16.mxu0 %v5516_v46  ;;  %1908 = vmatmul.mubr.bf16.gmra.mrb[72].mxu1 %v6018_v48 }
  0xc1   : > { %1915 = vmatprep.mubr.bf16.mxu1 %v6068_v10 }
  0xc3   : > { %5320 = vmatpush3.bf16.msra.mxu0 %v5516_v46 }
  0xc4   : > { %5321 = vmatprep.subr.bf16.mxu0 %v5517_v6 }
  0xc6   : > { %1755 = vmatmul.mubr.bf16.gmra.mrb[76].mxu0 %v6016_v47 }
  0xc7   : > { %1762 = vmatprep.mubr.bf16.mxu0 %v6140_v61  ;;  %5322 = vmatpush3.bf16.msra.mxu0 %v5517_v6 }
  0xc8   : > { %5323 = vmatprep.subr.bf16.mxu0 %v5518_v13  ;;  %1916 = vmatmul.mubr.bf16.gmra.mrb[76].mxu1 %v6073_v14  ;;  %v6399_v14 = vld [vmem:[%s7400_s2] ss:$0 sm:$0xff] }
  0xc9   : > { %1923 = vmatprep.mubr.bf16.mxu1 %v6102_v31 }
  0xcb   : > { %5324 = vmatpush3.bf16.msra.mxu0 %v5518_v13  ;;  %v617_v13 = vld [vmem:[#allocation2 + $0x32] sm:$0xff] }
  0xce   : > { %1763 = vmatmul.mubr.bf16.gmra.mrb[80].mxu0 %v6068_v10 }
  0xcf   : > { %1770 = vmatprep.mubr.bf16.mxu0 %v6176_v60 }
  0xd0   : > { %1924 = vmatmul.mubr.bf16.gmra.mrb[80].mxu1 %v6107_v34 }
  0xd1   : > { %1931 = vmatprep.mubr.bf16.mxu1 %v6146_v62 }
  0xd6   : > { %1771 = vmatmul.mubr.bf16.gmra.mrb[84].mxu0 %v6102_v31 }
  0xd7   : > { %1778 = vmatprep.mubr.bf16.mxu0 %v6216_v35 }
  0xd8   : > { %1932 = vmatmul.mubr.bf16.gmra.mrb[84].mxu1 %v6153_v18 }
  0xd9   : > { %1939 = vmatprep.mubr.bf16.mxu1 %v6182_v1 }
  0xde   : > { %1779 = vmatmul.mubr.bf16.gmra.mrb[88].mxu0 %v6146_v62 }
  0xdf   : > { %1786 = vmatprep.mubr.bf16.mxu0 %v6234_v38 }
  0xe0   : > { %1940 = vmatmul.mubr.bf16.gmra.mrb[88].mxu1 %v6188_v0 }
  0xe1   : > { %1947 = vmatprep.mubr.bf16.mxu1 %v6222_v7 }
  0xe6   : > { %1787 = vmatmul.mubr.bf16.gmra.mrb[92].mxu0 %v6182_v1 }
  0xe7   : > { %1794 = vmatprep.mubr.bf16.mxu0 %v6248_v19 }
  0xe8   : > { %1948 = vmatmul.mubr.bf16.gmra.mrb[92].mxu1 %v6225_v9 }
  0xe9   : > { %1955 = vmatprep.mubr.bf16.mxu1 %v6240_v39 }
  0xee   : > { %1795 = vmatmul.mubr.bf16.gmra.mrb[96].mxu0 %v6222_v7 }
  0xef   : > { %1802 = vmatprep.mubr.bf16.mxu0 %v6262_v56 }
  0xf0   : > { %1956 = vmatmul.mubr.bf16.gmra.mrb[96].mxu1 %v6242_v27 }
  0xf1   : > { %1963 = vmatprep.mubr.bf16.mxu1 %v6254_v41 }
  0xf6   : > { %1803 = vmatmul.mubr.bf16.gmra.mrb[100].mxu0 %v6240_v39 }
  0xf7   : > { %1810 = vmatprep.mubr.bf16.mxu0 %v6276_v37 }
  0xf8   : > { %1964 = vmatmul.mubr.bf16.gmra.mrb[100].mxu1 %v6256_v42 }
  0xf9   : > { %1971 = vmatprep.mubr.bf16.mxu1 %v6268_v50 }
  0xfe   : > { %1811 = vmatmul.mubr.bf16.gmra.mrb[104].mxu0 %v6254_v41 }
  0xff   : > { %1818 = vmatprep.mubr.bf16.mxu0 %v6290_v32 }
 0x100   : > { %1972 = vmatmul.mubr.bf16.gmra.mrb[104].mxu1 %v6270_v51 }
 0x101   : > { %v4381_v24 = vpop.f32.mrb[0].mxu0  ;;  %1979 = vmatprep.mubr.bf16.mxu1 %v6282_v55 }
 0x102   : > { %v4382_v25 = vpop.f32.mrb[1].mxu0 }
 0x103   : > { %v4383_v47 = vadd.f32 %v4382_v25, %v4381_v24  ;;  %v4384_v48 = vpop.f32.mrb[2].mxu0  ;;  %v4493_v34 = vpop.f32.mrb[0].mxu1  ;;  %v618_v24 = vld [vmem:[#allocation2 + $0x3a] sm:$0xff] }
 0x104   : > { %v4385_v8 = vpop.f32.mrb[3].mxu0  ;;  %v4494_v62 = vpop.f32.mrb[1].mxu1 }
 0x105   : > { %v4386_v10 = vadd.f32 %v4385_v8, %v4384_v48  ;;  %v1411_v31 = vadd.f32 %v4383_v47, %v6399_v14  ;;  %v4495_v63 = vadd.f32 %v4494_v62, %v4493_v34  ;;  %v4496_v0 = vpop.f32.mrb[2].mxu1  ;;  %v615_v48 = vld [vmem:[#allocation2 + $0x199] sm:$0xff]  ;;  %v616_v8 = vld [vmem:[#allocation2 + $0x1a1] sm:$0xff]  ;;  %v657_v62 = vpack.c.bf16 %v618_v24, %v617_v13 }
 0x106   : > { %1819 = vmatmul.mubr.bf16.gmra.mrb[108].mxu0 %v6268_v50  ;;  %v4497_v21 = vpop.f32.mrb[3].mxu1 }
 0x107   : > { %1826 = vmatprep.mubr.bf16.mxu0 %v6304_v44  ;;  %v1414_v1 = vadd.f32 %v4386_v10, %v6399_v14  ;;  %v4498_v7 = vadd.f32 %v4497_v21, %v4496_v0  ;;  %v6406_v9 = vadd.f32 %v4495_v63, %v1411_v31  ;;  %v791_v63 = vpack.c.bf16 %v616_v8, %v615_v48  ;;  %v5521_v0 = vld [vmem:[%s7401_s3 + $0x48] sm:$0xff]  }
 0x108   : > { %1980 = vmatmul.mubr.bf16.gmra.mrb[108].mxu1 %v6284_v58  ;;  %v5519_v58 = vld [vmem:[%s7401_s3 + $0x40] sm:$0xff]  }
 0x109   : > { %v4387_v30 = vpop.f32.mrb[4].mxu0  ;;  %1987 = vmatprep.mubr.bf16.mxu1 %v6296_v5  ;;  %v6411_v38 = vadd.f32 %v4498_v7, %v1414_v1  ;;  %4837 = vmatprep.subr.bf16.mxu1 %v5519_v58  ;;  %v5591_v58 = vld [vmem:[#allocation2] sm:$0xff] }
 0x10a   : > { %v4388_v61 = vpop.f32.mrb[5].mxu0  ;;  %4838 = vmatpush3.bf16.msra.mxu1 %v5520_v28  ;;  %v6456_v28 = vpack.c.bf16 %v5591_v58, %v5591_v58 }
 0x10b   : > { %v4389_v18 = vadd.f32 %v4388_v61, %v4387_v30  ;;  %v4390_v60 = vpop.f32.mrb[6].mxu0  ;;  %v4499_v19 = vpop.f32.mrb[4].mxu1  ;;  %4839 = vmatprep.subr.bf16.mxu1 %v5521_v0  ;;  %v629_v0 = vld [vmem:[#allocation2 + $0xc2] sm:$0xff] }
 0x10c   : > { %v4391_v26 = vpop.f32.mrb[7].mxu0  ;;  %v4500_v42 = vpop.f32.mrb[5].mxu1 }
 0x10d   : > { %v4392_v35 = vadd.f32 %v4391_v26, %v4390_v60  ;;  %v1419_v27 = vadd.f32 %v4389_v18, %v6399_v14  ;;  %v4501_v37 = vadd.f32 %v4500_v42, %v4499_v19  ;;  %v5522_v26 = vld [vmem:[%s7401_s3 + $0x8] sm:$0xff]   ;;  %v620_v19 = vld [vmem:[#allocation2 + $0x52] sm:$0xff] }
 0x10e   : > { %1827 = vmatmul.mubr.bf16.gmra.mrb[112].mxu0 %v6282_v55  ;;  %v4502_v55 = vpop.f32.mrb[6].mxu1  ;;  %v622_v42 = vld [vmem:[#allocation2 + $0x6a] sm:$0xff]  ;;  %4840 = vmatpush3.bf16.msra.mxu1 %v5522_v26 }
 0x10f   : > { %1834 = vmatprep.mubr.bf16.mxu0 %v6312_v54  ;;  %v1422_v51 = vadd.f32 %v4392_v35, %v6399_v14  ;;  %v4503_v29 = vpop.f32.mrb[7].mxu1  ;;  %v6422_v16 = vadd.f32 %v4501_v37, %v1419_v27  ;;  %v619_v27 = vld [vmem:[#allocation2 + $0x4a] sm:$0xff] }
 0x110   : > { %v4504_v15 = vadd.f32 %v4503_v29, %v4502_v55  ;;  %1988 = vmatmul.mubr.bf16.gmra.mrb[112].mxu1 %v6298_v11  ;;  %v630_v26 = vld [vmem:[#allocation2 + $0xca] sm:$0xff] }
 0x111   : > { %v4393_v39 = vpop.f32.mrb[8].mxu0  ;;  %1995 = vmatprep.mubr.bf16.mxu1 %v6162_v22 }
 0x112   : > { %v4394_v41 = vpop.f32.mrb[9].mxu0  ;;  %v6427_v44 = vadd.f32 %v4504_v15, %v1422_v51 }
 0x113   : > { %v4395_v56 = vadd.f32 %v4394_v41, %v4393_v39  ;;  %v4396_v50 = vpop.f32.mrb[10].mxu0  ;;  %v4505_v12 = vpop.f32.mrb[8].mxu1  ;;  %v621_v41 = vld [vmem:[#allocation2 + $0x62] sm:$0xff] }
 0x114   : > { %v4397_v2 = vpop.f32.mrb[11].mxu0 }
 0x115   : > { %v4398_v32 = vadd.f32 %v4397_v2, %v4396_v50  ;;  %v1427_v3 = vadd.f32 %v4395_v56, %v6399_v14 }
 0x116   : > { %1835 = vmatmul.mubr.bf16.gmra.mrb[116].mxu0 %v6296_v5  ;;  %v4506_v5 = vpop.f32.mrb[9].mxu1 }
 0x117   : > { %1842 = vmatprep.mubr.bf16.mxu0 %v6326_v59  ;;  %v1430_v11 = vadd.f32 %v4398_v32, %v6399_v14  ;;  %v4507_v59 = vadd.f32 %v4506_v5, %v4505_v12  ;;  %v4508_v57 = vpop.f32.mrb[10].mxu1  ;;  %v675_v32 = vpack.c.bf16 %v622_v42, %v621_v41 }
 0x118   : > { %v4509_v4 = vpop.f32.mrb[11].mxu1  ;;  %1996 = vmatmul.mubr.bf16.gmra.mrb[116].mxu1 %v6306_v40 }
 0x119   : > { %v4399_v49 = vpop.f32.mrb[12].mxu0  ;;  %v4510_v46 = vadd.f32 %v4509_v4, %v4508_v57  ;;  %v6434_v6 = vadd.f32 %v4507_v59, %v1427_v3  ;;  %2003 = vmatprep.mubr.bf16.mxu1 %v6320_v53  ;;  %v626_v59 = vld [vmem:[#allocation2 + $0x9a] sm:$0xff] }
 0x11a   : > { %v4400_v20 = vpop.f32.mrb[13].mxu0 }
 0x11b   : > { %v4401_v54 = vadd.f32 %v4400_v20, %v4399_v49  ;;  %v4402_v17 = vpop.f32.mrb[14].mxu0  ;;  %v6439_v25 = vadd.f32 %v4510_v46, %v1430_v11  ;;  %v4511_v30 = vpop.f32.mrb[12].mxu1  ;;  %v625_v11 = vld [vmem:[#allocation2 + $0x92] sm:$0xff] }
 0x11c   : > { %v4403_v23 = vpop.f32.mrb[15].mxu0  ;;  %v693_v8 = vpack.c.bf16 %v626_v59, %v625_v11 }
 0x11d   : > { %v4404_v45 = vadd.f32 %v4403_v23, %v4402_v17  ;;  %v1435_v10 = vadd.f32 %v4401_v54, %v6399_v14  ;;  %v623_v54 = vld [vmem:[#allocation2 + $0x7a] sm:$0xff]  ;;  %v624_v17 = vld [vmem:[#allocation2 + $0x82] sm:$0xff] }
 0x11e   : > { %1843 = vmatmul.mubr.bf16.gmra.mrb[120].mxu0 %v6162_v22  ;;  %v4512_v22 = vpop.f32.mrb[13].mxu1  ;;  %v684_v13 = vpack.c.bf16 %v624_v17, %v623_v54 }
 0x11f   : > { %1850 = vmatprep.mubr.bf16.mxu0 %v6430_v36  ;;  %v1438_v40 = vadd.f32 %v4404_v45, %v6399_v14  ;;  %v4513_v18 = vadd.f32 %v4512_v22, %v4511_v30  ;;  %v4514_v60 = vpop.f32.mrb[14].mxu1 }
 0x120   : > { %v4515_v21 = vpop.f32.mrb[15].mxu1  ;;  %2004 = vmatmul.mubr.bf16.gmra.mrb[120].mxu1 %v6314_v52 }
 0x121   : > { %v4405_v47 = vpop.f32.mrb[16].mxu0  ;;  %v4516_v7 = vadd.f32 %v4515_v21, %v4514_v60  ;;  %v6450_v39 = vadd.f32 %v4513_v18, %v1435_v10  ;;  %2011 = vmatprep.mubr.bf16.mxu1 %v791_v63  ;;  %v628_v63 = vld [vmem:[#allocation2 + $0xb2] sm:$0xff] }
 0x122   : > { %v4406_v31 = vpop.f32.mrb[17].mxu0 }
 0x123   : > { %v4407_v34 = vadd.f32 %v4406_v31, %v4405_v47  ;;  %v4408_v61 = vpop.f32.mrb[18].mxu0  ;;  %v6453_v56 = vadd.f32 %v4516_v7, %v1438_v40  ;;  %v4517_v37 = vpop.f32.mrb[16].mxu1 }
 0x124   : > { %v4409_v1 = vpop.f32.mrb[19].mxu0  ;;  %v4518_v2 = vpop.f32.mrb[17].mxu1 }
 0x125   : > { %v4410_v35 = vadd.f32 %v4409_v1, %v4408_v61  ;;  %v1443_v51 = vadd.f32 %v4407_v34, %v6399_v14  ;;  %v4519_v33 = vadd.f32 %v4518_v2, %v4517_v37  ;;  %v4520_v43 = vpop.f32.mrb[18].mxu1  ;;  %v5523_v34 = vld [vmem:[%s7401_s3 + $0x50] sm:$0xff]   ;;  %v711_v37 = vpack.c.bf16 %v630_v26, %v629_v0 }
 0x126   : > { %1851 = vmatmul.mubr.bf16.gmra.mrb[124].mxu0 %v6320_v53  ;;  %v666_v53 = vpack.c.bf16 %v620_v19, %v619_v27  ;;  %v4521_v3 = vpop.f32.mrb[19].mxu1  ;;  %v5524_v61 = vld [vmem:[%s7401_s3 + $0x10] sm:$0xff]   ;;  %4841 = vmatprep.subr.bf16.mxu1 %v5523_v34 }
 0x127   : > { %5325 = vmatprep.mubr.bf16.mxu0 %v657_v62  ;;  %v1446_v15 = vadd.f32 %v4410_v35, %v6399_v14  ;;  %v4522_v20 = vadd.f32 %v4521_v3, %v4520_v43  ;;  %v6459_v5 = vadd.f32 %v4519_v33, %v1443_v51  ;;  %v627_v1 = vld [vmem:[#allocation2 + $0xaa] sm:$0xff]  ;;  %4842 = vmatpush3.bf16.msra.mxu1 %v5524_v61  ;;  %v631_v33 = vld [vmem:[#allocation2 + $0xda] sm:$0xff]  ;;  %v632_v43 = vld [vmem:[#allocation2 + $0xe2] sm:$0xff] }
 0x128   : > { %2012 = vmatmul.mubr.bf16.gmra.mrb[124].mxu1 %v6456_v28  ;;  %v702_v41 = vpack.c.bf16 %v628_v63, %v627_v1  ;;  %v634_v3 = vld [vmem:[#allocation2 + $0xfa] sm:$0xff]  ;;  %v720_v59 = vpack.c.bf16 %v632_v43, %v631_v33  ;;  %v635_v61 = vld [vmem:[#allocation2 + $0x10a] sm:$0xff]  ;;  %v641_v43 = vld [vmem:[#allocation2 + $0x152] sm:$0xff] }
 0x129   : > { %v4411_v50 = vpop.f32.mrb[20].mxu0  ;;  %v6462_v57 = vadd.f32 %v4522_v20, %v1446_v15 }
 0x12a   : > { %v4412_v55 = vpop.f32.mrb[21].mxu0 }
 0x12b   : > { %v4413_v52 = vadd.f32 %v4412_v55, %v4411_v50  ;;  %v4414_v29 = vpop.f32.mrb[22].mxu0  ;;  %v4523_v45 = vpop.f32.mrb[20].mxu1 }
 0x12c   : > { %v4415_v49 = vpop.f32.mrb[23].mxu0  ;;  %v4524_v24 = vpop.f32.mrb[21].mxu1 }
 0x12d   : > { %v4416_v12 = vadd.f32 %v4415_v49, %v4414_v29  ;;  %v1451_v4 = vadd.f32 %v4413_v52, %v6399_v14  ;;  %v4525_v30 = vadd.f32 %v4524_v24, %v4523_v45  ;;  %v4526_v31 = vpop.f32.mrb[22].mxu1  ;;  %v633_v49 = vld [vmem:[#allocation2 + $0xf2] sm:$0xff] }
 0x12e   : > { %5326 = vmatmul.mubr.bf16.vlgmr.msra.gmra.mrb[128].mxu0 %v666_v53  ;;  %v4527_v62 = vpop.f32.mrb[23].mxu1 }
 0x12f   : > { %5329 = vmatprep.mubr.bf16.mxu0 %v675_v32  ;;  %v1454_v10 = vadd.f32 %v4416_v12, %v6399_v14  ;;  %v4528_v18 = vadd.f32 %v4527_v62, %v4526_v31  ;;  %v6472_v60 = vadd.f32 %v4525_v30, %v1451_v4  ;;  %v636_v62 = vld [vmem:[#allocation2 + $0x112] sm:$0xff] }
 0x131   : > { %v4417_v23 = vpop.f32.mrb[24].mxu0  ;;  %v6474_v21 = vadd.f32 %v4528_v18, %v1454_v10  ;;  %v5526_v10 = vld [vmem:[%s7401_s3 + $0x18] sm:$0xff]   ;;  %v638_v18 = vld [vmem:[#allocation2 + $0x12a] sm:$0xff] }
 0x132   : > { %v4418_v46 = vpop.f32.mrb[25].mxu0 }
 0x133   : > { %v4419_v47 = vadd.f32 %v4418_v46, %v4417_v23  ;;  %v4420_v48 = vpop.f32.mrb[26].mxu0  ;;  %v4529_v27 = vpop.f32.mrb[24].mxu1  ;;  %v729_v46 = vpack.c.bf16 %v634_v3, %v633_v49  ;;  %v642_v49 = vld [vmem:[#allocation2 + $0x15a] sm:$0xff] }
 0x134   : > { %v4421_v22 = vpop.f32.mrb[27].mxu0  ;;  %v4530_v42 = vpop.f32.mrb[25].mxu1 }
 0x135   : > { %v4422_v40 = vadd.f32 %v4421_v22, %v4420_v48  ;;  %v1459_v7 = vadd.f32 %v4419_v47, %v6399_v14  ;;  %v4531_v53 = vadd.f32 %v4530_v42, %v4529_v27  ;;  %v4532_v2 = vpop.f32.mrb[26].mxu1 }
 0x136   : > { %5330 = vmatmul.mubr.bf16.gmra.mrb[132].mxu0 %v684_v13  ;;  %v4533_v52 = vpop.f32.mrb[27].mxu1 }
 0x137   : > { %5333 = vmatprep.mubr.bf16.mxu0 %v693_v8  ;;  %v1462_v55 = vadd.f32 %v4422_v40, %v6399_v14  ;;  %v4534_v32 = vadd.f32 %v4533_v52, %v4532_v2  ;;  %v6478_v15 = vadd.f32 %v4531_v53, %v1459_v7  ;;  %v5525_v8 = vld [vmem:[%s7401_s3 + $0x58] sm:$0xff]   ;;  %v637_v40 = vld [vmem:[#allocation2 + $0x122] sm:$0xff]  ;;  %v738_v7 = vpack.c.bf16 %v636_v62, %v635_v61  ;;  %v643_v61 = vld [vmem:[#allocation2 + $0x16a] sm:$0xff] }
 0x138   : > { %4843 = vmatprep.subr.bf16.mxu1 %v5525_v8  ;;  %v747_v42 = vpack.c.bf16 %v638_v18, %v637_v40  ;;  %v5528_v8 = vld [vmem:[%s7401_s3 + $0x20] sm:$0xff]   ;;  %v644_v62 = vld [vmem:[#allocation2 + $0x172] sm:$0xff] }
 0x139   : > { %v4423_v35 = vpop.f32.mrb[28].mxu0  ;;  %v6480_v12 = vadd.f32 %v4534_v32, %v1462_v55  ;;  %4844 = vmatpush3.bf16.msra.mxu1 %v5526_v10  ;;  %v640_v32 = vld [vmem:[#allocation2 + $0x142] sm:$0xff] }
 0x13a   : > { %v4424_v19 = vpop.f32.mrb[29].mxu0 }
 0x13b   : > { %v4425_v50 = vadd.f32 %v4424_v19, %v4423_v35  ;;  %v4426_v51 = vpop.f32.mrb[30].mxu0  ;;  %v4535_v17 = vpop.f32.mrb[28].mxu1 }
 0x13c   : > { %v4427_v58 = vpop.f32.mrb[31].mxu0  ;;  %v4536_v23 = vpop.f32.mrb[29].mxu1 }
 0x13d   : > { %v4428_v29 = vadd.f32 %v4427_v58, %v4426_v51  ;;  %v1467_v54 = vadd.f32 %v4425_v50, %v6399_v14  ;;  %v4537_v24 = vadd.f32 %v4536_v23, %v4535_v17  ;;  %v4538_v47 = vpop.f32.mrb[30].mxu1 }
 0x13e   : > { %5334 = vmatmul.mubr.bf16.gmra.mrb[136].mxu0 %v702_v41  ;;  %v4539_v30 = vpop.f32.mrb[31].mxu1 }
 0x13f   : > { %5337 = vmatprep.mubr.bf16.mxu0 %v711_v37  ;;  %v1470_v13 = vadd.f32 %v4428_v29, %v6399_v14  ;;  %v4540_v22 = vadd.f32 %v4539_v30, %v4538_v47  ;;  %v6490_v34 = vadd.f32 %v4537_v24, %v1467_v54  ;;  %v639_v29 = vld [vmem:[#allocation2 + $0x13a] sm:$0xff] }
 0x141   : > { %v4429_v20 = vpop.f32.mrb[32].mxu0  ;;  %v6492_v1 = vadd.f32 %v4540_v22, %v1470_v13 }
 0x142   : > { %v4430_v11 = vpop.f32.mrb[33].mxu0 }
 0x143   : > { %v4431_v4 = vadd.f32 %v4430_v11, %v4429_v20  ;;  %v4432_v45 = vpop.f32.mrb[34].mxu0  ;;  %v4541_v26 = vpop.f32.mrb[32].mxu1  ;;  %v756_v11 = vpack.c.bf16 %v640_v32, %v639_v29  ;;  %v648_v29 = vld [vmem:[#allocation2 + $0x1a2] sm:$0xff] }
 0x144   : > { %v4433_v48 = vpop.f32.mrb[35].mxu0  ;;  %v4542_v27 = vpop.f32.mrb[33].mxu1 }
 0x145   : > { %v4434_v31 = vadd.f32 %v4433_v48, %v4432_v45  ;;  %v1475_v0 = vadd.f32 %v4431_v4, %v6399_v14  ;;  %v4543_v51 = vadd.f32 %v4542_v27, %v4541_v26  ;;  %v4544_v37 = vpop.f32.mrb[34].mxu1  ;;  %v765_v45 = vpack.c.bf16 %v642_v49, %v641_v43  ;;  %v5527_v48 = vld [vmem:[%s7401_s3 + $0x60] sm:$0xff]  }
 0x146   : > { %5338 = vmatmul.mubr.bf16.gmra.mrb[140].mxu0 %v720_v59  ;;  %v4545_v53 = vpop.f32.mrb[35].mxu1  ;;  %4845 = vmatprep.subr.bf16.mxu1 %v5527_v48 }
 0x147   : > { %5341 = vmatprep.mubr.bf16.mxu0 %v729_v46  ;;  %v1478_v50 = vadd.f32 %v4434_v31, %v6399_v14  ;;  %v6496_v58 = vadd.f32 %v4543_v51, %v1475_v0  ;;  %v4546_v52 = vadd.f32 %v4545_v53, %v4544_v37  ;;  %4846 = vmatpush3.bf16.msra.mxu1 %v5528_v8 }
 0x149   : > { %v4435_v63 = vpop.f32.mrb[36].mxu0  ;;  %v6498_v33 = vadd.f32 %v4546_v52, %v1478_v50  ;;  %v647_v52 = vld [vmem:[#allocation2 + $0x19a] sm:$0xff] }
 0x14a   : > { %v4436_v35 = vpop.f32.mrb[37].mxu0 }
 0x14b   : > { %v4437_v19 = vadd.f32 %v4436_v35, %v4435_v63  ;;  %v4438_v41 = vpop.f32.mrb[38].mxu0  ;;  %v4547_v54 = vpop.f32.mrb[36].mxu1  ;;  %v774_v35 = vpack.c.bf16 %v644_v62, %v643_v61 }
 0x14c   : > { %v4439_v55 = vpop.f32.mrb[39].mxu0  ;;  %v4548_v59 = vpop.f32.mrb[37].mxu1 }
 0x14d   : > { %v4440_v2 = vadd.f32 %v4439_v55, %v4438_v41  ;;  %v1483_v20 = vadd.f32 %v4437_v19, %v6399_v14  ;;  %v4549_v13 = vadd.f32 %v4548_v59, %v4547_v54  ;;  %v4550_v24 = vpop.f32.mrb[38].mxu1  ;;  %v792_v54 = vpack.c.bf16 %v648_v29, %v647_v52 }
 0x14e   : > { %5342 = vmatmul.mubr.bf16.gmra.mrb[144].mxu0 %v738_v7  ;;  %v4551_v10 = vpop.f32.mrb[39].mxu1 }
 0x14f   : > { %5345 = vmatprep.mubr.bf16.mxu0 %v747_v42  ;;  %v1486_v46 = vadd.f32 %v4440_v2, %v6399_v14  ;;  %v6508_v31 = vadd.f32 %v4549_v13, %v1483_v20  ;;  %v4552_v22 = vadd.f32 %v4551_v10, %v4550_v24  ;;  %v5530_v13 = vld [vmem:[%s7401_s3 + $0x28] sm:$0xff]  }
 0x151   : > { %v4441_v3 = vpop.f32.mrb[40].mxu0  ;;  %v6510_v40 = vadd.f32 %v4552_v22, %v1486_v46 }
 0x152   : > { %v4442_v17 = vpop.f32.mrb[41].mxu0 }
 0x153   : > { %v4443_v23 = vadd.f32 %v4442_v17, %v4441_v3  ;;  %v4444_v4 = vpop.f32.mrb[42].mxu0  ;;  %v4553_v0 = vpop.f32.mrb[40].mxu1 }
 0x154   : > { %v4445_v47 = vpop.f32.mrb[43].mxu0  ;;  %v4554_v7 = vpop.f32.mrb[41].mxu1 }
 0x155   : > { %v4446_v30 = vadd.f32 %v4445_v47, %v4444_v4  ;;  %v1491_v63 = vadd.f32 %v4443_v23, %v6399_v14  ;;  %v4555_v42 = vadd.f32 %v4554_v7, %v4553_v0  ;;  %v4556_v50 = vpop.f32.mrb[42].mxu1 }
 0x156   : > { %5346 = vmatmul.mubr.bf16.gmra.mrb[148].mxu0 %v756_v11  ;;  %v4557_v37 = vpop.f32.mrb[43].mxu1 }
 0x157   : > { %5349 = vmatprep.mubr.bf16.mxu0 %v765_v45  ;;  %v1494_v41 = vadd.f32 %v4446_v30, %v6399_v14  ;;  %v6514_v53 = vadd.f32 %v4555_v42, %v1491_v63  ;;  %v4558_v2 = vadd.f32 %v4557_v37, %v4556_v50 }
 0x159   : > { %v4447_v18 = vpop.f32.mrb[44].mxu0  ;;  %v6517_v32 = vadd.f32 %v4558_v2, %v1494_v41 }
 0x15a   : > { %v4448_v26 = vpop.f32.mrb[45].mxu0 }
 0x15b   : > { %v4449_v27 = vadd.f32 %v4448_v26, %v4447_v18  ;;  %v4450_v19 = vpop.f32.mrb[46].mxu0  ;;  %v4559_v3 = vpop.f32.mrb[44].mxu1 }
 0x15c   : > { %v4451_v51 = vpop.f32.mrb[47].mxu0  ;;  %v4560_v17 = vpop.f32.mrb[45].mxu1 }
 0x15d   : > { %v4452_v55 = vadd.f32 %v4451_v51, %v4450_v19  ;;  %v1499_v49 = vadd.f32 %v4449_v27, %v6399_v14  ;;  %v4561_v4 = vadd.f32 %v4560_v17, %v4559_v3  ;;  %v4562_v45 = vpop.f32.mrb[46].mxu1 }
 0x15e   : > { %5350 = vmatmul.mubr.bf16.gmra.mrb[152].mxu0 %v774_v35  ;;  %v4563_v24 = vpop.f32.mrb[47].mxu1 }
 0x15f   : > { %5353 = vmatprep.mubr.bf16.mxu0 %v6430_v36  ;;  %v1502_v23 = vadd.f32 %v4452_v55, %v6399_v14  ;;  %v5529_v36 = vld [vmem:[%s7401_s3 + $0x68] sm:$0xff]   ;;  %v6527_v48 = vadd.f32 %v4561_v4, %v1499_v49  ;;  %v4564_v8 = vadd.f32 %v4563_v24, %v4562_v45  ;;  %v5533_v24 = vld [vmem:[%s7401_s3 + $0xc0] sm:$0xff]  }
 0x160   : > { %4847 = vmatprep.subr.bf16.mxu1 %v5529_v36  ;;  %4949 = vmatprep.subr.bf16.mxu0 %v5533_v24 }
 0x161   : > { %v4453_v43 = vpop.f32.mrb[48].mxu0  ;;  %4848 = vmatpush3.bf16.msra.mxu1 %v5530_v13  ;;  %v6529_v10 = vadd.f32 %v4564_v8, %v1502_v23 }
 0x162   : > { %v4454_v20 = vpop.f32.mrb[49].mxu0 }
 0x163   : > { %v4455_v11 = vadd.f32 %v4454_v20, %v4453_v43  ;;  %v4456_v59 = vpop.f32.mrb[50].mxu0  ;;  %v4565_v61 = vpop.f32.mrb[48].mxu1 }
 0x164   : > { %v4457_v46 = vpop.f32.mrb[51].mxu0  ;;  %v4566_v18 = vpop.f32.mrb[49].mxu1 }
 0x165   : > { %v4458_v47 = vadd.f32 %v4457_v46, %v4456_v59  ;;  %v1507_v22 = vadd.f32 %v4455_v11, %v6399_v14  ;;  %v4567_v35 = vadd.f32 %v4566_v18, %v4565_v61  ;;  %v4568_v7 = vpop.f32.mrb[50].mxu1  ;;  %v5531_v11 = vld [vmem:[%s7401_s3 + $0x70] sm:$0xff]  }
 0x166   : > { %5354 = vmatmul.mubr.bf16.gmra.mrb[156].mxu0 %v792_v54  ;;  %v4569_v19 = vpop.f32.mrb[51].mxu1  ;;  %v5532_v59 = vld [vmem:[%s7401_s3 + $0x30] sm:$0xff]   ;;  %4849 = vmatprep.subr.bf16.mxu1 %v5531_v11 }
 0x167   : > { %v1510_v26 = vadd.f32 %v4458_v47, %v6399_v14  ;;  %v6533_v42 = vadd.f32 %v4567_v35, %v1507_v22  ;;  %v4570_v50 = vadd.f32 %v4569_v19, %v4568_v7  ;;  %4850 = vmatpush3.bf16.msra.mxu1 %v5532_v59  ;;  %v5534_v22 = vld [vmem:[%s7401_s3 + $0x80] sm:$0xff]   ;;  %v5535_v19 = vld [vmem:[%s7401_s3 + $0xc8] sm:$0xff]  }
 0x168   : > { %4950 = vmatpush3.bf16.msra.mxu0 %v5534_v22 }
 0x169   : > { %v4459_v30 = vpop.f32.mrb[52].mxu0  ;;  %v6535_v51 = vadd.f32 %v4570_v50, %v1510_v26  ;;  %4951 = vmatprep.subr.bf16.mxu0 %v5535_v19 }
 0x16a   : > { %v4460_v62 = vpop.f32.mrb[53].mxu0 }
 0x16b   : > { %v4461_v63 = vadd.f32 %v4460_v62, %v4459_v30  ;;  %v4462_v0 = vpop.f32.mrb[54].mxu0  ;;  %v4571_v2 = vpop.f32.mrb[52].mxu1 }
 0x16c   : > { %v4463_v27 = vpop.f32.mrb[55].mxu0  ;;  %v4572_v29 = vpop.f32.mrb[53].mxu1 }
 0x16d   : > { %v4464_v41 = vadd.f32 %v4463_v27, %v4462_v0  ;;  %v1515_v55 = vadd.f32 %v4461_v63, %v6399_v14  ;;  %v4573_v20 = vadd.f32 %v4572_v29, %v4571_v2  ;;  %v4574_v54 = vpop.f32.mrb[54].mxu1 }
 0x16e   : > { %v4575_v23 = vpop.f32.mrb[55].mxu1 }
 0x16f   : > { %v1518_v3 = vadd.f32 %v4464_v41, %v6399_v14  ;;  %v6545_v45 = vadd.f32 %v4573_v20, %v1515_v55  ;;  %v4576_v46 = vadd.f32 %v4575_v23, %v4574_v54 }
 0x171   : > { %v4465_v37 = vpop.f32.mrb[56].mxu0  ;;  %v6547_v36 = vadd.f32 %v4576_v46, %v1518_v3  ;;  %v5540_v3 = vld [vmem:[%s7401_s3 + $0x90] sm:$0xff]   ;;  %v5537_v46 = vld [vmem:[%s7401_s3 + $0x78] sm:$0xff]  }
 0x172   : > { %v4466_v52 = vpop.f32.mrb[57].mxu0  ;;  %4851 = vmatprep.subr.bf16.mxu1 %v5537_v46  ;;  %v5548_v46 = vld [vmem:[%s7401_s3 + $0x140] sm:$0xff]  }
 0x173   : > { %v4467_v43 = vadd.f32 %v4466_v52, %v4465_v37  ;;  %v4468_v49 = vpop.f32.mrb[58].mxu0  ;;  %v4577_v8 = vpop.f32.mrb[56].mxu1  ;;  %v5536_v37 = vld [vmem:[%s7401_s3 + $0x88] sm:$0xff]   ;;  %v5538_v52 = vld [vmem:[%s7401_s3 + $0xd0] sm:$0xff]  }
 0x174   : > { %v4469_v17 = vpop.f32.mrb[59].mxu0  ;;  %v4578_v61 = vpop.f32.mrb[57].mxu1  ;;  %4952 = vmatpush3.bf16.msra.mxu0 %v5536_v37  ;;  %v2278_v37 = vld [vmem:[#allocation2 + $0x9] sm:$0xff] }
 0x175   : > { %v4470_v4 = vadd.f32 %v4469_v17, %v4468_v49  ;;  %v1523_v47 = vadd.f32 %v4467_v43, %v6399_v14  ;;  %v4579_v0 = vadd.f32 %v4578_v61, %v4577_v8  ;;  %v4580_v26 = vpop.f32.mrb[58].mxu1  ;;  %4953 = vmatprep.subr.bf16.mxu0 %v5538_v52  ;;  %v5542_v61 = vld [vmem:[%s7401_s3 + $0x98] sm:$0xff]  }
 0x176   : > { %v4581_v7 = vpop.f32.mrb[59].mxu1 }
 0x177   : > { %v1526_v63 = vadd.f32 %v4470_v4, %v6399_v14  ;;  %v6560_v41 = vadd.f32 %v4579_v0, %v1523_v47  ;;  %v4582_v50 = vadd.f32 %v4581_v7, %v4580_v26  ;;  %v5544_v0 = vld [vmem:[%s7401_s3 + $0xa0] sm:$0xff]   ;;  %v5545_v26 = vld [vmem:[%s7401_s3 + $0xe8] sm:$0xff]  }
 0x178   : > { %4954 = vmatpush3.bf16.msra.mxu0 %v5540_v3 }
 0x179   : > { %v4471_v13 = vpop.f32.mrb[60].mxu0  ;;  %v6565_v55 = vadd.f32 %v4582_v50, %v1526_v63  ;;  %v5543_v63 = vld [vmem:[%s7401_s3 + $0xe0] sm:$0xff]  }
 0x17a   : > { %v4472_v30 = vpop.f32.mrb[61].mxu0  ;;  %v2277_v50 = vld [vmem:[#allocation2 + $0x1] sm:$0xff] }
 0x17b   : > { %v4473_v62 = vadd.f32 %v4472_v30, %v4471_v13  ;;  %v4474_v18 = vpop.f32.mrb[62].mxu0  ;;  %v4583_v43 = vpop.f32.mrb[60].mxu1  ;;  %v5539_v13 = vld [vmem:[%s7401_s3 + $0x38] sm:$0xff]  }
 0x17c   : > { %v4475_v35 = vpop.f32.mrb[63].mxu0  ;;  %v4584_v20 = vpop.f32.mrb[61].mxu1  ;;  %4852 = vmatpush3.bf16.msra.mxu1 %v5539_v13  ;;  %v5549_v13 = vld [vmem:[%s7401_s3 + $0xb0] sm:$0xff]  }
 0x17d   : > { %v4476_v27 = vadd.f32 %v4475_v35, %v4474_v18  ;;  %v1531_v29 = vadd.f32 %v4473_v62, %v6399_v14  ;;  %v4585_v59 = vadd.f32 %v4584_v20, %v4583_v43  ;;  %v4586_v23 = vpop.f32.mrb[62].mxu1  ;;  %v2534_v43 = vpack.c.bf16 %v2278_v37, %v2277_v50  ;;  %5061 = vmatprep.subr.bf16.mxu1 %v5548_v46 }
 0x17e   : > { %v4587_v24 = vpop.f32.mrb[63].mxu1 }
 0x17f   : > { %v1534_v11 = vadd.f32 %v4476_v27, %v6399_v14  ;;  %v5541_v14 = vld [vmem:[%s7401_s3 + $0xd8] sm:$0xff]   ;;  %v6585_v30 = vadd.f32 %v4585_v59, %v1531_v29  ;;  %v4588_v22 = vadd.f32 %v4587_v24, %v4586_v23  ;;  %3292 = vmatprep.mubr.bf16.mxu1 %v2534_v43 }
 0x180   : > { %4955 = vmatprep.subr.bf16.mxu0 %v5541_v14  ;;  %3293 = vmatmul.mubr.bf16.vlgmr.msra.gmra.mrb[128].mxu1 %v6456_v28  ;;  %v5550_v28 = vld [vmem:[%s7401_s3 + $0x100] sm:$0xff]  }
 0x181   : > { %v4605_v2 = vpop.f32.mrb[64].mxu0  ;;  %v6591_v18 = vadd.f32 %v4588_v22, %v1534_v11  ;;  %4956 = vmatpush3.bf16.msra.mxu0 %v5542_v61  ;;  %v5546_v11 = vld [vmem:[%s7401_s3 + $0xa8] sm:$0xff]   ;;  %5062 = vmatpush3.bf16.msra.mxu1 %v5550_v28 }
 0x182   : > { %v4606_v49 = vpop.f32.mrb[65].mxu0  ;;  %4957 = vmatprep.subr.bf16.mxu0 %v5543_v63 }
 0x183   : > { %v4607_v54 = vadd.f32 %v4606_v49, %v4605_v2  ;;  %v4608_v17 = vpop.f32.mrb[66].mxu0  ;;  %v4717_v35 = vpop.f32.mrb[64].mxu1 }
 0x184   : > { %v4609_v4 = vpop.f32.mrb[67].mxu0  ;;  %v4718_v7 = vpop.f32.mrb[65].mxu1 }
 0x185   : > { %v1733_v47 = vadd.f32 %v4607_v54, %v6406_v9  ;;  %v4610_v8 = vadd.f32 %v4609_v4, %v4608_v17  ;;  %v4719_v2 = vadd.f32 %v4718_v7, %v4717_v35  ;;  %v4720_v52 = vpop.f32.mrb[66].mxu1  ;;  %4958 = vmatpush3.bf16.msra.mxu0 %v5544_v0  ;;  %v5552_v7 = vld [vmem:[%s7401_s3 + $0xb8] sm:$0xff]  }
 0x186   : > { %v4721_v49 = vpop.f32.mrb[67].mxu1  ;;  %4959 = vmatprep.subr.bf16.mxu0 %v5545_v26 }
 0x187   : > { %v1736_v62 = vadd.f32 %v4610_v8, %v6411_v38  ;;  %v4722_v54 = vadd.f32 %v4721_v49, %v4720_v52  ;;  %v6603_v17 = vadd.f32 %v4719_v2, %v1733_v47  ;;  %v5551_v47 = vld [vmem:[%s7401_s3 + $0xf8] sm:$0xff]  }
 0x189   : > { %v4611_v9 = vpop.f32.mrb[68].mxu0  ;;  %v6610_v23 = vadd.f32 %v4722_v54, %v1736_v62  ;;  %4960 = vmatpush3.bf16.msra.mxu0 %v5546_v11 }
 0x18a   : > { %v4612_v38 = vpop.f32.mrb[69].mxu0 }
 0x18b   : > { %v4613_v27 = vadd.f32 %v4612_v38, %v4611_v9  ;;  %v4614_v19 = vpop.f32.mrb[70].mxu0  ;;  %v4723_v24 = vpop.f32.mrb[68].mxu1 }
 0x18c   : > { %v4615_v29 = vpop.f32.mrb[71].mxu0  ;;  %v4724_v8 = vpop.f32.mrb[69].mxu1 }
 0x18d   : > { %v1741_v3 = vadd.f32 %v4613_v27, %v6422_v16  ;;  %v4616_v20 = vadd.f32 %v4615_v29, %v4614_v19  ;;  %v5547_v16 = vld [vmem:[%s7401_s3 + $0xf0] sm:$0xff]   ;;  %v4725_v61 = vadd.f32 %v4724_v8, %v4723_v24  ;;  %v4726_v62 = vpop.f32.mrb[70].mxu1  ;;  %v5554_v24 = vld [vmem:[%s7401_s3 + $0x108] sm:$0xff]  }
 0x18e   : > { %4961 = vmatprep.subr.bf16.mxu0 %v5547_v16  ;;  %v4727_v63 = vpop.f32.mrb[71].mxu1 }
 0x18f   : > { %v1744_v59 = vadd.f32 %v4616_v20, %v6427_v44  ;;  %4962 = vmatpush3.bf16.msra.mxu0 %v5549_v13  ;;  %v4728_v35 = vadd.f32 %v4727_v63, %v4726_v62  ;;  %v6628_v38 = vadd.f32 %v4725_v61, %v1741_v3  ;;  %v5553_v13 = vld [vmem:[%s7401_s3 + $0x148] sm:$0xff]  }
 0x190   : > { %4963 = vmatprep.subr.bf16.mxu0 %v5551_v47  ;;  %5063 = vmatprep.subr.bf16.mxu1 %v5553_v13 }
 0x191   : > { %v4617_v4 = vpop.f32.mrb[72].mxu0  ;;  %v6634_v19 = vadd.f32 %v4728_v35, %v1744_v59  ;;  %5064 = vmatpush3.bf16.msra.mxu1 %v5554_v24 }
 0x192   : > { %v4618_v44 = vpop.f32.mrb[73].mxu0 }
 0x193   : > { %v4619_v14 = vadd.f32 %v4618_v44, %v4617_v4  ;;  %v4620_v22 = vpop.f32.mrb[74].mxu0  ;;  %4964 = vmatpush3.bf16.msra.mxu0 %v5552_v7  ;;  %v4729_v37 = vpop.f32.mrb[72].mxu1 }
 0x194   : > { %v4621_v9 = vpop.f32.mrb[75].mxu0  ;;  %v4730_v52 = vpop.f32.mrb[73].mxu1 }
 0x195   : > { %v1749_v0 = vadd.f32 %v4619_v14, %v6434_v6  ;;  %v4622_v26 = vadd.f32 %v4621_v9, %v4620_v22  ;;  %v4731_v43 = vadd.f32 %v4730_v52, %v4729_v37  ;;  %v4732_v49 = vpop.f32.mrb[74].mxu1 }
 0x196   : > { %v4733_v3 = vpop.f32.mrb[75].mxu1 }
 0x197   : > { %v1752_v27 = vadd.f32 %v4622_v26, %v6439_v25  ;;  %v4734_v4 = vadd.f32 %v4733_v3, %v4732_v49  ;;  %v6637_v16 = vadd.f32 %v4731_v43, %v1749_v0 }
 0x199   : > { %v4623_v50 = vpop.f32.mrb[76].mxu0  ;;  %v6640_v59 = vadd.f32 %v4734_v4, %v1752_v27 }
 0x19a   : > { %v4624_v2 = vpop.f32.mrb[77].mxu0 }
 0x19b   : > { %v4625_v29 = vadd.f32 %v4624_v2, %v4623_v50  ;;  %v4626_v6 = vpop.f32.mrb[78].mxu0  ;;  %v4735_v44 = vpop.f32.mrb[76].mxu1 }
 0x19c   : > { %v4627_v20 = vpop.f32.mrb[79].mxu0 }
 0x19d   : > { %v1757_v54 = vadd.f32 %v4625_v29, %v6450_v39  ;;  %v4628_v11 = vadd.f32 %v4627_v20, %v4626_v6  ;;  %v4736_v39 = vpop.f32.mrb[77].mxu1 }
 0x19e   : > { %v4737_v14 = vadd.f32 %v4736_v39, %v4735_v44  ;;  %v4738_v22 = vpop.f32.mrb[78].mxu1 }
 0x19f   : > { %v1760_v25 = vadd.f32 %v4628_v11, %v6453_v56  ;;  %v4739_v61 = vpop.f32.mrb[79].mxu1 }
 0x1a0   : > { %v4740_v63 = vadd.f32 %v4739_v61, %v4738_v22  ;;  %v6649_v0 = vadd.f32 %v4737_v14, %v1757_v54 }
 0x1a1   : > { %v4629_v46 = vpop.f32.mrb[80].mxu0 }
 0x1a2   : > { %v4630_v28 = vpop.f32.mrb[81].mxu0  ;;  %v6652_v35 = vadd.f32 %v4740_v63, %v1760_v25  ;;  %v5555_v25 = vld [vmem:[%s7401_s3 + $0x150] sm:$0xff]  }
 0x1a3   : > { %v4631_v47 = vadd.f32 %v4630_v28, %v4629_v46  ;;  %v4632_v8 = vpop.f32.mrb[82].mxu0  ;;  %v4741_v27 = vpop.f32.mrb[80].mxu1  ;;  %v5556_v46 = vld [vmem:[%s7401_s3 + $0x110] sm:$0xff]   ;;  %5065 = vmatprep.subr.bf16.mxu1 %v5555_v25 }
 0x1a4   : > { %v4633_v56 = vpop.f32.mrb[83].mxu0  ;;  %v4742_v37 = vpop.f32.mrb[81].mxu1  ;;  %5066 = vmatpush3.bf16.msra.mxu1 %v5556_v46 }
 0x1a5   : > { %v1765_v62 = vadd.f32 %v4631_v47, %v6459_v5  ;;  %v4634_v9 = vadd.f32 %v4633_v56, %v4632_v8  ;;  %v4743_v29 = vadd.f32 %v4742_v37, %v4741_v27  ;;  %v4744_v6 = vpop.f32.mrb[82].mxu1 }
 0x1a6   : > { %v4745_v49 = vpop.f32.mrb[83].mxu1 }
 0x1a7   : > { %v1768_v26 = vadd.f32 %v4634_v9, %v6462_v57  ;;  %v4746_v3 = vadd.f32 %v4745_v49, %v4744_v6  ;;  %v6655_v54 = vadd.f32 %v4743_v29, %v1765_v62 }
 0x1a9   : > { %v4635_v7 = vpop.f32.mrb[84].mxu0  ;;  %v6658_v11 = vadd.f32 %v4746_v3, %v1768_v26 }
 0x1aa   : > { %v4636_v50 = vpop.f32.mrb[85].mxu0 }
 0x1ab   : > { %v4637_v2 = vadd.f32 %v4636_v50, %v4635_v7  ;;  %v4638_v52 = vpop.f32.mrb[86].mxu0  ;;  %v4747_v13 = vpop.f32.mrb[84].mxu1 }
 0x1ac   : > { %v4639_v43 = vpop.f32.mrb[87].mxu0 }
 0x1ad   : > { %v1773_v5 = vadd.f32 %v4637_v2, %v6472_v60  ;;  %v4640_v20 = vadd.f32 %v4639_v43, %v4638_v52  ;;  %v4748_v60 = vpop.f32.mrb[85].mxu1 }
 0x1ae   : > { %v4749_v39 = vadd.f32 %v4748_v60, %v4747_v13  ;;  %v4750_v47 = vpop.f32.mrb[86].mxu1 }
 0x1af   : > { %v1776_v57 = vadd.f32 %v4640_v20, %v6474_v21  ;;  %v4751_v8 = vpop.f32.mrb[87].mxu1 }
 0x1b0   : > { %v4752_v56 = vadd.f32 %v4751_v8, %v4750_v47  ;;  %v6667_v61 = vadd.f32 %v4749_v39, %v1773_v5 }
 0x1b1   : > { %v4641_v4 = vpop.f32.mrb[88].mxu0 }
 0x1b2   : > { %v4642_v24 = vpop.f32.mrb[89].mxu0  ;;  %v6670_v9 = vadd.f32 %v4752_v56, %v1776_v57  ;;  %v5557_v57 = vld [vmem:[%s7401_s3 + $0x158] sm:$0xff]  }
 0x1b3   : > { %v4643_v44 = vadd.f32 %v4642_v24, %v4641_v4  ;;  %v4644_v28 = vpop.f32.mrb[90].mxu0  ;;  %v4753_v26 = vpop.f32.mrb[88].mxu1  ;;  %v5558_v4 = vld [vmem:[%s7401_s3 + $0x118] sm:$0xff]   ;;  %5067 = vmatprep.subr.bf16.mxu1 %v5557_v57 }
 0x1b4   : > { %v4645_v21 = vpop.f32.mrb[91].mxu0  ;;  %v4754_v27 = vpop.f32.mrb[89].mxu1  ;;  %5068 = vmatpush3.bf16.msra.mxu1 %v5558_v4 }
 0x1b5   : > { %v1781_v14 = vadd.f32 %v4643_v44, %v6478_v15  ;;  %v4646_v22 = vadd.f32 %v4645_v21, %v4644_v28  ;;  %v4755_v2 = vadd.f32 %v4754_v27, %v4753_v26  ;;  %v4756_v52 = vpop.f32.mrb[90].mxu1  ;;  %v5559_v21 = vld [vmem:[%s7401_s3 + $0x1c0] sm:$0xff]  }
 0x1b6   : > { %v4757_v6 = vpop.f32.mrb[91].mxu1  ;;  %5173 = vmatprep.subr.bf16.mxu0 %v5559_v21 }
 0x1b7   : > { %v1784_v62 = vadd.f32 %v4646_v22, %v6480_v12  ;;  %v4758_v49 = vadd.f32 %v4757_v6, %v4756_v52  ;;  %v6673_v5 = vadd.f32 %v4755_v2, %v1781_v14  ;;  %v5561_v52 = vld [vmem:[%s7401_s3 + $0x160] sm:$0xff]  }
 0x1b8   : > { %5069 = vmatprep.subr.bf16.mxu1 %v5561_v52 }
 0x1b9   : > { %v4647_v63 = vpop.f32.mrb[92].mxu0  ;;  %v6676_v20 = vadd.f32 %v4758_v49, %v1784_v62 }
 0x1ba   : > { %v4648_v7 = vpop.f32.mrb[93].mxu0 }
 0x1bb   : > { %v4649_v50 = vadd.f32 %v4648_v7, %v4647_v63  ;;  %v4650_v37 = vpop.f32.mrb[94].mxu0  ;;  %v4759_v25 = vpop.f32.mrb[92].mxu1 }
 0x1bc   : > { %v4651_v29 = vpop.f32.mrb[95].mxu0 }
 0x1bd   : > { %v1789_v15 = vadd.f32 %v4649_v50, %v6490_v34  ;;  %v4652_v43 = vadd.f32 %v4651_v29, %v4650_v37  ;;  %v4760_v34 = vpop.f32.mrb[93].mxu1 }
 0x1be   : > { %v4761_v60 = vadd.f32 %v4760_v34, %v4759_v25  ;;  %v4762_v44 = vpop.f32.mrb[94].mxu1 }
 0x1bf   : > { %v1792_v12 = vadd.f32 %v4652_v43, %v6492_v1  ;;  %v4763_v28 = vpop.f32.mrb[95].mxu1 }
 0x1c0   : > { %v4764_v8 = vadd.f32 %v4763_v28, %v4762_v44  ;;  %v6688_v14 = vadd.f32 %v4761_v60, %v1789_v15  ;;  %v5562_v15 = vld [vmem:[%s7401_s3 + $0x120] sm:$0xff]  }
 0x1c1   : > { %v4653_v3 = vpop.f32.mrb[96].mxu0  ;;  %5070 = vmatpush3.bf16.msra.mxu1 %v5562_v15 }
 0x1c2   : > { %v4654_v46 = vpop.f32.mrb[97].mxu0  ;;  %v6691_v56 = vadd.f32 %v4764_v8, %v1792_v12 }
 0x1c3   : > { %v4655_v13 = vadd.f32 %v4654_v46, %v4653_v3  ;;  %v4656_v24 = vpop.f32.mrb[98].mxu0  ;;  %v4765_v63 = vpop.f32.mrb[96].mxu1 }
 0x1c4   : > { %v4657_v1 = vpop.f32.mrb[99].mxu0  ;;  %v4766_v7 = vpop.f32.mrb[97].mxu1 }
 0x1c5   : > { %v1797_v39 = vadd.f32 %v4655_v13, %v6496_v58  ;;  %v4658_v47 = vadd.f32 %v4657_v1, %v4656_v24  ;;  %v4767_v58 = vadd.f32 %v4766_v7, %v4765_v63  ;;  %v4768_v37 = vpop.f32.mrb[98].mxu1 }
 0x1c6   : > { %v4769_v29 = vpop.f32.mrb[99].mxu1 }
 0x1c7   : > { %v1800_v22 = vadd.f32 %v4658_v47, %v6498_v33  ;;  %v4770_v43 = vadd.f32 %v4769_v29, %v4768_v37  ;;  %v6700_v49 = vadd.f32 %v4767_v58, %v1797_v39 }
 0x1c9   : > { %v4659_v62 = vpop.f32.mrb[100].mxu0  ;;  %v6703_v3 = vadd.f32 %v4770_v43, %v1800_v22 }
 0x1ca   : > { %v4660_v26 = vpop.f32.mrb[101].mxu0 }
 0x1cb   : > { %v4661_v27 = vadd.f32 %v4660_v26, %v4659_v62  ;;  %v4662_v50 = vpop.f32.mrb[102].mxu0  ;;  %v4771_v4 = vpop.f32.mrb[100].mxu1 }
 0x1cc   : > { %v4663_v2 = vpop.f32.mrb[103].mxu0  ;;  %v4772_v46 = vpop.f32.mrb[101].mxu1 }
 0x1cd   : > { %v1805_v6 = vadd.f32 %v4661_v27, %v6508_v31  ;;  %v4664_v33 = vadd.f32 %v4663_v2, %v4662_v50  ;;  %v4773_v13 = vadd.f32 %v4772_v46, %v4771_v4  ;;  %v4774_v24 = vpop.f32.mrb[102].mxu1 }
 0x1ce   : > { %v4775_v44 = vpop.f32.mrb[103].mxu1 }
 0x1cf   : > { %v1808_v12 = vadd.f32 %v4664_v33, %v6510_v40  ;;  %v4776_v39 = vadd.f32 %v4775_v44, %v4774_v24  ;;  %v6706_v47 = vadd.f32 %v4773_v13, %v1805_v6 }
 0x1d1   : > { %v4665_v57 = vpop.f32.mrb[104].mxu0  ;;  %v6709_v21 = vadd.f32 %v4776_v39, %v1808_v12 }
 0x1d2   : > { %v4666_v25 = vpop.f32.mrb[105].mxu0 }
 0x1d3   : > { %v4667_v34 = vadd.f32 %v4666_v25, %v4665_v57  ;;  %v4668_v31 = vpop.f32.mrb[106].mxu0  ;;  %v4777_v22 = vpop.f32.mrb[104].mxu1 }
 0x1d4   : > { %v4669_v60 = vpop.f32.mrb[107].mxu0  ;;  %v4778_v63 = vpop.f32.mrb[105].mxu1 }
 0x1d5   : > { %v1813_v1 = vadd.f32 %v4667_v34, %v6514_v53  ;;  %v4670_v28 = vadd.f32 %v4669_v60, %v4668_v31  ;;  %v4779_v27 = vadd.f32 %v4778_v63, %v4777_v22  ;;  %v4780_v50 = vpop.f32.mrb[106].mxu1  ;;  %v5565_v53 = vld [vmem:[%s7401_s3 + $0x168] sm:$0xff]  }
 0x1d6   : > { %v4781_v37 = vpop.f32.mrb[107].mxu1  ;;  %5071 = vmatprep.subr.bf16.mxu1 %v5565_v53 }
 0x1d7   : > { %v1816_v40 = vadd.f32 %v4670_v28, %v6517_v32  ;;  %v5566_v32 = vld [vmem:[%s7401_s3 + $0x128] sm:$0xff]   ;;  %v4782_v29 = vadd.f32 %v4781_v37, %v4780_v50  ;;  %v6718_v6 = vadd.f32 %v4779_v27, %v1813_v1 }
 0x1d8   : > { %5072 = vmatpush3.bf16.msra.mxu1 %v5566_v32 }
 0x1d9   : > { %v4671_v8 = vpop.f32.mrb[108].mxu0  ;;  %v6721_v15 = vadd.f32 %v4782_v29, %v1816_v40 }
 0x1da   : > { %v4672_v62 = vpop.f32.mrb[109].mxu0 }
 0x1db   : > { %v4673_v26 = vadd.f32 %v4672_v62, %v4671_v8  ;;  %v4674_v7 = vpop.f32.mrb[110].mxu0  ;;  %v4783_v12 = vpop.f32.mrb[108].mxu1 }
 0x1dc   : > { %v4675_v58 = vpop.f32.mrb[111].mxu0  ;;  %v4784_v4 = vpop.f32.mrb[109].mxu1 }
 0x1dd   : > { %v1821_v2 = vadd.f32 %v4673_v26, %v6527_v48  ;;  %v4676_v52 = vadd.f32 %v4675_v58, %v4674_v7  ;;  %v4785_v46 = vadd.f32 %v4784_v4, %v4783_v12  ;;  %v4786_v34 = vpop.f32.mrb[110].mxu1 }
 0x1de   : > { %v4787_v13 = vpop.f32.mrb[111].mxu1 }
 0x1df   : > { %v1824_v33 = vadd.f32 %v4676_v52, %v6529_v10  ;;  %v4788_v44 = vadd.f32 %v4787_v13, %v4786_v34  ;;  %v6724_v1 = vadd.f32 %v4785_v46, %v1821_v2 }
 0x1e1   : > { %v4677_v43 = vpop.f32.mrb[112].mxu0  ;;  %v6727_v28 = vadd.f32 %v4788_v44, %v1824_v33 }
 0x1e2   : > { %v4678_v57 = vpop.f32.mrb[113].mxu0 }
 0x1e3   : > { %v4679_v25 = vadd.f32 %v4678_v57, %v4677_v43  ;;  %v4680_v48 = vpop.f32.mrb[114].mxu0  ;;  %v4789_v40 = vpop.f32.mrb[112].mxu1 }
 0x1e4   : > { %v4681_v31 = vpop.f32.mrb[115].mxu0  ;;  %v4790_v22 = vpop.f32.mrb[113].mxu1 }
 0x1e5   : > { %v1829_v24 = vadd.f32 %v4679_v25, %v6533_v42  ;;  %v4682_v60 = vadd.f32 %v4681_v31, %v4680_v48  ;;  %v4791_v26 = vadd.f32 %v4790_v22, %v4789_v40  ;;  %v4792_v7 = vpop.f32.mrb[114].mxu1  ;;  %v5569_v42 = vld [vmem:[%s7401_s3 + $0x170] sm:$0xff]  }
 0x1e6   : > { %v4793_v50 = vpop.f32.mrb[115].mxu1  ;;  %5073 = vmatprep.subr.bf16.mxu1 %v5569_v42 }
 0x1e7   : > { %v1832_v10 = vadd.f32 %v4682_v60, %v6535_v51  ;;  %v5570_v51 = vld [vmem:[%s7401_s3 + $0x130] sm:$0xff]   ;;  %v4794_v37 = vadd.f32 %v4793_v50, %v4792_v7  ;;  %v6736_v2 = vadd.f32 %v4791_v26, %v1829_v24 }
 0x1e8   : > { %5074 = vmatpush3.bf16.msra.mxu1 %v5570_v51 }
 0x1e9   : > { %v4683_v39 = vpop.f32.mrb[116].mxu0  ;;  %v6739_v32 = vadd.f32 %v4794_v37, %v1832_v10 }
 0x1ea   : > { %v4684_v8 = vpop.f32.mrb[117].mxu0 }
 0x1eb   : > { %v4685_v62 = vadd.f32 %v4684_v8, %v4683_v39  ;;  %v4686_v63 = vpop.f32.mrb[118].mxu0  ;;  %v4795_v33 = vpop.f32.mrb[116].mxu1 }
 0x1ec   : > { %v4687_v27 = vpop.f32.mrb[119].mxu0  ;;  %v4796_v12 = vpop.f32.mrb[117].mxu1 }
 0x1ed   : > { %v1837_v58 = vadd.f32 %v4685_v62, %v6545_v45  ;;  %v4688_v53 = vadd.f32 %v4687_v27, %v4686_v63  ;;  %v4797_v4 = vadd.f32 %v4796_v12, %v4795_v33  ;;  %v4798_v25 = vpop.f32.mrb[118].mxu1 }
 0x1ee   : > { %v4799_v46 = vpop.f32.mrb[119].mxu1 }
 0x1ef   : > { %v1840_v52 = vadd.f32 %v4688_v53, %v6547_v36  ;;  %v4800_v13 = vadd.f32 %v4799_v46, %v4798_v25  ;;  %v6742_v24 = vadd.f32 %v4797_v4, %v1837_v58 }
 0x1f1   : > { %v4689_v29 = vpop.f32.mrb[120].mxu0  ;;  %v6745_v60 = vadd.f32 %v4800_v13, %v1840_v52 }
 0x1f2   : > { %v4690_v43 = vpop.f32.mrb[121].mxu0 }
 0x1f3   : > { %v4691_v57 = vadd.f32 %v4690_v43, %v4689_v29  ;;  %v4692_v45 = vpop.f32.mrb[122].mxu0  ;;  %v4801_v10 = vpop.f32.mrb[120].mxu1 }
 0x1f4   : > { %v4693_v48 = vpop.f32.mrb[123].mxu0  ;;  %v4802_v40 = vpop.f32.mrb[121].mxu1 }
 0x1f5   : > { %v1845_v34 = vadd.f32 %v4691_v57, %v6560_v41  ;;  %v4694_v31 = vadd.f32 %v4693_v48, %v4692_v45  ;;  %v4803_v62 = vadd.f32 %v4802_v40, %v4801_v10  ;;  %v4804_v63 = vpop.f32.mrb[122].mxu1  ;;  %v5573_v41 = vld [vmem:[%s7401_s3 + $0x178] sm:$0xff]  }
 0x1f6   : > { %v4805_v7 = vpop.f32.mrb[123].mxu1  ;;  %5075 = vmatprep.subr.bf16.mxu1 %v5573_v41 }
 0x1f7   : > { %v1848_v36 = vadd.f32 %v4694_v31, %v6565_v55  ;;  %v5574_v55 = vld [vmem:[%s7401_s3 + $0x138] sm:$0xff]   ;;  %v4806_v50 = vadd.f32 %v4805_v7, %v4804_v63  ;;  %v6754_v58 = vadd.f32 %v4803_v62, %v1845_v34 }
 0x1f8   : > { %5076 = vmatpush3.bf16.msra.mxu1 %v5574_v55 }
 0x1f9   : > { %v4695_v44 = vpop.f32.mrb[124].mxu0  ;;  %v6757_v51 = vadd.f32 %v4806_v50, %v1848_v36 }
 0x1fa   : > { %v4696_v39 = vpop.f32.mrb[125].mxu0 }
 0x1fb   : > { %v4697_v8 = vadd.f32 %v4696_v39, %v4695_v44  ;;  %v4698_v22 = vpop.f32.mrb[126].mxu0  ;;  %v4807_v52 = vpop.f32.mrb[124].mxu1 }
 0x1fc   : > { %v4699_v26 = vpop.f32.mrb[127].mxu0 }
 0x1fd   : > { %v1853_v27 = vadd.f32 %v4697_v8, %v6585_v30  ;;  %v4700_v42 = vadd.f32 %v4699_v26, %v4698_v22  ;;  %v4808_v30 = vpop.f32.mrb[125].mxu1  ;;  %v6773_v26 = vld [vmem:[%s7401_s3 + $0x200] sm:$0xff]  }
 0x1fe   : > { %v4809_v57 = vadd.f32 %v4808_v30, %v4807_v52  ;;  %v4810_v45 = vpop.f32.mrb[126].mxu1  ;;  %5357 = vmatprep.subr.bf16.mxu1 %v6773_v26 }
 0x1ff   : > { %v1856_v53 = vadd.f32 %v4700_v42, %v6591_v18  ;;  %v4811_v46 = vpop.f32.mrb[127].mxu1  ;;  %v2310_v42 = vld [vmem:[#allocation2 + $0xa] sm:$0xff] }
 0x200   : > { %v4812_v31 = vadd.f32 %v4811_v46, %v4810_v45  ;;  %v6763_v36 = vadd.f32 %v4809_v57, %v1853_v27  ;;  %v2309_v27 = vld [vmem:[#allocation2 + $0x2] sm:$0xff] }
 0x201   : > { %v5327_v37 = vpop.f32.mrb[128].mxu0  ;;  %v2535_v50 = vpack.c.bf16 %v2310_v42, %v2309_v27  ;;  %v5563_v57 = vld [vmem:[%s7401_s3 + $0x1c8] sm:$0xff]  }
 0x202   : > { %v2063_v29 = vadd.f32 %v5327_v37, %v6628_v38  ;;  %v2054_v33 = vpop.f32.mrb[129].mxu0  ;;  %v6765_v44 = vadd.f32 %v4812_v31, %v1856_v53 }
 0x203   : > { %v2055_v43 = vadd.f32 %v2054_v33, %v6603_v17  ;;  %v5328_v12 = vpop.f32.mrb[130].mxu0 }
 0x204   : > { %v2183_v4 = vmax.f32 %v2063_v29, 0.0  ;;  %v2066_v25 = vadd.f32 %v5328_v12, %v6634_v19  ;;  %v2057_v48 = vpop.f32.mrb[131].mxu0 }
 0x205   : > { %v2181_v18 = vmax.f32 %v2055_v43, 0.0  ;;  %v2058_v34 = vadd.f32 %v2057_v48, %v6610_v23 }
 0x206   : > { %2215 = vst [vmem:[#allocation2 + $0x31] sm:$0xff] %v2183_v4  ;;  %v2184_v13 = vmax.f32 %v2066_v25, 0.0 }
 0x207   : > { %2213 = vst [vmem:[#allocation2 + $0x19] sm:$0xff] %v2181_v18  ;;  %v2182_v38 = vmax.f32 %v2058_v34, 0.0 }
 0x208   : > { %2216 = vst [vmem:[#allocation2 + $0x39] sm:$0xff] %v2184_v13  ;;  %v2552_v17 = vpack.c.bf16 %v2184_v13, %v2183_v4 }
 0x209   : > { %2214 = vst [vmem:[#allocation2 + $0x21] sm:$0xff] %v2182_v38  ;;  %v5331_v10 = vpop.f32.mrb[132].mxu0  ;;  %v2543_v39 = vpack.c.bf16 %v2182_v38, %v2181_v18 }
 0x20a   : > { %v2079_v19 = vadd.f32 %v5331_v10, %v6649_v0  ;;  %v2070_v40 = vpop.f32.mrb[133].mxu0 }
 0x20b   : > { %v2071_v8 = vadd.f32 %v2070_v40, %v6637_v16  ;;  %v5332_v23 = vpop.f32.mrb[134].mxu0  ;;  %3300 = vmatprep.mubr.bf16.mxu1 %v2543_v39  ;;  %v5568_v40 = vld [vmem:[%s7401_s3 + $0x190] sm:$0xff]  }
 0x20c   : > { %v2187_v22 = vmax.f32 %v2079_v19, 0.0  ;;  %v2082_v62 = vadd.f32 %v5332_v23, %v6652_v35  ;;  %v2073_v63 = vpop.f32.mrb[135].mxu0 }
 0x20d   : > { %v2185_v41 = vmax.f32 %v2071_v8, 0.0  ;;  %v2074_v7 = vadd.f32 %v2073_v63, %v6640_v59  ;;  %v5560_v59 = vld [vmem:[%s7401_s3 + $0x180] sm:$0xff]   ;;  %v2343_v12 = vld [vmem:[#allocation2 + $0x30] sm:$0xff]  ;;  %v5571_v63 = vld [vmem:[%s7401_s3 + $0x1d8] sm:$0xff]  }
 0x20e   : > { %2219 = vst [vmem:[#allocation2 + $0x61] sm:$0xff] %v2187_v22  ;;  %v2188_v0 = vmax.f32 %v2082_v62, 0.0  ;;  %v2341_v55 = vld [vmem:[#allocation2 + $0x18] sm:$0xff] }
 0x20f   : > { %2217 = vst [vmem:[#allocation2 + $0x49] sm:$0xff] %v2185_v41  ;;  %v2186_v16 = vmax.f32 %v2074_v7, 0.0  ;;  %v2344_v53 = vld [vmem:[#allocation2 + $0x38] sm:$0xff] }
 0x210   : > { %2220 = vst [vmem:[#allocation2 + $0x69] sm:$0xff] %v2188_v0  ;;  %v2342_v35 = vld [vmem:[#allocation2 + $0x20] sm:$0xff]  ;;  %v6777_v37 = vpack.c.bf16 %v2188_v0, %v2187_v22  ;;  %v6787_v25 = vpack.c.bf16 %v2344_v53, %v2343_v12  ;;  %v2313_v53 = vld [vmem:[#allocation2 + $0x32] sm:$0xff] }
 0x211   : > { %2218 = vst [vmem:[#allocation2 + $0x51] sm:$0xff] %v2186_v16  ;;  %v5335_v52 = vpop.f32.mrb[136].mxu0  ;;  %v2536_v29 = vpack.c.bf16 %v2342_v35, %v2341_v55  ;;  %v2561_v33 = vpack.c.bf16 %v2186_v16, %v2185_v41  ;;  %v2311_v38 = vld [vmem:[#allocation2 + $0x1a] sm:$0xff] }
 0x212   : > { %v2095_v30 = vadd.f32 %v5335_v52, %v6667_v61  ;;  %v2086_v43 = vpop.f32.mrb[137].mxu0  ;;  %v2314_v52 = vld [vmem:[#allocation2 + $0x3a] sm:$0xff] }
 0x213   : > { %v2087_v45 = vadd.f32 %v2086_v43, %v6655_v54  ;;  %v5336_v4 = vpop.f32.mrb[138].mxu0  ;;  %3453 = vmatprep.mubr.bf16.mxu0 %v2536_v29  ;;  %3301 = vmatmul.mubr.bf16.gmra.mrb[132].mxu1 %v2536_v29  ;;  %v5564_v54 = vld [vmem:[%s7401_s3 + $0x188] sm:$0xff]  }
 0x214   : > { %v2191_v48 = vmax.f32 %v2095_v30, 0.0  ;;  %v2098_v46 = vadd.f32 %v5336_v4, %v6670_v9  ;;  %v2089_v18 = vpop.f32.mrb[139].mxu0  ;;  %3454 = vmatmul.mubr.bf16.vlgmr.msra.gmra.mrb[160].mxu0 %v2535_v50  ;;  %3308 = vmatprep.mubr.bf16.mxu1 %v2552_v17  ;;  %v5567_v9 = vld [vmem:[%s7401_s3 + $0x1d0] sm:$0xff]   ;;  %v2312_v17 = vld [vmem:[#allocation2 + $0x22] sm:$0xff] }
 0x215   : > { %v2189_v61 = vmax.f32 %v2087_v45, 0.0  ;;  %v2090_v34 = vadd.f32 %v2089_v18, %v6658_v11  ;;  %3461 = vmatprep.mubr.bf16.mxu0 %v6787_v25  ;;  %5174 = vmatpush3.bf16.msra.mxu0 %v5560_v59  ;;  %v6806_v22 = vpack.c.bf16 %v2312_v17, %v2311_v38  ;;  %v5576_v30 = vld [vmem:[%s7401_s3 + $0x1a0] sm:$0xff]   ;;  %v5577_v4 = vld [vmem:[%s7401_s3 + $0x1e8] sm:$0xff]  }
 0x216   : > { %2223 = vst [vmem:[#allocation2 + $0x91] sm:$0xff] %v2191_v48  ;;  %v2192_v31 = vmax.f32 %v2098_v46, 0.0  ;;  %5175 = vmatprep.subr.bf16.mxu0 %v5563_v57  ;;  %v2345_v62 = vld [vmem:[#allocation2 + $0x48] sm:$0xff]  ;;  %v6833_v57 = vpack.c.bf16 %v2314_v52, %v2313_v53  ;;  %v2347_v45 = vld [vmem:[#allocation2 + $0x60] sm:$0xff] }
 0x217   : > { %2221 = vst [vmem:[#allocation2 + $0x79] sm:$0xff] %v2189_v61  ;;  %v2190_v13 = vmax.f32 %v2090_v34, 0.0 }
 0x218   : > { %2224 = vst [vmem:[#allocation2 + $0x99] sm:$0xff] %v2192_v31  ;;  %v2346_v11 = vld [vmem:[#allocation2 + $0x50] sm:$0xff]  ;;  %v6798_v10 = vpack.c.bf16 %v2192_v31, %v2191_v48 }
 0x219   : > { %2222 = vst [vmem:[#allocation2 + $0x81] sm:$0xff] %v2190_v13  ;;  %v5339_v39 = vpop.f32.mrb[140].mxu0  ;;  %v6800_v19 = vpack.c.bf16 %v2190_v13, %v2189_v61  ;;  %5176 = vmatpush3.bf16.msra.mxu0 %v5564_v54  ;;  %v6813_v27 = vpack.c.bf16 %v2346_v11, %v2345_v62  ;;  %v2316_v38 = vld [vmem:[#allocation2 + $0x52] sm:$0xff] }
 0x21a   : > { %v2111_v8 = vadd.f32 %v5339_v39, %v6688_v14  ;;  %v2102_v23 = vpop.f32.mrb[141].mxu0  ;;  %5177 = vmatprep.subr.bf16.mxu0 %v5567_v9 }
 0x21b   : > { %v2103_v41 = vadd.f32 %v2102_v23, %v6673_v5  ;;  %v5340_v7 = vpop.f32.mrb[142].mxu0  ;;  %3309 = vmatmul.mubr.bf16.gmra.mrb[136].mxu1 %v6787_v25  ;;  %v5572_v5 = vld [vmem:[%s7401_s3 + $0x198] sm:$0xff]  }
 0x21c   : > { %v2195_v42 = vmax.f32 %v2111_v8, 0.0  ;;  %v2114_v0 = vadd.f32 %v5340_v7, %v6691_v56  ;;  %v2105_v14 = vpop.f32.mrb[143].mxu0  ;;  %3462 = vmatmul.mubr.bf16.gmra.mrb[164].mxu0 %v6806_v22  ;;  %3316 = vmatprep.mubr.bf16.mxu1 %v2561_v33  ;;  %v5575_v56 = vld [vmem:[%s7401_s3 + $0x1e0] sm:$0xff]  }
 0x21d   : > { %v2193_v16 = vmax.f32 %v2103_v41, 0.0  ;;  %v2106_v55 = vadd.f32 %v2105_v14, %v6676_v20  ;;  %3469 = vmatprep.mubr.bf16.mxu0 %v6813_v27  ;;  %5178 = vmatpush3.bf16.msra.mxu0 %v5568_v40  ;;  %v2348_v20 = vld [vmem:[#allocation2 + $0x68] sm:$0xff]  ;;  %v5581_v40 = vld [vmem:[%s7401_s3 + $0x1b0] sm:$0xff]   ;;  %v5582_v41 = vld [vmem:[%s7401_s3 + $0x1f8] sm:$0xff]  }
 0x21e   : > { %2227 = vst [vmem:[#allocation2 + $0xc1] sm:$0xff] %v2195_v42  ;;  %v2196_v35 = vmax.f32 %v2114_v0, 0.0  ;;  %5179 = vmatprep.subr.bf16.mxu0 %v5571_v63  ;;  %v6840_v18 = vpack.c.bf16 %v2348_v20, %v2347_v45  ;;  %v2349_v63 = vld [vmem:[#allocation2 + $0x78] sm:$0xff] }
 0x21f   : > { %2225 = vst [vmem:[#allocation2 + $0xa9] sm:$0xff] %v2193_v16  ;;  %v2194_v50 = vmax.f32 %v2106_v55, 0.0  ;;  %v2352_v53 = vld [vmem:[#allocation2 + $0x98] sm:$0xff] }
 0x220   : > { %2228 = vst [vmem:[#allocation2 + $0xc9] sm:$0xff] %v2196_v35  ;;  %v6825_v29 = vpack.c.bf16 %v2196_v35, %v2195_v42 }
 0x221   : > { %2226 = vst [vmem:[#allocation2 + $0xb1] sm:$0xff] %v2194_v50  ;;  %v5343_v33 = vpop.f32.mrb[144].mxu0  ;;  %v6827_v59 = vpack.c.bf16 %v2194_v50, %v2193_v16  ;;  %5180 = vmatpush3.bf16.msra.mxu0 %v5572_v5  ;;  %v2318_v50 = vld [vmem:[#allocation2 + $0x6a] sm:$0xff] }
 0x222   : > { %v2127_v43 = vadd.f32 %v5343_v33, %v6706_v47  ;;  %v2118_v12 = vpop.f32.mrb[145].mxu0  ;;  %5181 = vmatprep.subr.bf16.mxu0 %v5575_v56  ;;  %v2317_v56 = vld [vmem:[#allocation2 + $0x62] sm:$0xff] }
 0x223   : > { %v2119_v48 = vadd.f32 %v2118_v12, %v6700_v49  ;;  %v5344_v46 = vpop.f32.mrb[146].mxu0  ;;  %3317 = vmatmul.mubr.bf16.gmra.mrb[140].mxu1 %v6813_v27  ;;  %v5578_v49 = vld [vmem:[%s7401_s3 + $0x1a8] sm:$0xff]  }
 0x224   : > { %v2199_v61 = vmax.f32 %v2127_v43, 0.0  ;;  %v2130_v34 = vadd.f32 %v5344_v46, %v6709_v21  ;;  %v2121_v47 = vpop.f32.mrb[147].mxu0  ;;  %3470 = vmatmul.mubr.bf16.gmra.mrb[168].mxu0 %v6833_v57  ;;  %3324 = vmatprep.mubr.bf16.mxu1 %v6777_v37  ;;  %v5579_v21 = vld [vmem:[%s7401_s3 + $0x1f0] sm:$0xff]  }
 0x225   : > { %v2197_v54 = vmax.f32 %v2119_v48, 0.0  ;;  %v2122_v31 = vadd.f32 %v2121_v47, %v6703_v3  ;;  %3477 = vmatprep.mubr.bf16.mxu0 %v6840_v18  ;;  %5182 = vmatpush3.bf16.msra.mxu0 %v5576_v30  ;;  %v2315_v37 = vld [vmem:[#allocation2 + $0x4a] sm:$0xff]  ;;  %v2350_v3 = vld [vmem:[#allocation2 + $0x80] sm:$0xff]  ;;  %v6883_v30 = vpack.c.bf16 %v2318_v50, %v2317_v56 }
 0x226   : > { %2231 = vst [vmem:[#allocation2 + $0xf1] sm:$0xff] %v2199_v61  ;;  %v2200_v9 = vmax.f32 %v2130_v34, 0.0  ;;  %5183 = vmatprep.subr.bf16.mxu0 %v5577_v4  ;;  %v6861_v62 = vpack.c.bf16 %v2316_v38, %v2315_v37  ;;  %v6868_v0 = vpack.c.bf16 %v2350_v3, %v2349_v63  ;;  %v2351_v43 = vld [vmem:[#allocation2 + $0x90] sm:$0xff]  ;;  %v2353_v37 = vld [vmem:[#allocation2 + $0xa8] sm:$0xff] }
 0x227   : > { %2229 = vst [vmem:[#allocation2 + $0xd9] sm:$0xff] %v2197_v54  ;;  %v2198_v13 = vmax.f32 %v2122_v31, 0.0  ;;  %v6887_v4 = vpack.c.bf16 %v2352_v53, %v2351_v43  ;;  %v2320_v31 = vld [vmem:[#allocation2 + $0x82] sm:$0xff] }
 0x228   : > { %2232 = vst [vmem:[#allocation2 + $0xf9] sm:$0xff] %v2200_v9  ;;  %v6853_v17 = vpack.c.bf16 %v2200_v9, %v2199_v61  ;;  %v2325_v56 = vld [vmem:[#allocation2 + $0xc2] sm:$0xff] }
 0x229   : > { %2230 = vst [vmem:[#allocation2 + $0xe1] sm:$0xff] %v2198_v13  ;;  %v5347_v11 = vpop.f32.mrb[148].mxu0  ;;  %v6855_v39 = vpack.c.bf16 %v2198_v13, %v2197_v54  ;;  %5184 = vmatpush3.bf16.msra.mxu0 %v5578_v49  ;;  %v2319_v54 = vld [vmem:[#allocation2 + $0x7a] sm:$0xff]  ;;  %v2354_v49 = vld [vmem:[#allocation2 + $0xb0] sm:$0xff] }
 0x22a   : > { %v2143_v8 = vadd.f32 %v5347_v11, %v6724_v1  ;;  %v2134_v23 = vpop.f32.mrb[149].mxu0  ;;  %5185 = vmatprep.subr.bf16.mxu0 %v5579_v21  ;;  %v6903_v11 = vpack.c.bf16 %v2354_v49, %v2353_v37 }
 0x22b   : > { %v2135_v7 = vadd.f32 %v2134_v23, %v6718_v6  ;;  %v5348_v42 = vpop.f32.mrb[150].mxu0  ;;  %3325 = vmatmul.mubr.bf16.gmra.mrb[144].mxu1 %v6840_v18  ;;  %v5583_v6 = vld [vmem:[%s7401_s3 + $0x1b8] sm:$0xff]  }
 0x22c   : > { %v2203_v14 = vmax.f32 %v2143_v8, 0.0  ;;  %v2146_v16 = vadd.f32 %v5348_v42, %v6727_v28  ;;  %v2137_v1 = vpop.f32.mrb[151].mxu0  ;;  %3478 = vmatmul.mubr.bf16.gmra.mrb[172].mxu0 %v6861_v62  ;;  %3332 = vmatprep.mubr.bf16.mxu1 %v6800_v19  ;;  %v2322_v42 = vld [vmem:[#allocation2 + $0x9a] sm:$0xff] }
 0x22d   : > { %v2201_v55 = vmax.f32 %v2135_v7, 0.0  ;;  %v2138_v5 = vadd.f32 %v2137_v1, %v6721_v15  ;;  %3485 = vmatprep.mubr.bf16.mxu0 %v6868_v0  ;;  %5186 = vmatpush3.bf16.msra.mxu0 %v5581_v40  ;;  %v2321_v7 = vld [vmem:[#allocation2 + $0x92] sm:$0xff]  ;;  %v2355_v1 = vld [vmem:[#allocation2 + $0xc0] sm:$0xff] }
 0x22e   : > { %2235 = vst [vmem:[#allocation2 + $0x121] sm:$0xff] %v2203_v14  ;;  %v2204_v35 = vmax.f32 %v2146_v16, 0.0  ;;  %5187 = vmatprep.subr.bf16.mxu0 %v5582_v41  ;;  %v6912_v16 = vpack.c.bf16 %v2322_v42, %v2321_v7 }
 0x22f   : > { %2233 = vst [vmem:[#allocation2 + $0x109] sm:$0xff] %v2201_v55  ;;  %v2202_v28 = vmax.f32 %v2138_v5, 0.0  ;;  %v2360_v50 = vld [vmem:[#allocation2 + $0xf8] sm:$0xff] }
 0x230   : > { %2236 = vst [vmem:[#allocation2 + $0x129] sm:$0xff] %v2204_v35  ;;  %v6878_v19 = vpack.c.bf16 %v2204_v35, %v2203_v14  ;;  %v2356_v14 = vld [vmem:[#allocation2 + $0xc8] sm:$0xff]  ;;  %v2358_v5 = vld [vmem:[#allocation2 + $0xe0] sm:$0xff]  ;;  %v2357_v35 = vld [vmem:[#allocation2 + $0xd8] sm:$0xff] }
 0x231   : > { %2234 = vst [vmem:[#allocation2 + $0x111] sm:$0xff] %v2202_v28  ;;  %v5351_v15 = vpop.f32.mrb[152].mxu0  ;;  %v6880_v52 = vpack.c.bf16 %v2202_v28, %v2201_v55  ;;  %5188 = vmatpush3.bf16.msra.mxu0 %v5583_v6  ;;  %v2324_v55 = vld [vmem:[#allocation2 + $0xb2] sm:$0xff]  ;;  %v6923_v28 = vpack.c.bf16 %v2358_v5, %v2357_v35 }
 0x232   : > { %v2159_v20 = vadd.f32 %v5351_v15, %v6742_v24  ;;  %v2150_v33 = vpop.f32.mrb[153].mxu0  ;;  %v2359_v15 = vld [vmem:[#allocation2 + $0xf0] sm:$0xff] }
 0x233   : > { %v2151_v12 = vadd.f32 %v2150_v33, %v6736_v2  ;;  %v5352_v45 = vpop.f32.mrb[154].mxu0  ;;  %3333 = vmatmul.mubr.bf16.gmra.mrb[148].mxu1 %v6868_v0  ;;  %v2327_v33 = vld [vmem:[#allocation2 + $0xda] sm:$0xff] }
 0x234   : > { %v2207_v48 = vmax.f32 %v2159_v20, 0.0  ;;  %v2162_v46 = vadd.f32 %v5352_v45, %v6745_v60  ;;  %v2153_v61 = vpop.f32.mrb[155].mxu0  ;;  %3486 = vmatmul.mubr.bf16.gmra.mrb[176].mxu0 %v6883_v30  ;;  %3340 = vmatprep.mubr.bf16.mxu1 %v6798_v10  ;;  %v6931_v20 = vpack.c.bf16 %v2360_v50, %v2359_v15  ;;  %v2373_v15 = vld [vmem:[#allocation2 + $0x19] sm:$0xff] }
 0x235   : > { %v2205_v24 = vmax.f32 %v2151_v12, 0.0  ;;  %v2154_v34 = vadd.f32 %v2153_v61, %v6739_v32  ;;  %3493 = vmatprep.mubr.bf16.mxu0 %v6887_v4  ;;  %v6899_v32 = vpack.c.bf16 %v2320_v31, %v2319_v54 }
 0x236   : > { %2239 = vst [vmem:[#allocation2 + $0x151] sm:$0xff] %v2207_v48  ;;  %v2208_v2 = vmax.f32 %v2162_v46, 0.0  ;;  %v2361_v45 = vld [vmem:[#allocation2 + $0x108] sm:$0xff]  ;;  %v2329_v46 = vld [vmem:[#allocation2 + $0xf2] sm:$0xff] }
 0x237   : > { %2237 = vst [vmem:[#allocation2 + $0x139] sm:$0xff] %v2205_v24  ;;  %v2206_v47 = vmax.f32 %v2154_v34, 0.0  ;;  %v2364_v61 = vld [vmem:[#allocation2 + $0x128] sm:$0xff]  ;;  %v2363_v34 = vld [vmem:[#allocation2 + $0x120] sm:$0xff] }
 0x238   : > { %2240 = vst [vmem:[#allocation2 + $0x159] sm:$0xff] %v2208_v2  ;;  %v6894_v9 = vpack.c.bf16 %v2208_v2, %v2207_v48  ;;  %v2362_v43 = vld [vmem:[#allocation2 + $0x110] sm:$0xff] }
 0x239   : > { %2238 = vst [vmem:[#allocation2 + $0x141] sm:$0xff] %v2206_v47  ;;  %v5355_v60 = vpop.f32.mrb[156].mxu0  ;;  %v6896_v21 = vpack.c.bf16 %v2206_v47, %v2205_v24  ;;  %v6939_v48 = vpack.c.bf16 %v2362_v43, %v2361_v45  ;;  %v6947_v47 = vpack.c.bf16 %v2364_v61, %v2363_v34  ;;  %v2469_v45 = vld [vmem:[#allocation2 + $0x31] sm:$0xff]  ;;  %v2471_v34 = vld [vmem:[#allocation2 + $0x49] sm:$0xff] }
 0x23a   : > { %v2175_v10 = vadd.f32 %v5355_v60, %v6763_v36  ;;  %v2166_v13 = vpop.f32.mrb[157].mxu0  ;;  %v2472_v61 = vld [vmem:[#allocation2 + $0x51] sm:$0xff] }
 0x23b   : > { %v2167_v38 = vadd.f32 %v2166_v13, %v6754_v58  ;;  %v5356_v3 = vpop.f32.mrb[158].mxu0  ;;  %3341 = vmatmul.mubr.bf16.gmra.mrb[152].mxu1 %v6887_v4  ;;  %v2332_v13 = vld [vmem:[#allocation2 + $0x112] sm:$0xff] }
 0x23c   : > { %v2211_v40 = vmax.f32 %v2175_v10, 0.0  ;;  %v2178_v8 = vadd.f32 %v5356_v3, %v6765_v44  ;;  %v2169_v23 = vpop.f32.mrb[159].mxu0  ;;  %3494 = vmatmul.mubr.bf16.gmra.mrb[180].mxu0 %v6899_v32  ;;  %3348 = vmatprep.mubr.bf16.mxu1 %v6827_v59  ;;  %v6915_v59 = vpack.c.bf16 %v2356_v14, %v2355_v1  ;;  %v2331_v10 = vld [vmem:[#allocation2 + $0x10a] sm:$0xff] }
 0x23d   : > { %v2209_v36 = vmax.f32 %v2167_v38, 0.0  ;;  %v2170_v63 = vadd.f32 %v2169_v23, %v6757_v51  ;;  %3501 = vmatprep.mubr.bf16.mxu0 %v6903_v11  ;;  %v2323_v51 = vld [vmem:[#allocation2 + $0xaa] sm:$0xff]  ;;  %v6956_v38 = vpack.c.bf16 %v2332_v13, %v2331_v10  ;;  %v2475_v13 = vld [vmem:[#allocation2 + $0x79] sm:$0xff] }
 0x23e   : > { %2243 = vst [vmem:[#allocation2 + $0x181] sm:$0xff] %v2211_v40  ;;  %v2212_v58 = vmax.f32 %v2178_v8, 0.0  ;;  %v6920_v6 = vpack.c.bf16 %v2324_v55, %v2323_v51  ;;  %v2365_v3 = vld [vmem:[#allocation2 + $0x138] sm:$0xff]  ;;  %v2334_v8 = vld [vmem:[#allocation2 + $0x12a] sm:$0xff] }
 0x23f   : > { %2241 = vst [vmem:[#allocation2 + $0x169] sm:$0xff] %v2209_v36  ;;  %v2210_v41 = vmax.f32 %v2170_v63, 0.0  ;;  %v2368_v23 = vld [vmem:[#allocation2 + $0x158] sm:$0xff]  ;;  %v2367_v63 = vld [vmem:[#allocation2 + $0x150] sm:$0xff] }
 0x240   : > { %2244 = vst [vmem:[#allocation2 + $0x189] sm:$0xff] %v2212_v58  ;;  %v2366_v37 = vld [vmem:[#allocation2 + $0x140] sm:$0xff]  ;;  %v6967_v58 = vpack.c.bf16 %v2368_v23, %v2367_v63  ;;  %v2337_v51 = vld [vmem:[#allocation2 + $0x152] sm:$0xff]  ;;  %v2479_v23 = vld [vmem:[#allocation2 + $0xa9] sm:$0xff] }
 0x241   : > { %2242 = vst [vmem:[#allocation2 + $0x171] sm:$0xff] %v2210_v41  ;;  %v6910_v44 = vpack.c.bf16 %v2210_v41, %v2209_v36  ;;  %v6959_v40 = vpack.c.bf16 %v2366_v37, %v2365_v3  ;;  %v2335_v41 = vld [vmem:[#allocation2 + $0x13a] sm:$0xff] }
 0x242   : > { %v5590_v37 = vld [vmem:[%s7401_s3 + $0x238] sm:$0xff]  }
 0x243   : > { %3349 = vmatmul.mubr.bf16.gmra.mrb[156].mxu1 %v6903_v11 }
 0x244   : > { %3502 = vmatmul.mubr.bf16.gmra.mrb[184].mxu0 %v6912_v16  ;;  %3356 = vmatprep.mubr.bf16.mxu1 %v6825_v29  ;;  %v2326_v29 = vld [vmem:[#allocation2 + $0xca] sm:$0xff] }
 0x245   : > { %3509 = vmatprep.mubr.bf16.mxu0 %v6915_v59  ;;  %v6928_v53 = vpack.c.bf16 %v2326_v29, %v2325_v56  ;;  %v2371_v35 = vld [vmem:[#allocation2 + $0x180] sm:$0xff] }
 0x246   : > { %v2369_v14 = vld [vmem:[#allocation2 + $0x168] sm:$0xff] }
 0x247   : > { %v2372_v55 = vld [vmem:[#allocation2 + $0x188] sm:$0xff] }
 0x248   : > { %v2370_v7 = vld [vmem:[#allocation2 + $0x170] sm:$0xff]  ;;  %v6983_v56 = vpack.c.bf16 %v2372_v55, %v2371_v35  ;;  %v2374_v29 = vld [vmem:[#allocation2 + $0x21] sm:$0xff] }
 0x249   : > { %v6975_v1 = vpack.c.bf16 %v2370_v7, %v2369_v14  ;;  %v2340_v50 = vld [vmem:[#allocation2 + $0x172] sm:$0xff] }
 0x24b   : > { %3357 = vmatmul.mubr.bf16.gmra.mrb[160].mxu1 %v6915_v59 }
 0x24c   : > { %3510 = vmatmul.mubr.bf16.gmra.mrb[188].mxu0 %v6920_v6  ;;  %3364 = vmatprep.mubr.bf16.mxu1 %v6855_v39  ;;  %v2328_v39 = vld [vmem:[#allocation2 + $0xe2] sm:$0xff] }
 0x24d   : > { %3517 = vmatprep.mubr.bf16.mxu0 %v6923_v28  ;;  %v6936_v12 = vpack.c.bf16 %v2328_v39, %v2327_v33  ;;  %v2470_v33 = vld [vmem:[#allocation2 + $0x39] sm:$0xff]  ;;  %v2537_v39 = vpack.c.bf16 %v2374_v29, %v2373_v15 }
 0x253   : > { %3365 = vmatmul.mubr.bf16.gmra.mrb[164].mxu1 %v6923_v28  ;;  %v4853_v2 = vpop.f32.mrb[128].mxu1 }
 0x254   : > { %3518 = vmatmul.mubr.bf16.gmra.mrb[192].mxu0 %v6928_v53  ;;  %3372 = vmatprep.mubr.bf16.mxu1 %v6853_v17  ;;  %v2330_v17 = vld [vmem:[#allocation2 + $0xfa] sm:$0xff]  ;;  %v4854_v54 = vpop.f32.mrb[129].mxu1 }
 0x255   : > { %3525 = vmatprep.mubr.bf16.mxu0 %v6931_v20  ;;  %v6944_v24 = vpack.c.bf16 %v2330_v17, %v2329_v46  ;;  %v6951_v31 = vadd.f32 %v4854_v54, %v4853_v2  ;;  %v5584_v46 = vld [vmem:[%s7401_s3 + $0x208] sm:$0xff]   ;;  %v2540_v17 = vpack.c.bf16 %v2470_v33, %v2469_v45  ;;  %v5586_v2 = vld [vmem:[%s7401_s3 + $0x218] sm:$0xff]   ;;  %v2549_v54 = vpack.c.bf16 %v2472_v61, %v2471_v34 }
 0x256   : > { %v2493_v45 = vld [vmem:[#allocation2 + $0x151] sm:$0xff] }
 0x25b   : > { %3373 = vmatmul.mubr.bf16.gmra.mrb[168].mxu1 %v6931_v20 }
 0x25c   : > { %3526 = vmatmul.mubr.bf16.gmra.mrb[196].mxu0 %v6936_v12  ;;  %3380 = vmatprep.mubr.bf16.mxu1 %v6880_v52  ;;  %v4856_v52 = vpop.f32.mrb[130].mxu1 }
 0x25d   : > { %3533 = vmatprep.mubr.bf16.mxu0 %v6939_v48  ;;  %v4857_v49 = vpop.f32.mrb[131].mxu1 }
 0x25e   : > { %v6954_v60 = vadd.f32 %v4857_v49, %v4856_v52  ;;  %v2473_v52 = vld [vmem:[#allocation2 + $0x61] sm:$0xff] }
 0x25f   : > { %v5588_v49 = vld [vmem:[%s7401_s3 + $0x228] sm:$0xff]  }
 0x263   : > { %3381 = vmatmul.mubr.bf16.gmra.mrb[172].mxu1 %v6939_v48 }
 0x264   : > { %3534 = vmatmul.mubr.bf16.gmra.mrb[200].mxu0 %v6944_v24  ;;  %3388 = vmatprep.mubr.bf16.mxu1 %v6878_v19  ;;  %v2333_v19 = vld [vmem:[#allocation2 + $0x122] sm:$0xff] }
 0x265   : > { %3541 = vmatprep.mubr.bf16.mxu0 %v6947_v47  ;;  %v6964_v36 = vpack.c.bf16 %v2334_v8, %v2333_v19  ;;  %v2480_v8 = vld [vmem:[#allocation2 + $0xb1] sm:$0xff] }
 0x266   : > { %v2585_v63 = vpack.c.bf16 %v2480_v8, %v2479_v23 }
 0x26b   : > { %3389 = vmatmul.mubr.bf16.gmra.mrb[176].mxu1 %v6947_v47 }
 0x26c   : > { %3542 = vmatmul.mubr.bf16.gmra.mrb[204].mxu0 %v6956_v38  ;;  %3396 = vmatprep.mubr.bf16.mxu1 %v6896_v21  ;;  %v2336_v21 = vld [vmem:[#allocation2 + $0x142] sm:$0xff] }
 0x26d   : > { %3549 = vmatprep.mubr.bf16.mxu0 %v6959_v40  ;;  %v6972_v42 = vpack.c.bf16 %v2336_v21, %v2335_v41 }
 0x273   : > { %3397 = vmatmul.mubr.bf16.gmra.mrb[180].mxu1 %v6959_v40 }
 0x274   : > { %3550 = vmatmul.mubr.bf16.gmra.mrb[208].mxu0 %v6964_v36  ;;  %3404 = vmatprep.mubr.bf16.mxu1 %v6894_v9  ;;  %v2338_v9 = vld [vmem:[#allocation2 + $0x15a] sm:$0xff] }
 0x275   : > { %3557 = vmatprep.mubr.bf16.mxu0 %v6967_v58  ;;  %v6980_v5 = vpack.c.bf16 %v2338_v9, %v2337_v51 }
 0x27b   : > { %3405 = vmatmul.mubr.bf16.gmra.mrb[184].mxu1 %v6967_v58 }
 0x27c   : > { %3558 = vmatmul.mubr.bf16.gmra.mrb[212].mxu0 %v6972_v42  ;;  %3412 = vmatprep.mubr.bf16.mxu1 %v6910_v44  ;;  %v2339_v44 = vld [vmem:[#allocation2 + $0x16a] sm:$0xff] }
 0x27d   : > { %3565 = vmatprep.mubr.bf16.mxu0 %v6975_v1  ;;  %v6988_v43 = vpack.c.bf16 %v2340_v50, %v2339_v44  ;;  %v2494_v44 = vld [vmem:[#allocation2 + $0x159] sm:$0xff] }
 0x27e   : > { %v2648_v61 = vpack.c.bf16 %v2494_v44, %v2493_v45 }
 0x283   : > { %3413 = vmatmul.mubr.bf16.gmra.mrb[188].mxu1 %v6975_v1 }
 0x284   : > { %3566 = vmatmul.mubr.bf16.gmra.mrb[216].mxu0 %v6980_v5  ;;  %3614 = vmatprep.mubr.bf16.mxu1 %v6806_v22  ;;  %v5585_v22 = vld [vmem:[%s7401_s3 + $0x210] sm:$0xff]  }
 0x285   : > { %3573 = vmatprep.mubr.bf16.mxu0 %v6983_v56 }
 0x28b   : > { %3615 = vmatmul.mubr.bf16.vlgmr.msra.gmra.mrb[192].mxu1 %v2537_v39 }
 0x28c   : > { %3574 = vmatmul.mubr.bf16.gmra.mrb[220].mxu0 %v6988_v43  ;;  %3622 = vmatprep.mubr.bf16.mxu1 %v6833_v57  ;;  %v2474_v57 = vld [vmem:[#allocation2 + $0x69] sm:$0xff] }
 0x28d   : > { %3775 = vmatprep.mubr.bf16.mxu0 %v2540_v17  ;;  %5358 = vmatpush3.bf16.msra.mxu1 %v6773_v26  ;;  %v5587_v26 = vld [vmem:[%s7401_s3 + $0x220] sm:$0xff]   ;;  %v2558_v10 = vpack.c.bf16 %v2474_v57, %v2473_v52 }
 0x28e   : > { %5359 = vmatprep.subr.bf16.mxu1 %v5584_v46 }
 0x291   : > { %5360 = vmatpush3.bf16.msra.mxu1 %v5584_v46 }
 0x292   : > { %5361 = vmatprep.subr.bf16.mxu1 %v5585_v22 }
 0x293   : > { %3623 = vmatmul.mubr.bf16.gmra.mrb[196].mxu1 %v2540_v17 }
 0x294   : > { %3776 = vmatmul.mubr.bf16.vlgmr.msra.gmra.mrb[224].mxu0 %v6787_v25  ;;  %3630 = vmatprep.mubr.bf16.mxu1 %v6861_v62  ;;  %v5589_v25 = vld [vmem:[%s7401_s3 + $0x230] sm:$0xff]   ;;  %v2476_v62 = vld [vmem:[#allocation2 + $0x81] sm:$0xff] }
 0x295   : > { %3783 = vmatprep.mubr.bf16.mxu0 %v2549_v54  ;;  %5362 = vmatpush3.bf16.msra.mxu1 %v5585_v22  ;;  %v2567_v3 = vpack.c.bf16 %v2476_v62, %v2475_v13 }
 0x296   : > { %5363 = vmatprep.subr.bf16.mxu1 %v5586_v2 }
 0x299   : > { %5364 = vmatpush3.bf16.msra.mxu1 %v5586_v2 }
 0x29a   : > { %5365 = vmatprep.subr.bf16.mxu1 %v5587_v26 }
 0x29b   : > { %3631 = vmatmul.mubr.bf16.gmra.mrb[200].mxu1 %v2549_v54 }
 0x29c   : > { %3784 = vmatmul.mubr.bf16.gmra.mrb[228].mxu0 %v6813_v27  ;;  %3638 = vmatprep.mubr.bf16.mxu1 %v6883_v30  ;;  %v2478_v27 = vld [vmem:[#allocation2 + $0x99] sm:$0xff]  ;;  %v2477_v30 = vld [vmem:[#allocation2 + $0x91] sm:$0xff] }
 0x29d   : > { %3791 = vmatprep.mubr.bf16.mxu0 %v2558_v10  ;;  %5366 = vmatpush3.bf16.msra.mxu1 %v5587_v26  ;;  %v2576_v19 = vpack.c.bf16 %v2478_v27, %v2477_v30 }
 0x29e   : > { %5367 = vmatprep.subr.bf16.mxu1 %v5588_v49 }
 0x2a1   : > { %5368 = vmatpush3.bf16.msra.mxu1 %v5588_v49  ;;  %v2496_v49 = vld [vmem:[#allocation2 + $0x171] sm:$0xff] }
 0x2a2   : > { %5369 = vmatprep.subr.bf16.mxu1 %v5589_v25 }
 0x2a3   : > { %3639 = vmatmul.mubr.bf16.gmra.mrb[204].mxu1 %v2558_v10 }
 0x2a4   : > { %3792 = vmatmul.mubr.bf16.gmra.mrb[232].mxu0 %v6840_v18  ;;  %3646 = vmatprep.mubr.bf16.mxu1 %v6899_v32  ;;  %v2482_v18 = vld [vmem:[#allocation2 + $0xc9] sm:$0xff]  ;;  %v2481_v32 = vld [vmem:[#allocation2 + $0xc1] sm:$0xff] }
 0x2a5   : > { %3799 = vmatprep.mubr.bf16.mxu0 %v2567_v3  ;;  %5370 = vmatpush3.bf16.msra.mxu1 %v5589_v25  ;;  %v2594_v41 = vpack.c.bf16 %v2482_v18, %v2481_v32  ;;  %v2435_v18 = vld [vmem:[#allocation2 + $0x182] sm:$0xff]  ;;  %v2436_v32 = vld [vmem:[#allocation2 + $0x18a] sm:$0xff] }
 0x2a6   : > { %5371 = vmatprep.subr.bf16.mxu1 %v5590_v37 }
 0x2a9   : > { %5372 = vmatpush3.bf16.msra.mxu1 %v5590_v37 }
 0x2ab   : > { %3647 = vmatmul.mubr.bf16.gmra.mrb[208].mxu1 %v2567_v3 }
 0x2ac   : > { %3800 = vmatmul.mubr.bf16.gmra.mrb[236].mxu0 %v6868_v0  ;;  %3654 = vmatprep.mubr.bf16.mxu1 %v6912_v16  ;;  %v2484_v0 = vld [vmem:[#allocation2 + $0xe1] sm:$0xff]  ;;  %v2483_v16 = vld [vmem:[#allocation2 + $0xd9] sm:$0xff] }
 0x2ad   : > { %3807 = vmatprep.mubr.bf16.mxu0 %v2576_v19  ;;  %v2603_v21 = vpack.c.bf16 %v2484_v0, %v2483_v16 }
 0x2b3   : > { %3655 = vmatmul.mubr.bf16.gmra.mrb[212].mxu1 %v2576_v19 }
 0x2b4   : > { %3808 = vmatmul.mubr.bf16.gmra.mrb[240].mxu0 %v6887_v4  ;;  %3662 = vmatprep.mubr.bf16.mxu1 %v6920_v6  ;;  %v2486_v4 = vld [vmem:[#allocation2 + $0xf9] sm:$0xff]  ;;  %v2485_v6 = vld [vmem:[#allocation2 + $0xf1] sm:$0xff] }
 0x2b5   : > { %3815 = vmatprep.mubr.bf16.mxu0 %v2585_v63  ;;  %v2612_v7 = vpack.c.bf16 %v2486_v4, %v2485_v6 }
 0x2bb   : > { %3663 = vmatmul.mubr.bf16.gmra.mrb[216].mxu1 %v2585_v63 }
 0x2bc   : > { %3816 = vmatmul.mubr.bf16.gmra.mrb[244].mxu0 %v6903_v11  ;;  %3670 = vmatprep.mubr.bf16.mxu1 %v6928_v53  ;;  %v2488_v11 = vld [vmem:[#allocation2 + $0x111] sm:$0xff]  ;;  %v2487_v53 = vld [vmem:[#allocation2 + $0x109] sm:$0xff] }
 0x2bd   : > { %3823 = vmatprep.mubr.bf16.mxu0 %v2594_v41  ;;  %v2621_v14 = vpack.c.bf16 %v2488_v11, %v2487_v53 }
 0x2c3   : > { %3671 = vmatmul.mubr.bf16.gmra.mrb[220].mxu1 %v2594_v41 }
 0x2c4   : > { %3824 = vmatmul.mubr.bf16.gmra.mrb[248].mxu0 %v6915_v59  ;;  %3678 = vmatprep.mubr.bf16.mxu1 %v6936_v12  ;;  %v2490_v59 = vld [vmem:[#allocation2 + $0x129] sm:$0xff]  ;;  %v2489_v12 = vld [vmem:[#allocation2 + $0x121] sm:$0xff] }
 0x2c5   : > { %3831 = vmatprep.mubr.bf16.mxu0 %v2603_v21  ;;  %v2630_v51 = vpack.c.bf16 %v2490_v59, %v2489_v12 }
 0x2cb   : > { %3679 = vmatmul.mubr.bf16.gmra.mrb[224].mxu1 %v2603_v21  ;;  %v2498_v21 = vld [vmem:[#allocation2 + $0x189] sm:$0xff] }
 0x2cc   : > { %3832 = vmatmul.mubr.bf16.gmra.mrb[252].mxu0 %v6923_v28  ;;  %3686 = vmatprep.mubr.bf16.mxu1 %v6944_v24  ;;  %v2492_v28 = vld [vmem:[#allocation2 + $0x141] sm:$0xff]  ;;  %v2491_v24 = vld [vmem:[#allocation2 + $0x139] sm:$0xff] }
 0x2cd   : > { %3839 = vmatprep.mubr.bf16.mxu0 %v2612_v7  ;;  %v2639_v9 = vpack.c.bf16 %v2492_v28, %v2491_v24 }
 0x2d3   : > { %3687 = vmatmul.mubr.bf16.gmra.mrb[228].mxu1 %v2612_v7 }
 0x2d4   : > { %3840 = vmatmul.mubr.bf16.gmra.mrb[0].mxu0 %v6931_v20  ;;  %3694 = vmatprep.mubr.bf16.mxu1 %v6956_v38  ;;  %v7039_v20 = vld [vmem:[%s7402_s4] ss:$0 sm:$0xff] }
 0x2d5   : > { %3847 = vmatprep.mubr.bf16.mxu0 %v2621_v14  ;;  %v3295_v50 = vadd.f32 %v6951_v31, %v7039_v20  ;;  %v3298_v46 = vadd.f32 %v6954_v60, %v7039_v20 }
 0x2db   : > { %3695 = vmatmul.mubr.bf16.gmra.mrb[232].mxu1 %v2621_v14  ;;  %v2497_v14 = vld [vmem:[#allocation2 + $0x181] sm:$0xff] }
 0x2dc   : > { %3848 = vmatmul.mubr.bf16.gmra.mrb[4].mxu0 %v6939_v48  ;;  %3702 = vmatprep.mubr.bf16.mxu1 %v6964_v36  ;;  %v2666_v28 = vpack.c.bf16 %v2498_v21, %v2497_v14  ;;  %v2510_v14 = vld [vmem:[#allocation2 + $0x9a] sm:$0xff] }
 0x2dd   : > { %3855 = vmatprep.mubr.bf16.mxu0 %v2630_v51 }
 0x2e3   : > { %3703 = vmatmul.mubr.bf16.gmra.mrb[236].mxu1 %v2630_v51 }
 0x2e4   : > { %3856 = vmatmul.mubr.bf16.gmra.mrb[8].mxu0 %v6947_v47  ;;  %3710 = vmatprep.mubr.bf16.mxu1 %v6972_v42 }
 0x2e5   : > { %3863 = vmatprep.mubr.bf16.mxu0 %v2639_v9 }
 0x2e6   : > { %v4859_v38 = vpop.f32.mrb[132].mxu1 }
 0x2e7   : > { %v4965_v55 = vpop.f32.mrb[160].mxu0  ;;  %v4860_v48 = vpop.f32.mrb[133].mxu1 }
 0x2e8   : > { %v4861_v35 = vadd.f32 %v4860_v48, %v4859_v38  ;;  %v4966_v36 = vpop.f32.mrb[161].mxu0  ;;  %v4862_v29 = vpop.f32.mrb[134].mxu1  ;;  %v2499_v38 = vld [vmem:[#allocation2 + $0x199] sm:$0xff] }
 0x2e9   : > { %v4967_v15 = vadd.f32 %v4966_v36, %v4965_v55  ;;  %v4968_v47 = vpop.f32.mrb[162].mxu0  ;;  %v4863_v33 = vpop.f32.mrb[135].mxu1  ;;  %v2500_v55 = vld [vmem:[#allocation2 + $0x1a1] sm:$0xff]  ;;  %v2501_v36 = vld [vmem:[#allocation2 + $0x32] sm:$0xff] }
 0x2ea   : > { %v4864_v42 = vadd.f32 %v4863_v33, %v4862_v29  ;;  %v4969_v39 = vpop.f32.mrb[163].mxu0  ;;  %v3303_v60 = vadd.f32 %v4861_v35, %v7039_v20  ;;  %v2502_v29 = vld [vmem:[#allocation2 + $0x3a] sm:$0xff] }
 0x2eb   : > { %v7045_v17 = vadd.f32 %v4967_v15, %v3295_v50  ;;  %v4970_v22 = vadd.f32 %v4969_v39, %v4968_v47  ;;  %3711 = vmatmul.mubr.bf16.gmra.mrb[240].mxu1 %v2639_v9  ;;  %v2675_v39 = vpack.c.bf16 %v2500_v55, %v2499_v38 }
 0x2ec   : > { %3864 = vmatmul.mubr.bf16.gmra.mrb[12].mxu0 %v6959_v40  ;;  %3718 = vmatprep.mubr.bf16.mxu1 %v6980_v5  ;;  %v2495_v40 = vld [vmem:[#allocation2 + $0x169] sm:$0xff]  ;;  %v3306_v5 = vadd.f32 %v4864_v42, %v7039_v20 }
 0x2ed   : > { %v7049_v34 = vadd.f32 %v4970_v22, %v3298_v46  ;;  %3871 = vmatprep.mubr.bf16.mxu0 %v2648_v61  ;;  %v2657_v30 = vpack.c.bf16 %v2496_v49, %v2495_v40  ;;  %v2541_v22 = vpack.c.bf16 %v2502_v29, %v2501_v36  ;;  %v5592_v40 = vld [vmem:[#allocation2] sm:$0xff] }
 0x2ee   : > { %v4865_v31 = vpop.f32.mrb[136].mxu1 }
 0x2ef   : > { %v4971_v2 = vpop.f32.mrb[164].mxu0  ;;  %v4866_v54 = vpop.f32.mrb[137].mxu1 }
 0x2f0   : > { %v4867_v26 = vadd.f32 %v4866_v54, %v4865_v31  ;;  %v4972_v57 = vpop.f32.mrb[165].mxu0  ;;  %v4868_v52 = vpop.f32.mrb[138].mxu1 }
 0x2f1   : > { %v4973_v10 = vadd.f32 %v4972_v57, %v4971_v2  ;;  %v4974_v25 = vpop.f32.mrb[166].mxu0  ;;  %v4869_v62 = vpop.f32.mrb[139].mxu1  ;;  %v2503_v57 = vld [vmem:[#allocation2 + $0x4a] sm:$0xff] }
 0x2f2   : > { %v4870_v13 = vadd.f32 %v4869_v62, %v4868_v52  ;;  %v4975_v37 = vpop.f32.mrb[167].mxu0  ;;  %v3311_v4 = vadd.f32 %v4867_v26, %v7039_v20  ;;  %v2504_v52 = vld [vmem:[#allocation2 + $0x52] sm:$0xff] }
 0x2f3   : > { %v7053_v3 = vadd.f32 %v4973_v10, %v3303_v60  ;;  %v4976_v27 = vadd.f32 %v4975_v37, %v4974_v25  ;;  %3719 = vmatmul.mubr.bf16.gmra.mrb[244].mxu1 %v2648_v61  ;;  %v2505_v10 = vld [vmem:[#allocation2 + $0x62] sm:$0xff]  ;;  %v2506_v25 = vld [vmem:[#allocation2 + $0x6a] sm:$0xff] }
 0x2f4   : > { %3872 = vmatmul.mubr.bf16.gmra.mrb[16].mxu0 %v6967_v58  ;;  %3726 = vmatprep.mubr.bf16.mxu1 %v6988_v43  ;;  %v7060_v43 = vpack.c.bf16 %v2436_v32, %v2435_v18  ;;  %v3314_v59 = vadd.f32 %v4870_v13, %v7039_v20  ;;  %v2559_v32 = vpack.c.bf16 %v2506_v25, %v2505_v10 }
 0x2f5   : > { %v7057_v19 = vadd.f32 %v4976_v27, %v3306_v5  ;;  %3879 = vmatprep.mubr.bf16.mxu0 %v2657_v30  ;;  %v2674_v5 = vpack.c.bf16 %v5592_v40, %v5592_v40 }
 0x2f6   : > { %v4871_v8 = vpop.f32.mrb[140].mxu1 }
 0x2f7   : > { %v4977_v23 = vpop.f32.mrb[168].mxu0  ;;  %v4872_v63 = vpop.f32.mrb[141].mxu1 }
 0x2f8   : > { %v4873_v41 = vadd.f32 %v4872_v63, %v4871_v8  ;;  %v4978_v0 = vpop.f32.mrb[169].mxu0  ;;  %v4874_v16 = vpop.f32.mrb[142].mxu1 }
 0x2f9   : > { %v4979_v6 = vadd.f32 %v4978_v0, %v4977_v23  ;;  %v4980_v7 = vpop.f32.mrb[170].mxu0  ;;  %v4875_v11 = vpop.f32.mrb[143].mxu1  ;;  %v2550_v23 = vpack.c.bf16 %v2504_v52, %v2503_v57 }
 0x2fa   : > { %v4876_v58 = vadd.f32 %v4875_v11, %v4874_v16  ;;  %v4981_v53 = vpop.f32.mrb[171].mxu0  ;;  %v3319_v47 = vadd.f32 %v4873_v41, %v7039_v20 }
 0x2fb   : > { %v7063_v12 = vadd.f32 %v4979_v6, %v3311_v4  ;;  %v4982_v51 = vadd.f32 %v4981_v53, %v4980_v7  ;;  %3727 = vmatmul.mubr.bf16.gmra.mrb[248].mxu1 %v2657_v30  ;;  %v2507_v6 = vld [vmem:[#allocation2 + $0x7a] sm:$0xff]  ;;  %v2508_v7 = vld [vmem:[#allocation2 + $0x82] sm:$0xff]  ;;  %v2509_v53 = vld [vmem:[#allocation2 + $0x92] sm:$0xff] }
 0x2fc   : > { %3880 = vmatmul.mubr.bf16.gmra.mrb[20].mxu0 %v6975_v1  ;;  %3734 = vmatprep.mubr.bf16.mxu1 %v7060_v43  ;;  %v3322_v61 = vadd.f32 %v4876_v58, %v7039_v20 }
 0x2fd   : > { %v7067_v24 = vadd.f32 %v4982_v51, %v3314_v59  ;;  %3887 = vmatprep.mubr.bf16.mxu0 %v2666_v28 }
 0x2fe   : > { %v4877_v9 = vpop.f32.mrb[144].mxu1 }
 0x2ff   : > { %v4983_v48 = vpop.f32.mrb[172].mxu0  ;;  %v4878_v35 = vpop.f32.mrb[145].mxu1 }
 0x300   : > { %v4879_v44 = vadd.f32 %v4878_v35, %v4877_v9  ;;  %v4984_v50 = vpop.f32.mrb[173].mxu0  ;;  %v4880_v15 = vpop.f32.mrb[146].mxu1  ;;  %v2568_v35 = vpack.c.bf16 %v2508_v7, %v2507_v6 }
 0x301   : > { %v4985_v33 = vadd.f32 %v4984_v50, %v4983_v48  ;;  %v4986_v42 = vpop.f32.mrb[174].mxu0  ;;  %v4881_v1 = vpop.f32.mrb[147].mxu1 }
 0x302   : > { %v4882_v45 = vadd.f32 %v4881_v1, %v4880_v15  ;;  %v4987_v46 = vpop.f32.mrb[175].mxu0  ;;  %v3327_v27 = vadd.f32 %v4879_v44, %v7039_v20  ;;  %v2577_v44 = vpack.c.bf16 %v2510_v14, %v2509_v53  ;;  %v2511_v1 = vld [vmem:[#allocation2 + $0xaa] sm:$0xff] }
 0x303   : > { %v7071_v31 = vadd.f32 %v4985_v33, %v3319_v47  ;;  %v4988_v2 = vadd.f32 %v4987_v46, %v4986_v42  ;;  %3735 = vmatmul.mubr.bf16.gmra.mrb[252].mxu1 %v2666_v28 }
 0x304   : > { %3888 = vmatmul.mubr.bf16.gmra.mrb[24].mxu0 %v6983_v56  ;;  %5373 = vmatprep.mubr.bf16.mxu1 %v2541_v22  ;;  %v3330_v41 = vadd.f32 %v4882_v45, %v7039_v20  ;;  %v2513_v22 = vld [vmem:[#allocation2 + $0xc2] sm:$0xff] }
 0x305   : > { %v7074_v54 = vadd.f32 %v4988_v2, %v3322_v61  ;;  %3895 = vmatprep.mubr.bf16.mxu0 %v2675_v39  ;;  %v2512_v39 = vld [vmem:[#allocation2 + $0xb2] sm:$0xff]  ;;  %v2514_v61 = vld [vmem:[#allocation2 + $0xca] sm:$0xff] }
 0x306   : > { %v4883_v26 = vpop.f32.mrb[148].mxu1  ;;  %v2586_v25 = vpack.c.bf16 %v2512_v39, %v2511_v1 }
 0x307   : > { %v4989_v49 = vpop.f32.mrb[176].mxu0  ;;  %v4884_v60 = vpop.f32.mrb[149].mxu1 }
 0x308   : > { %v4885_v62 = vadd.f32 %v4884_v60, %v4883_v26  ;;  %v4990_v13 = vpop.f32.mrb[177].mxu0  ;;  %v4886_v37 = vpop.f32.mrb[150].mxu1 }
 0x309   : > { %v4991_v30 = vadd.f32 %v4990_v13, %v4989_v49  ;;  %v4992_v56 = vpop.f32.mrb[178].mxu0  ;;  %v4887_v8 = vpop.f32.mrb[151].mxu1 }
 0x30a   : > { %v4888_v63 = vadd.f32 %v4887_v8, %v4886_v37  ;;  %v4993_v18 = vpop.f32.mrb[179].mxu0  ;;  %v3335_v9 = vadd.f32 %v4885_v62, %v7039_v20  ;;  %v2595_v37 = vpack.c.bf16 %v2514_v61, %v2513_v22  ;;  %v2515_v8 = vld [vmem:[#allocation2 + $0xda] sm:$0xff] }
 0x30b   : > { %v7078_v0 = vadd.f32 %v4991_v30, %v3327_v27  ;;  %v4994_v16 = vadd.f32 %v4993_v18, %v4992_v56  ;;  %5374 = vmatmul.mubr.bf16.vlgmr.msra.gmra.mrb[0].mxu1 %v2550_v23  ;;  %v2516_v23 = vld [vmem:[#allocation2 + $0xe2] sm:$0xff] }
 0x30c   : > { %3896 = vmatmul.mubr.bf16.gmra.mrb[28].mxu0 %v2674_v5  ;;  %5377 = vmatprep.mubr.bf16.mxu1 %v2559_v32  ;;  %v3338_v50 = vadd.f32 %v4888_v63, %v7039_v20  ;;  %v2517_v32 = vld [vmem:[#allocation2 + $0xf2] sm:$0xff]  ;;  %v2604_v14 = vpack.c.bf16 %v2516_v23, %v2515_v8  ;;  %v2526_v23 = vld [vmem:[#allocation2 + $0x15a] sm:$0xff] }
 0x30d   : > { %v7080_v21 = vadd.f32 %v4994_v16, %v3330_v41  ;;  %v2518_v41 = vld [vmem:[#allocation2 + $0xfa] sm:$0xff]  ;;  %v2525_v8 = vld [vmem:[#allocation2 + $0x152] sm:$0xff] }
 0x30e   : > { %v4889_v4 = vpop.f32.mrb[152].mxu1 }
 0x30f   : > { %v4995_v11 = vpop.f32.mrb[180].mxu0  ;;  %v4890_v58 = vpop.f32.mrb[153].mxu1 }
 0x310   : > { %v4891_v59 = vadd.f32 %v4890_v58, %v4889_v4  ;;  %v4996_v51 = vpop.f32.mrb[181].mxu0  ;;  %v4892_v28 = vpop.f32.mrb[154].mxu1 }
 0x311   : > { %v4997_v38 = vadd.f32 %v4996_v51, %v4995_v11  ;;  %v4998_v55 = vpop.f32.mrb[182].mxu0  ;;  %v4893_v48 = vpop.f32.mrb[155].mxu1 }
 0x312   : > { %v4894_v36 = vadd.f32 %v4893_v48, %v4892_v28  ;;  %v4999_v29 = vpop.f32.mrb[183].mxu0  ;;  %v3343_v52 = vadd.f32 %v4891_v59, %v7039_v20  ;;  %v2613_v28 = vpack.c.bf16 %v2518_v41, %v2517_v32 }
 0x313   : > { %v7084_v15 = vadd.f32 %v4997_v38, %v3335_v9  ;;  %v5000_v47 = vadd.f32 %v4999_v29, %v4998_v55  ;;  %5378 = vmatmul.mubr.bf16.gmra.mrb[4].mxu1 %v2568_v35  ;;  %v2520_v29 = vld [vmem:[#allocation2 + $0x112] sm:$0xff] }
 0x314   : > { %5381 = vmatprep.mubr.bf16.mxu1 %v2577_v44  ;;  %v3346_v40 = vadd.f32 %v4894_v36, %v7039_v20  ;;  %v2519_v36 = vld [vmem:[#allocation2 + $0x10a] sm:$0xff] }
 0x315   : > { %v7086_v33 = vadd.f32 %v5000_v47, %v3338_v50  ;;  %v2521_v47 = vld [vmem:[#allocation2 + $0x122] sm:$0xff] }
 0x316   : > { %v4895_v42 = vpop.f32.mrb[156].mxu1 }
 0x317   : > { %v5001_v45 = vpop.f32.mrb[184].mxu0  ;;  %v4896_v46 = vpop.f32.mrb[157].mxu1 }
 0x318   : > { %v4897_v2 = vadd.f32 %v4896_v46, %v4895_v42  ;;  %v5002_v26 = vpop.f32.mrb[185].mxu0  ;;  %v4898_v57 = vpop.f32.mrb[158].mxu1  ;;  %v2522_v42 = vld [vmem:[#allocation2 + $0x12a] sm:$0xff] }
 0x319   : > { %v5003_v49 = vadd.f32 %v5002_v26, %v5001_v45  ;;  %v5004_v60 = vpop.f32.mrb[186].mxu0  ;;  %v4899_v10 = vpop.f32.mrb[159].mxu1  ;;  %v2622_v26 = vpack.c.bf16 %v2520_v29, %v2519_v36 }
 0x31a   : > { %v4900_v62 = vadd.f32 %v4899_v10, %v4898_v57  ;;  %v5005_v13 = vpop.f32.mrb[187].mxu0  ;;  %v3351_v7 = vadd.f32 %v4897_v2, %v7039_v20 }
 0x31b   : > { %v7090_v5 = vadd.f32 %v5003_v49, %v3343_v52  ;;  %v5006_v27 = vadd.f32 %v5005_v13, %v5004_v60  ;;  %5382 = vmatmul.mubr.bf16.gmra.mrb[8].mxu1 %v2586_v25  ;;  %v2631_v49 = vpack.c.bf16 %v2522_v42, %v2521_v47 }
 0x31c   : > { %5385 = vmatprep.mubr.bf16.mxu1 %v2595_v37  ;;  %v3354_v9 = vadd.f32 %v4900_v62, %v7039_v20  ;;  %v2523_v37 = vld [vmem:[#allocation2 + $0x13a] sm:$0xff] }
 0x31d   : > { %v7092_v30 = vadd.f32 %v5006_v27, %v3346_v40  ;;  %v2524_v40 = vld [vmem:[#allocation2 + $0x142] sm:$0xff] }
 0x31e   : > { %v4901_v56 = vpop.f32.mrb[160].mxu1 }
 0x31f   : > { %v5007_v63 = vpop.f32.mrb[188].mxu0  ;;  %v4902_v18 = vpop.f32.mrb[161].mxu1 }
 0x320   : > { %v4903_v16 = vadd.f32 %v4902_v18, %v4901_v56  ;;  %v5008_v4 = vpop.f32.mrb[189].mxu0  ;;  %v4904_v6 = vpop.f32.mrb[162].mxu1 }
 0x321   : > { %v5009_v11 = vadd.f32 %v5008_v4, %v5007_v63  ;;  %v5010_v58 = vpop.f32.mrb[190].mxu0  ;;  %v4905_v53 = vpop.f32.mrb[163].mxu1 }
 0x322   : > { %v4906_v59 = vadd.f32 %v4905_v53, %v4904_v6  ;;  %v5011_v51 = vpop.f32.mrb[191].mxu0  ;;  %v3359_v46 = vadd.f32 %v4903_v16, %v7039_v20  ;;  %v2649_v53 = vpack.c.bf16 %v2526_v23, %v2525_v8 }
 0x323   : > { %v7096_v38 = vadd.f32 %v5009_v11, %v3351_v7  ;;  %v5012_v55 = vadd.f32 %v5011_v51, %v5010_v58  ;;  %5386 = vmatmul.mubr.bf16.gmra.mrb[12].mxu1 %v2604_v14  ;;  %v2640_v7 = vpack.c.bf16 %v2524_v40, %v2523_v37 }
 0x324   : > { %5389 = vmatprep.mubr.bf16.mxu1 %v2613_v28  ;;  %v3362_v60 = vadd.f32 %v4906_v59, %v7039_v20 }
 0x325   : > { %v7098_v48 = vadd.f32 %v5012_v55, %v3354_v9  ;;  %v2527_v55 = vld [vmem:[#allocation2 + $0x16a] sm:$0xff] }
 0x326   : > { %v4907_v35 = vpop.f32.mrb[164].mxu1 }
 0x327   : > { %v5013_v44 = vpop.f32.mrb[192].mxu0  ;;  %v4908_v50 = vpop.f32.mrb[165].mxu1 }
 0x328   : > { %v4909_v1 = vadd.f32 %v4908_v50, %v4907_v35  ;;  %v5014_v39 = vpop.f32.mrb[193].mxu0  ;;  %v4910_v45 = vpop.f32.mrb[166].mxu1  ;;  %v2528_v35 = vld [vmem:[#allocation2 + $0x172] sm:$0xff] }
 0x329   : > { %v5015_v22 = vadd.f32 %v5014_v39, %v5013_v44  ;;  %v5016_v61 = vpop.f32.mrb[194].mxu0  ;;  %v4911_v2 = vpop.f32.mrb[167].mxu1 }
 0x32a   : > { %v4912_v57 = vadd.f32 %v4911_v2, %v4910_v45  ;;  %v5017_v52 = vpop.f32.mrb[195].mxu0  ;;  %v3367_v41 = vadd.f32 %v4909_v1, %v7039_v20 }
 0x32b   : > { %v7102_v10 = vadd.f32 %v5015_v22, %v3359_v46  ;;  %v5018_v25 = vadd.f32 %v5017_v52, %v5016_v61  ;;  %5390 = vmatmul.mubr.bf16.gmra.mrb[16].mxu1 %v2622_v26  ;;  %v2658_v46 = vpack.c.bf16 %v2528_v35, %v2527_v55  ;;  %v2531_v52 = vld [vmem:[#allocation2 + $0x19a] sm:$0xff] }
 0x32c   : > { %5393 = vmatprep.mubr.bf16.mxu1 %v2631_v49  ;;  %v3370_v14 = vadd.f32 %v4912_v57, %v7039_v20  ;;  %v2532_v49 = vld [vmem:[#allocation2 + $0x1a2] sm:$0xff] }
 0x32d   : > { %v7104_v62 = vadd.f32 %v5018_v25, %v3362_v60  ;;  %v2676_v40 = vpack.c.bf16 %v2532_v49, %v2531_v52 }
 0x32e   : > { %v4913_v13 = vpop.f32.mrb[168].mxu1 }
 0x32f   : > { %v5019_v27 = vpop.f32.mrb[196].mxu0  ;;  %v4914_v56 = vpop.f32.mrb[169].mxu1 }
 0x330   : > { %v4915_v63 = vadd.f32 %v4914_v56, %v4913_v13  ;;  %v5020_v18 = vpop.f32.mrb[197].mxu0  ;;  %v4916_v32 = vpop.f32.mrb[170].mxu1 }
 0x331   : > { %v5021_v16 = vadd.f32 %v5020_v18, %v5019_v27  ;;  %v5022_v4 = vpop.f32.mrb[198].mxu0  ;;  %v4917_v6 = vpop.f32.mrb[171].mxu1 }
 0x332   : > { %v4918_v11 = vadd.f32 %v4917_v6, %v4916_v32  ;;  %v5023_v58 = vpop.f32.mrb[199].mxu0  ;;  %v3375_v42 = vadd.f32 %v4915_v63, %v7039_v20 }
 0x333   : > { %v7108_v59 = vadd.f32 %v5021_v16, %v3367_v41  ;;  %v5024_v51 = vadd.f32 %v5023_v58, %v5022_v4  ;;  %5394 = vmatmul.mubr.bf16.gmra.mrb[20].mxu1 %v2640_v7 }
 0x334   : > { %5397 = vmatprep.mubr.bf16.mxu1 %v2649_v53  ;;  %v3378_v2 = vadd.f32 %v4918_v11, %v7039_v20 }
 0x335   : > { %v7110_v28 = vadd.f32 %v5024_v51, %v3370_v14 }
 0x336   : > { %v4919_v9 = vpop.f32.mrb[172].mxu1 }
 0x337   : > { %v5025_v36 = vpop.f32.mrb[200].mxu0  ;;  %v4920_v29 = vpop.f32.mrb[173].mxu1 }
 0x338   : > { %v4921_v44 = vadd.f32 %v4920_v29, %v4919_v9  ;;  %v5026_v50 = vpop.f32.mrb[201].mxu0  ;;  %v4922_v47 = vpop.f32.mrb[174].mxu1 }
 0x339   : > { %v5027_v1 = vadd.f32 %v5026_v50, %v5025_v36  ;;  %v5028_v39 = vpop.f32.mrb[202].mxu0  ;;  %v4923_v45 = vpop.f32.mrb[175].mxu1 }
 0x33a   : > { %v4924_v22 = vadd.f32 %v4923_v45, %v4922_v47  ;;  %v5029_v61 = vpop.f32.mrb[203].mxu0  ;;  %v3383_v23 = vadd.f32 %v4921_v44, %v7039_v20 }
 0x33b   : > { %v7114_v26 = vadd.f32 %v5027_v1, %v3375_v42  ;;  %v5030_v57 = vadd.f32 %v5029_v61, %v5028_v39  ;;  %5398 = vmatmul.mubr.bf16.gmra.mrb[24].mxu1 %v2658_v46 }
 0x33c   : > { %5401 = vmatprep.mubr.bf16.mxu1 %v7060_v43  ;;  %v3386_v43 = vadd.f32 %v4924_v22, %v7039_v20 }
 0x33d   : > { %v7117_v60 = vadd.f32 %v5030_v57, %v3378_v2 }
 0x33e   : > { %v4925_v25 = vpop.f32.mrb[176].mxu1 }
 0x33f   : > { %v5031_v13 = vpop.f32.mrb[204].mxu0  ;;  %v4926_v37 = vpop.f32.mrb[177].mxu1 }
 0x340   : > { %v4927_v27 = vadd.f32 %v4926_v37, %v4925_v25  ;;  %v5032_v56 = vpop.f32.mrb[205].mxu0  ;;  %v4928_v8 = vpop.f32.mrb[178].mxu1 }
 0x341   : > { %v5033_v63 = vadd.f32 %v5032_v56, %v5031_v13  ;;  %v5034_v18 = vpop.f32.mrb[206].mxu0  ;;  %v4929_v32 = vpop.f32.mrb[179].mxu1 }
 0x342   : > { %v4930_v41 = vadd.f32 %v4929_v32, %v4928_v8  ;;  %v5035_v16 = vpop.f32.mrb[207].mxu0  ;;  %v3391_v55 = vadd.f32 %v4927_v27, %v7039_v20 }
 0x343   : > { %v7121_v4 = vadd.f32 %v5033_v63, %v3383_v23  ;;  %v5036_v6 = vadd.f32 %v5035_v16, %v5034_v18  ;;  %5402 = vmatmul.mubr.bf16.gmra.mrb[28].mxu1 %v2676_v40 }
 0x344   : > { %v3394_v47 = vadd.f32 %v4930_v41, %v7039_v20 }
 0x345   : > { %v7123_v7 = vadd.f32 %v5036_v6, %v3386_v43 }
 0x346   : > { %v4931_v11 = vpop.f32.mrb[180].mxu1 }
 0x347   : > { %v5037_v58 = vpop.f32.mrb[208].mxu0  ;;  %v4932_v53 = vpop.f32.mrb[181].mxu1 }
 0x348   : > { %v4933_v14 = vadd.f32 %v4932_v53, %v4931_v11  ;;  %v5038_v51 = vpop.f32.mrb[209].mxu0  ;;  %v4934_v9 = vpop.f32.mrb[182].mxu1 }
 0x349   : > { %v5039_v35 = vadd.f32 %v5038_v51, %v5037_v58  ;;  %v5040_v36 = vpop.f32.mrb[210].mxu0  ;;  %v4935_v29 = vpop.f32.mrb[183].mxu1 }
 0x34a   : > { %v4936_v44 = vadd.f32 %v4935_v29, %v4934_v9  ;;  %v5041_v50 = vpop.f32.mrb[211].mxu0  ;;  %v3399_v52 = vadd.f32 %v4933_v14, %v7039_v20 }
 0x34b   : > { %v7127_v42 = vadd.f32 %v5039_v35, %v3391_v55  ;;  %v5042_v1 = vadd.f32 %v5041_v50, %v5040_v36 }
 0x34c   : > { %v3402_v27 = vadd.f32 %v4936_v44, %v7039_v20 }
 0x34d   : > { %v7129_v39 = vadd.f32 %v5042_v1, %v3394_v47 }
 0x34e   : > { %v4937_v45 = vpop.f32.mrb[184].mxu1 }
 0x34f   : > { %v5043_v46 = vpop.f32.mrb[212].mxu0  ;;  %v4938_v22 = vpop.f32.mrb[185].mxu1 }
 0x350   : > { %v4939_v61 = vadd.f32 %v4938_v22, %v4937_v45  ;;  %v5044_v2 = vpop.f32.mrb[213].mxu0  ;;  %v4940_v57 = vpop.f32.mrb[186].mxu1 }
 0x351   : > { %v5045_v49 = vadd.f32 %v5044_v2, %v5043_v46  ;;  %v5046_v25 = vpop.f32.mrb[214].mxu0  ;;  %v4941_v13 = vpop.f32.mrb[187].mxu1 }
 0x352   : > { %v4942_v37 = vadd.f32 %v4941_v13, %v4940_v57  ;;  %v5047_v40 = vpop.f32.mrb[215].mxu0  ;;  %v3407_v6 = vadd.f32 %v4939_v61, %v7039_v20 }
 0x353   : > { %v7133_v56 = vadd.f32 %v5045_v49, %v3399_v52  ;;  %v5048_v8 = vadd.f32 %v5047_v40, %v5046_v25 }
 0x354   : > { %v3410_v9 = vadd.f32 %v4942_v37, %v7039_v20 }
 0x355   : > { %v7135_v23 = vadd.f32 %v5048_v8, %v3402_v27 }
 0x356   : > { %v4943_v63 = vpop.f32.mrb[188].mxu1 }
 0x357   : > { %v5049_v18 = vpop.f32.mrb[216].mxu0  ;;  %v4944_v32 = vpop.f32.mrb[189].mxu1 }
 0x358   : > { %v4945_v41 = vadd.f32 %v4944_v32, %v4943_v63  ;;  %v5050_v16 = vpop.f32.mrb[217].mxu0  ;;  %v4946_v43 = vpop.f32.mrb[190].mxu1 }
 0x359   : > { %v5051_v11 = vadd.f32 %v5050_v16, %v5049_v18  ;;  %v5052_v58 = vpop.f32.mrb[218].mxu0  ;;  %v4947_v53 = vpop.f32.mrb[191].mxu1 }
 0x35a   : > { %v4948_v14 = vadd.f32 %v4947_v53, %v4946_v43  ;;  %v5053_v51 = vpop.f32.mrb[219].mxu0  ;;  %v3415_v46 = vadd.f32 %v4945_v41, %v7039_v20 }
 0x35b   : > { %v7139_v55 = vadd.f32 %v5051_v11, %v3407_v6  ;;  %v5054_v35 = vadd.f32 %v5053_v51, %v5052_v58 }
 0x35c   : > { %v3418_v25 = vadd.f32 %v4948_v14, %v7039_v20 }
 0x35d   : > { %v7141_v36 = vadd.f32 %v5054_v35, %v3410_v9 }
 0x35e   : > { %v5077_v29 = vpop.f32.mrb[192].mxu1 }
 0x35f   : > { %v5055_v44 = vpop.f32.mrb[220].mxu0  ;;  %v5078_v50 = vpop.f32.mrb[193].mxu1 }
 0x360   : > { %v5056_v47 = vpop.f32.mrb[221].mxu0  ;;  %v5079_v1 = vadd.f32 %v5078_v50, %v5077_v29  ;;  %v5080_v45 = vpop.f32.mrb[194].mxu1 }
 0x361   : > { %v5057_v22 = vadd.f32 %v5056_v47, %v5055_v44  ;;  %v5058_v61 = vpop.f32.mrb[222].mxu0  ;;  %v5081_v2 = vpop.f32.mrb[195].mxu1 }
 0x362   : > { %v3617_v57 = vadd.f32 %v5079_v1, %v7045_v17  ;;  %v5059_v52 = vpop.f32.mrb[223].mxu0  ;;  %v5082_v49 = vadd.f32 %v5081_v2, %v5080_v45 }
 0x363   : > { %v7146_v13 = vadd.f32 %v5057_v22, %v3415_v46  ;;  %v5060_v37 = vadd.f32 %v5059_v52, %v5058_v61 }
 0x364   : > { %v3620_v40 = vadd.f32 %v5082_v49, %v7049_v34 }
 0x365   : > { %v7149_v27 = vadd.f32 %v5060_v37, %v3418_v25 }
 0x366   : > { %v5083_v8 = vpop.f32.mrb[196].mxu1 }
 0x367   : > { %v5189_v63 = vpop.f32.mrb[224].mxu0  ;;  %v5084_v18 = vpop.f32.mrb[197].mxu1 }
 0x368   : > { %v5085_v32 = vadd.f32 %v5084_v18, %v5083_v8  ;;  %v5190_v41 = vpop.f32.mrb[225].mxu0  ;;  %v5086_v16 = vpop.f32.mrb[198].mxu1 }
 0x369   : > { %v5191_v43 = vadd.f32 %v5190_v41, %v5189_v63  ;;  %v5192_v6 = vpop.f32.mrb[226].mxu0  ;;  %v5087_v17 = vpop.f32.mrb[199].mxu1 }
 0x36a   : > { %v3625_v11 = vadd.f32 %v5085_v32, %v7053_v3  ;;  %v5088_v58 = vadd.f32 %v5087_v17, %v5086_v16  ;;  %v5193_v20 = vpop.f32.mrb[227].mxu0 }
 0x36b   : > { %v5194_v53 = vadd.f32 %v5193_v20, %v5192_v6  ;;  %v7152_v14 = vadd.f32 %v5191_v43, %v3617_v57 }
 0x36c   : > { %v3628_v34 = vadd.f32 %v5088_v58, %v7057_v19 }
 0x36d   : > { %v7155_v51 = vadd.f32 %v5194_v53, %v3620_v40 }
 0x36e   : > { %v5089_v9 = vpop.f32.mrb[200].mxu1 }
 0x36f   : > { %v5195_v35 = vpop.f32.mrb[228].mxu0  ;;  %v5090_v29 = vpop.f32.mrb[201].mxu1 }
 0x370   : > { %v5091_v44 = vadd.f32 %v5090_v29, %v5089_v9  ;;  %v5196_v50 = vpop.f32.mrb[229].mxu0  ;;  %v5092_v47 = vpop.f32.mrb[202].mxu1 }
 0x371   : > { %v5197_v1 = vadd.f32 %v5196_v50, %v5195_v35  ;;  %v5198_v45 = vpop.f32.mrb[230].mxu0  ;;  %v5093_v46 = vpop.f32.mrb[203].mxu1 }
 0x372   : > { %v3633_v3 = vadd.f32 %v5091_v44, %v7063_v12  ;;  %v5094_v22 = vadd.f32 %v5093_v46, %v5092_v47  ;;  %v5199_v61 = vpop.f32.mrb[231].mxu0 }
 0x373   : > { %v5200_v2 = vadd.f32 %v5199_v61, %v5198_v45  ;;  %v7158_v57 = vadd.f32 %v5197_v1, %v3625_v11 }
 0x374   : > { %v3636_v19 = vadd.f32 %v5094_v22, %v7067_v24 }
 0x375   : > { %v7161_v52 = vadd.f32 %v5200_v2, %v3628_v34 }
 0x376   : > { %v5095_v49 = vpop.f32.mrb[204].mxu1 }
 0x377   : > { %v5201_v25 = vpop.f32.mrb[232].mxu0  ;;  %v5096_v37 = vpop.f32.mrb[205].mxu1 }
 0x378   : > { %v5097_v40 = vadd.f32 %v5096_v37, %v5095_v49  ;;  %v5202_v8 = vpop.f32.mrb[233].mxu0  ;;  %v5098_v63 = vpop.f32.mrb[206].mxu1 }
 0x379   : > { %v5203_v18 = vadd.f32 %v5202_v8, %v5201_v25  ;;  %v5204_v32 = vpop.f32.mrb[234].mxu0  ;;  %v5099_v41 = vpop.f32.mrb[207].mxu1 }
 0x37a   : > { %v3641_v12 = vadd.f32 %v5097_v40, %v7071_v31  ;;  %v5100_v16 = vadd.f32 %v5099_v41, %v5098_v63  ;;  %v5205_v43 = vpop.f32.mrb[235].mxu0 }
 0x37b   : > { %v5206_v6 = vadd.f32 %v5205_v43, %v5204_v32  ;;  %v7164_v17 = vadd.f32 %v5203_v18, %v3633_v3 }
 0x37c   : > { %v3644_v24 = vadd.f32 %v5100_v16, %v7074_v54 }
 0x37d   : > { %v7167_v11 = vadd.f32 %v5206_v6, %v3636_v19 }
 0x37e   : > { %v5101_v58 = vpop.f32.mrb[208].mxu1 }
 0x37f   : > { %v5207_v20 = vpop.f32.mrb[236].mxu0  ;;  %v5102_v53 = vpop.f32.mrb[209].mxu1 }
 0x380   : > { %v5103_v34 = vadd.f32 %v5102_v53, %v5101_v58  ;;  %v5208_v9 = vpop.f32.mrb[237].mxu0  ;;  %v5104_v35 = vpop.f32.mrb[210].mxu1 }
 0x381   : > { %v5209_v29 = vadd.f32 %v5208_v9, %v5207_v20  ;;  %v5210_v44 = vpop.f32.mrb[238].mxu0  ;;  %v5105_v50 = vpop.f32.mrb[211].mxu1 }
 0x382   : > { %v3649_v31 = vadd.f32 %v5103_v34, %v7078_v0  ;;  %v5106_v47 = vadd.f32 %v5105_v50, %v5104_v35  ;;  %v5211_v1 = vpop.f32.mrb[239].mxu0 }
 0x383   : > { %v5212_v45 = vadd.f32 %v5211_v1, %v5210_v44  ;;  %v7170_v46 = vadd.f32 %v5209_v29, %v3641_v12 }
 0x384   : > { %v3652_v54 = vadd.f32 %v5106_v47, %v7080_v21 }
 0x385   : > { %v7173_v3 = vadd.f32 %v5212_v45, %v3644_v24 }
 0x386   : > { %v5107_v22 = vpop.f32.mrb[212].mxu1 }
 0x387   : > { %v5213_v61 = vpop.f32.mrb[240].mxu0  ;;  %v5108_v2 = vpop.f32.mrb[213].mxu1 }
 0x388   : > { %v5109_v19 = vadd.f32 %v5108_v2, %v5107_v22  ;;  %v5214_v49 = vpop.f32.mrb[241].mxu0  ;;  %v5110_v25 = vpop.f32.mrb[214].mxu1 }
 0x389   : > { %v5215_v37 = vadd.f32 %v5214_v49, %v5213_v61  ;;  %v5216_v40 = vpop.f32.mrb[242].mxu0  ;;  %v5111_v8 = vpop.f32.mrb[215].mxu1 }
 0x38a   : > { %v3657_v0 = vadd.f32 %v5109_v19, %v7084_v15  ;;  %v5112_v63 = vadd.f32 %v5111_v8, %v5110_v25  ;;  %v5217_v18 = vpop.f32.mrb[243].mxu0 }
 0x38b   : > { %v5218_v32 = vadd.f32 %v5217_v18, %v5216_v40  ;;  %v7176_v41 = vadd.f32 %v5215_v37, %v3649_v31 }
 0x38c   : > { %v3660_v21 = vadd.f32 %v5112_v63, %v7086_v33 }
 0x38d   : > { %v7179_v12 = vadd.f32 %v5218_v32, %v3652_v54 }
 0x38e   : > { %v5113_v16 = vpop.f32.mrb[216].mxu1 }
 0x38f   : > { %v5219_v43 = vpop.f32.mrb[244].mxu0  ;;  %v5114_v6 = vpop.f32.mrb[217].mxu1 }
 0x390   : > { %v5115_v24 = vadd.f32 %v5114_v6, %v5113_v16  ;;  %v5220_v58 = vpop.f32.mrb[245].mxu0  ;;  %v5116_v20 = vpop.f32.mrb[218].mxu1 }
 0x391   : > { %v5221_v53 = vadd.f32 %v5220_v58, %v5219_v43  ;;  %v5222_v34 = vpop.f32.mrb[246].mxu0  ;;  %v5117_v9 = vpop.f32.mrb[219].mxu1 }
 0x392   : > { %v3665_v15 = vadd.f32 %v5115_v24, %v7090_v5  ;;  %v5118_v35 = vadd.f32 %v5117_v9, %v5116_v20  ;;  %v5223_v29 = vpop.f32.mrb[247].mxu0 }
 0x393   : > { %v5224_v44 = vadd.f32 %v5223_v29, %v5222_v34  ;;  %v7182_v50 = vadd.f32 %v5221_v53, %v3657_v0 }
 0x394   : > { %v3668_v33 = vadd.f32 %v5118_v35, %v7092_v30 }
 0x395   : > { %v7185_v31 = vadd.f32 %v5224_v44, %v3660_v21 }
 0x396   : > { %v5119_v47 = vpop.f32.mrb[220].mxu1 }
 0x397   : > { %v5225_v1 = vpop.f32.mrb[248].mxu0  ;;  %v5120_v45 = vpop.f32.mrb[221].mxu1 }
 0x398   : > { %v5121_v54 = vadd.f32 %v5120_v45, %v5119_v47  ;;  %v5226_v22 = vpop.f32.mrb[249].mxu0  ;;  %v5122_v61 = vpop.f32.mrb[222].mxu1 }
 0x399   : > { %v5227_v2 = vadd.f32 %v5226_v22, %v5225_v1  ;;  %v5228_v19 = vpop.f32.mrb[250].mxu0  ;;  %v5123_v49 = vpop.f32.mrb[223].mxu1 }
 0x39a   : > { %v3673_v5 = vadd.f32 %v5121_v54, %v7096_v38  ;;  %v5124_v25 = vadd.f32 %v5123_v49, %v5122_v61  ;;  %v5229_v37 = vpop.f32.mrb[251].mxu0 }
 0x39b   : > { %v5230_v40 = vadd.f32 %v5229_v37, %v5228_v19  ;;  %v7188_v8 = vadd.f32 %v5227_v2, %v3665_v15 }
 0x39c   : > { %v3676_v30 = vadd.f32 %v5124_v25, %v7098_v48 }
 0x39d   : > { %v7191_v0 = vadd.f32 %v5230_v40, %v3668_v33 }
 0x39e   : > { %v5125_v63 = vpop.f32.mrb[224].mxu1 }
 0x39f   : > { %v5231_v18 = vpop.f32.mrb[252].mxu0  ;;  %v5126_v32 = vpop.f32.mrb[225].mxu1 }
 0x3a0   : > { %v5127_v21 = vadd.f32 %v5126_v32, %v5125_v63  ;;  %v5232_v16 = vpop.f32.mrb[253].mxu0  ;;  %v5128_v43 = vpop.f32.mrb[226].mxu1 }
 0x3a1   : > { %v5233_v6 = vadd.f32 %v5232_v16, %v5231_v18  ;;  %v5234_v24 = vpop.f32.mrb[254].mxu0  ;;  %v5129_v58 = vpop.f32.mrb[227].mxu1 }
 0x3a2   : > { %v3681_v38 = vadd.f32 %v5127_v21, %v7102_v10  ;;  %v5130_v20 = vadd.f32 %v5129_v58, %v5128_v43  ;;  %v5235_v53 = vpop.f32.mrb[255].mxu0 }
 0x3a3   : > { %v5236_v34 = vadd.f32 %v5235_v53, %v5234_v24  ;;  %v7194_v9 = vadd.f32 %v5233_v6, %v3673_v5 }
 0x3a4   : > { %v3684_v48 = vadd.f32 %v5130_v20, %v7104_v62 }
 0x3a5   : > { %v7197_v15 = vadd.f32 %v5236_v34, %v3676_v30 }
 0x3a6   : > { %v5131_v35 = vpop.f32.mrb[228].mxu1 }
 0x3a7   : > { %v5237_v29 = vpop.f32.mrb[0].mxu0  ;;  %v5132_v44 = vpop.f32.mrb[229].mxu1 }
 0x3a8   : > { %v5133_v33 = vadd.f32 %v5132_v44, %v5131_v35  ;;  %v5238_v47 = vpop.f32.mrb[1].mxu0  ;;  %v5134_v1 = vpop.f32.mrb[230].mxu1 }
 0x3a9   : > { %v5239_v45 = vadd.f32 %v5238_v47, %v5237_v29  ;;  %v5240_v54 = vpop.f32.mrb[2].mxu0  ;;  %v5135_v22 = vpop.f32.mrb[231].mxu1 }
 0x3aa   : > { %v3689_v10 = vadd.f32 %v5133_v33, %v7108_v59  ;;  %v5136_v61 = vadd.f32 %v5135_v22, %v5134_v1  ;;  %v5241_v2 = vpop.f32.mrb[3].mxu0 }
 0x3ab   : > { %v5242_v19 = vadd.f32 %v5241_v2, %v5240_v54  ;;  %v7200_v49 = vadd.f32 %v5239_v45, %v3681_v38 }
 0x3ac   : > { %v3692_v62 = vadd.f32 %v5136_v61, %v7110_v28 }
 0x3ad   : > { %v7203_v5 = vadd.f32 %v5242_v19, %v3684_v48 }
 0x3ae   : > { %v5137_v25 = vpop.f32.mrb[232].mxu1 }
 0x3af   : > { %v5243_v37 = vpop.f32.mrb[4].mxu0  ;;  %v5138_v40 = vpop.f32.mrb[233].mxu1 }
 0x3b0   : > { %v5139_v30 = vadd.f32 %v5138_v40, %v5137_v25  ;;  %v5244_v63 = vpop.f32.mrb[5].mxu0  ;;  %v5140_v18 = vpop.f32.mrb[234].mxu1 }
 0x3b1   : > { %v5245_v32 = vadd.f32 %v5244_v63, %v5243_v37  ;;  %v5246_v21 = vpop.f32.mrb[6].mxu0  ;;  %v5141_v16 = vpop.f32.mrb[235].mxu1 }
 0x3b2   : > { %v3697_v59 = vadd.f32 %v5139_v30, %v7114_v26  ;;  %v5142_v43 = vadd.f32 %v5141_v16, %v5140_v18  ;;  %v5247_v6 = vpop.f32.mrb[7].mxu0 }
 0x3b3   : > { %v5248_v24 = vadd.f32 %v5247_v6, %v5246_v21  ;;  %v7206_v58 = vadd.f32 %v5245_v32, %v3689_v10 }
 0x3b4   : > { %v3700_v28 = vadd.f32 %v5142_v43, %v7117_v60 }
 0x3b5   : > { %v7209_v38 = vadd.f32 %v5248_v24, %v3692_v62 }
 0x3b6   : > { %v5143_v20 = vpop.f32.mrb[236].mxu1 }
 0x3b7   : > { %v5249_v53 = vpop.f32.mrb[8].mxu0  ;;  %v5144_v34 = vpop.f32.mrb[237].mxu1 }
 0x3b8   : > { %v5145_v48 = vadd.f32 %v5144_v34, %v5143_v20  ;;  %v5250_v35 = vpop.f32.mrb[9].mxu0  ;;  %v5146_v29 = vpop.f32.mrb[238].mxu1 }
 0x3b9   : > { %v5251_v44 = vadd.f32 %v5250_v35, %v5249_v53  ;;  %v5252_v33 = vpop.f32.mrb[10].mxu0  ;;  %v5147_v47 = vpop.f32.mrb[239].mxu1 }
 0x3ba   : > { %v3705_v26 = vadd.f32 %v5145_v48, %v7121_v4  ;;  %v5148_v1 = vadd.f32 %v5147_v47, %v5146_v29  ;;  %v5253_v45 = vpop.f32.mrb[11].mxu0 }
 0x3bb   : > { %v5254_v54 = vadd.f32 %v5253_v45, %v5252_v33  ;;  %v7212_v22 = vadd.f32 %v5251_v44, %v3697_v59 }
 0x3bc   : > { %v3708_v60 = vadd.f32 %v5148_v1, %v7123_v7 }
 0x3bd   : > { %v7215_v10 = vadd.f32 %v5254_v54, %v3700_v28 }
 0x3be   : > { %v5149_v61 = vpop.f32.mrb[240].mxu1 }
 0x3bf   : > { %v5255_v2 = vpop.f32.mrb[12].mxu0  ;;  %v5150_v19 = vpop.f32.mrb[241].mxu1 }
 0x3c0   : > { %v5151_v62 = vadd.f32 %v5150_v19, %v5149_v61  ;;  %v5256_v25 = vpop.f32.mrb[13].mxu0  ;;  %v5152_v37 = vpop.f32.mrb[242].mxu1 }
 0x3c1   : > { %v5257_v40 = vadd.f32 %v5256_v25, %v5255_v2  ;;  %v5258_v30 = vpop.f32.mrb[14].mxu0  ;;  %v5153_v63 = vpop.f32.mrb[243].mxu1 }
 0x3c2   : > { %v3713_v4 = vadd.f32 %v5151_v62, %v7127_v42  ;;  %v5154_v18 = vadd.f32 %v5153_v63, %v5152_v37  ;;  %v5259_v32 = vpop.f32.mrb[15].mxu0 }
 0x3c3   : > { %v5260_v21 = vadd.f32 %v5259_v32, %v5258_v30  ;;  %v7218_v16 = vadd.f32 %v5257_v40, %v3705_v26 }
 0x3c4   : > { %v3716_v7 = vadd.f32 %v5154_v18, %v7129_v39 }
 0x3c5   : > { %v7221_v59 = vadd.f32 %v5260_v21, %v3708_v60 }
 0x3c6   : > { %v5155_v43 = vpop.f32.mrb[244].mxu1 }
 0x3c7   : > { %v5261_v6 = vpop.f32.mrb[16].mxu0  ;;  %v5156_v24 = vpop.f32.mrb[245].mxu1 }
 0x3c8   : > { %v5157_v28 = vadd.f32 %v5156_v24, %v5155_v43  ;;  %v5262_v20 = vpop.f32.mrb[17].mxu0  ;;  %v5158_v53 = vpop.f32.mrb[246].mxu1 }
 0x3c9   : > { %v5263_v34 = vadd.f32 %v5262_v20, %v5261_v6  ;;  %v5264_v48 = vpop.f32.mrb[18].mxu0  ;;  %v5159_v35 = vpop.f32.mrb[247].mxu1 }
 0x3ca   : > { %v3721_v42 = vadd.f32 %v5157_v28, %v7133_v56  ;;  %v5160_v29 = vadd.f32 %v5159_v35, %v5158_v53  ;;  %v5265_v44 = vpop.f32.mrb[19].mxu0 }
 0x3cb   : > { %v5266_v33 = vadd.f32 %v5265_v44, %v5264_v48  ;;  %v7224_v47 = vadd.f32 %v5263_v34, %v3713_v4 }
 0x3cc   : > { %v3724_v39 = vadd.f32 %v5160_v29, %v7135_v23 }
 0x3cd   : > { %v7227_v26 = vadd.f32 %v5266_v33, %v3716_v7 }
 0x3ce   : > { %v5161_v1 = vpop.f32.mrb[248].mxu1 }
 0x3cf   : > { %v5267_v45 = vpop.f32.mrb[20].mxu0  ;;  %v5162_v54 = vpop.f32.mrb[249].mxu1 }
 0x3d0   : > { %v5163_v60 = vadd.f32 %v5162_v54, %v5161_v1  ;;  %v5268_v61 = vpop.f32.mrb[21].mxu0  ;;  %v5164_v2 = vpop.f32.mrb[250].mxu1  ;;  %v5593_v54 = vld [vmem:[%s5870_s8 + $0x10] sm:$0xff] }
 0x3d1   : > { %v5269_v19 = vadd.f32 %v5268_v61, %v5267_v45  ;;  %v5270_v62 = vpop.f32.mrb[22].mxu0  ;;  %v5165_v25 = vpop.f32.mrb[251].mxu1 }
 0x3d2   : > { %v3729_v56 = vadd.f32 %v5163_v60, %v7139_v55  ;;  %v5166_v37 = vadd.f32 %v5165_v25, %v5164_v2  ;;  %v5271_v40 = vpop.f32.mrb[23].mxu0 }
 0x3d3   : > { %v5272_v30 = vadd.f32 %v5271_v40, %v5270_v62  ;;  %v7230_v63 = vadd.f32 %v5269_v19, %v3721_v42  ;;  %v5594_v62 = vld [vmem:[%s5870_s8] sm:$0xff] }
 0x3d4   : > { %v3732_v23 = vadd.f32 %v5166_v37, %v7141_v36 }
 0x3d5   : > { %v7233_v4 = vadd.f32 %v5272_v30, %v3724_v39 }
 0x3d6   : > { %v5167_v18 = vpop.f32.mrb[252].mxu1 }
 0x3d7   : > { %v5273_v32 = vpop.f32.mrb[24].mxu0  ;;  %v5168_v21 = vpop.f32.mrb[253].mxu1 }
 0x3d8   : > { %v5169_v7 = vadd.f32 %v5168_v21, %v5167_v18  ;;  %v5274_v43 = vpop.f32.mrb[25].mxu0  ;;  %v5170_v6 = vpop.f32.mrb[254].mxu1 }
 0x3d9   : > { %v5275_v24 = vadd.f32 %v5274_v43, %v5273_v32  ;;  %v5276_v28 = vpop.f32.mrb[26].mxu0  ;;  %v5171_v55 = vpop.f32.mrb[255].mxu1 }
 0x3da   : > { %v3737_v20 = vadd.f32 %v5169_v7, %v7146_v13  ;;  %v5172_v53 = vadd.f32 %v5171_v55, %v5170_v6  ;;  %v5277_v34 = vpop.f32.mrb[27].mxu0  ;;  %v5597_v6 = vld [vmem:[%s5870_s8 + $0x30] sm:$0xff] }
 0x3db   : > { %v5278_v48 = vadd.f32 %v5277_v34, %v5276_v28  ;;  %v7237_v36 = vadd.f32 %v5275_v24, %v3729_v56 }
 0x3dc   : > { %v3740_v35 = vadd.f32 %v5172_v53, %v7149_v27 }
 0x3dd   : > { %v7242_v42 = vadd.f32 %v5278_v48, %v3732_v23  ;;  %v5599_v48 = vld [vmem:[%s5870_s8 + $0x38] sm:$0xff] }
 0x3de   : > { %v5375_v29 = vpop.f32.mrb[0].mxu1 }
 0x3df   : > { %v5279_v44 = vpop.f32.mrb[28].mxu0  ;;  %v3947_v33 = vadd.f32 %v5375_v29, %v7158_v57  ;;  %v3938_v39 = vpop.f32.mrb[1].mxu1 }
 0x3e0   : > { %v5280_v13 = vpop.f32.mrb[29].mxu0  ;;  %v3939_v1 = vadd.f32 %v3938_v39, %v7152_v14  ;;  %v5376_v45 = vpop.f32.mrb[2].mxu1  ;;  %v5595_v14 = vld [vmem:[%s5870_s8 + $0x18] sm:$0xff]  ;;  %v5601_v39 = vld [vmem:[%s5870_s8 + $0x50] sm:$0xff] }
 0x3e1   : > { %v4067_v60 = vadd.f32 %v5593_v54, %v3947_v33  ;;  %v5281_v61 = vadd.f32 %v5280_v13, %v5279_v44  ;;  %v5282_v27 = vpop.f32.mrb[30].mxu0  ;;  %v3950_v2 = vadd.f32 %v5376_v45, %v7161_v52  ;;  %v3941_v19 = vpop.f32.mrb[3].mxu1  ;;  %v5596_v52 = vld [vmem:[%s5870_s8 + $0x8] sm:$0xff]  ;;  %v5602_v54 = vld [vmem:[%s5870_s8 + $0x40] sm:$0xff] }
 0x3e2   : > { %v4065_v25 = vadd.f32 %v5594_v62, %v3939_v1  ;;  %v5283_v56 = vpop.f32.mrb[31].mxu0  ;;  %v3942_v37 = vadd.f32 %v3941_v19, %v7155_v51 }
 0x3e3   : > { %4099 = vst [vmem:[%s7250_s15 + $0x10] sm:$0xff] %v4067_v60  ;;  %v4068_v57 = vadd.f32 %v5595_v14, %v3950_v2  ;;  %v5284_v40 = vadd.f32 %v5283_v56, %v5282_v27  ;;  %v7254_v30 = vadd.f32 %v5281_v61, %v3737_v20  ;;  %v5598_v20 = vld [vmem:[%s5870_s8 + $0x20] sm:$0xff]  ;;  %v5603_v27 = vld [vmem:[%s5870_s8 + $0x58] sm:$0xff]  ;;  %v5604_v2 = vld [vmem:[%s5870_s8 + $0x48] sm:$0xff] }
 0x3e4   : > { %4097 = vst [vmem:[%s7250_s15] sm:$0xff] %v4065_v25  ;;  %v4066_v23 = vadd.f32 %v5596_v52, %v3942_v37  ;;  %v5605_v56 = vld [vmem:[%s5870_s8 + $0x70] sm:$0xff] }
 0x3e5   : > { %4100 = vst [vmem:[%s7250_s15 + $0x18] sm:$0xff] %v4068_v57  ;;  %v7259_v51 = vadd.f32 %v5284_v40, %v3740_v35  ;;  %v5600_v35 = vld [vmem:[%s5870_s8 + $0x28] sm:$0xff]  ;;  %v5606_v40 = vld [vmem:[%s5870_s8 + $0x60] sm:$0xff] }
 0x3e6   : > { %4098 = vst [vmem:[%s7250_s15 + $0x8] sm:$0xff] %v4066_v23  ;;  %v5379_v18 = vpop.f32.mrb[4].mxu1 }
 0x3e7   : > { %v3963_v32 = vadd.f32 %v5379_v18, %v7170_v46  ;;  %v3954_v21 = vpop.f32.mrb[5].mxu1  ;;  %v5607_v18 = vld [vmem:[%s5870_s8 + $0x78] sm:$0xff] }
 0x3e8   : > { %v3955_v7 = vadd.f32 %v3954_v21, %v7164_v17  ;;  %v5380_v43 = vpop.f32.mrb[6].mxu1 }
 0x3e9   : > { %v4071_v24 = vadd.f32 %v5597_v6, %v3963_v32  ;;  %v3966_v28 = vadd.f32 %v5380_v43, %v7173_v3  ;;  %v3957_v55 = vpop.f32.mrb[7].mxu1  ;;  %v5608_v32 = vld [vmem:[%s5870_s8 + $0x68] sm:$0xff]  ;;  %v5609_v6 = vld [vmem:[%s5870_s8 + $0x90] sm:$0xff] }
 0x3ea   : > { %v4069_v53 = vadd.f32 %v5598_v20, %v3955_v7  ;;  %v3958_v34 = vadd.f32 %v3957_v55, %v7167_v11  ;;  %v5610_v20 = vld [vmem:[%s5870_s8 + $0x80] sm:$0xff] }
 0x3eb   : > { %4103 = vst [vmem:[%s7250_s15 + $0x30] sm:$0xff] %v4071_v24  ;;  %v4072_v46 = vadd.f32 %v5599_v48, %v3966_v28  ;;  %v5611_v48 = vld [vmem:[%s5870_s8 + $0x98] sm:$0xff] }
 0x3ec   : > { %4101 = vst [vmem:[%s7250_s15 + $0x20] sm:$0xff] %v4069_v53  ;;  %v4070_v17 = vadd.f32 %v5600_v35, %v3958_v34 }
 0x3ed   : > { %4104 = vst [vmem:[%s7250_s15 + $0x38] sm:$0xff] %v4072_v46  ;;  %v5612_v46 = vld [vmem:[%s5870_s8 + $0x88] sm:$0xff] }
 0x3ee   : > { %4102 = vst [vmem:[%s7250_s15 + $0x28] sm:$0xff] %v4070_v17  ;;  %v5383_v29 = vpop.f32.mrb[8].mxu1 }
 0x3ef   : > { %v3979_v3 = vadd.f32 %v5383_v29, %v7182_v50  ;;  %v3970_v44 = vpop.f32.mrb[9].mxu1 }
 0x3f0   : > { %v3971_v11 = vadd.f32 %v3970_v44, %v7176_v41  ;;  %v5384_v33 = vpop.f32.mrb[10].mxu1 }
 0x3f1   : > { %v4075_v13 = vadd.f32 %v5601_v39, %v3979_v3  ;;  %v3982_v1 = vadd.f32 %v5384_v33, %v7185_v31  ;;  %v3973_v45 = vpop.f32.mrb[11].mxu1  ;;  %v5613_v3 = vld [vmem:[%s5870_s8 + $0xb0] sm:$0xff]  ;;  %v5614_v39 = vld [vmem:[%s5870_s8 + $0xa0] sm:$0xff] }
 0x3f2   : > { %v4073_v60 = vadd.f32 %v5602_v54, %v3971_v11  ;;  %v3974_v61 = vadd.f32 %v3973_v45, %v7179_v12  ;;  %v5615_v45 = vld [vmem:[%s5870_s8 + $0xb8] sm:$0xff]  ;;  %v5616_v54 = vld [vmem:[%s5870_s8 + $0xa8] sm:$0xff] }
 0x3f3   : > { %4107 = vst [vmem:[%s7250_s15 + $0x50] sm:$0xff] %v4075_v13  ;;  %v4076_v50 = vadd.f32 %v5603_v27, %v3982_v1 }
 0x3f4   : > { %4105 = vst [vmem:[%s7250_s15 + $0x40] sm:$0xff] %v4073_v60  ;;  %v4074_v41 = vadd.f32 %v5604_v2, %v3974_v61 }
 0x3f5   : > { %4108 = vst [vmem:[%s7250_s15 + $0x58] sm:$0xff] %v4076_v50  ;;  %v5617_v50 = vld [vmem:[%s5870_s8 + $0xd0] sm:$0xff] }
 0x3f6   : > { %4106 = vst [vmem:[%s7250_s15 + $0x48] sm:$0xff] %v4074_v41  ;;  %v5387_v19 = vpop.f32.mrb[12].mxu1 }
 0x3f7   : > { %v3995_v31 = vadd.f32 %v5387_v19, %v7194_v9  ;;  %v3986_v62 = vpop.f32.mrb[13].mxu1 }
 0x3f8   : > { %v3987_v12 = vadd.f32 %v3986_v62, %v7188_v8  ;;  %v5388_v25 = vpop.f32.mrb[14].mxu1 }
 0x3f9   : > { %v4079_v37 = vadd.f32 %v5605_v56, %v3995_v31  ;;  %v3998_v14 = vadd.f32 %v5388_v25, %v7197_v15  ;;  %v3989_v57 = vpop.f32.mrb[15].mxu1  ;;  %v5618_v31 = vld [vmem:[%s5870_s8 + $0xc0] sm:$0xff] }
 0x3fa   : > { %v4077_v52 = vadd.f32 %v5606_v40, %v3987_v12  ;;  %v3990_v23 = vadd.f32 %v3989_v57, %v7191_v0  ;;  %v5621_v40 = vld [vmem:[%s5870_s8 + $0xf0] sm:$0xff] }
 0x3fb   : > { %4111 = vst [vmem:[%s7250_s15 + $0x70] sm:$0xff] %v4079_v37  ;;  %v4080_v9 = vadd.f32 %v5607_v18, %v3998_v14 }
 0x3fc   : > { %4109 = vst [vmem:[%s7250_s15 + $0x60] sm:$0xff] %v4077_v52  ;;  %v4078_v8 = vadd.f32 %v5608_v32, %v3990_v23 }
 0x3fd   : > { %4112 = vst [vmem:[%s7250_s15 + $0x78] sm:$0xff] %v4080_v9  ;;  %v5622_v9 = vld [vmem:[%s5870_s8 + $0xe0] sm:$0xff] }
 0x3fe   : > { %4110 = vst [vmem:[%s7250_s15 + $0x68] sm:$0xff] %v4078_v8  ;;  %v5391_v21 = vpop.f32.mrb[16].mxu1 }
 0x3ff   : > { %v4011_v15 = vadd.f32 %v5391_v21, %v7206_v58  ;;  %v4002_v7 = vpop.f32.mrb[17].mxu1 }
 0x400   : > { %v4003_v0 = vadd.f32 %v4002_v7, %v7200_v49  ;;  %v5392_v43 = vpop.f32.mrb[18].mxu1 }
 0x401   : > { %v4083_v24 = vadd.f32 %v5609_v6, %v4011_v15  ;;  %v4014_v28 = vadd.f32 %v5392_v43, %v7209_v38  ;;  %v4005_v55 = vpop.f32.mrb[19].mxu1 }
 0x402   : > { %v4081_v53 = vadd.f32 %v5610_v20, %v4003_v0  ;;  %v4006_v34 = vadd.f32 %v4005_v55, %v7203_v5 }
 0x403   : > { %4115 = vst [vmem:[%s7250_s15 + $0x90] sm:$0xff] %v4083_v24  ;;  %v4084_v58 = vadd.f32 %v5611_v48, %v4014_v28 }
 0x404   : > { %4113 = vst [vmem:[%s7250_s15 + $0x80] sm:$0xff] %v4081_v53  ;;  %v4082_v49 = vadd.f32 %v5612_v46, %v4006_v34 }
 0x405   : > { %4116 = vst [vmem:[%s7250_s15 + $0x98] sm:$0xff] %v4084_v58 }
 0x406   : > { %4114 = vst [vmem:[%s7250_s15 + $0x88] sm:$0xff] %v4082_v49  ;;  %v5395_v35 = vpop.f32.mrb[20].mxu1 }
 0x407   : > { %v4027_v38 = vadd.f32 %v5395_v35, %v7218_v16  ;;  %v4018_v17 = vpop.f32.mrb[21].mxu1 }
 0x408   : > { %v4019_v5 = vadd.f32 %v4018_v17, %v7212_v22  ;;  %v5396_v29 = vpop.f32.mrb[22].mxu1 }
 0x409   : > { %v4087_v44 = vadd.f32 %v5613_v3, %v4027_v38  ;;  %v4030_v11 = vadd.f32 %v5396_v29, %v7221_v59  ;;  %v4021_v33 = vpop.f32.mrb[23].mxu1 }
 0x40a   : > { %v4085_v13 = vadd.f32 %v5614_v39, %v4019_v5  ;;  %v4022_v1 = vadd.f32 %v4021_v33, %v7215_v10 }
 0x40b   : > { %4119 = vst [vmem:[%s7250_s15 + $0xb0] sm:$0xff] %v4087_v44  ;;  %v4088_v16 = vadd.f32 %v5615_v45, %v4030_v11 }
 0x40c   : > { %4117 = vst [vmem:[%s7250_s15 + $0xa0] sm:$0xff] %v4085_v13  ;;  %v4086_v22 = vadd.f32 %v5616_v54, %v4022_v1 }
 0x40d   : > { %4120 = vst [vmem:[%s7250_s15 + $0xb8] sm:$0xff] %v4088_v16 }
 0x40e   : > { %4118 = vst [vmem:[%s7250_s15 + $0xa8] sm:$0xff] %v4086_v22  ;;  %v5399_v60 = vpop.f32.mrb[24].mxu1 }
 0x40f   : > { %v4043_v59 = vadd.f32 %v5399_v60, %v7230_v63  ;;  %v4034_v61 = vpop.f32.mrb[25].mxu1  ;;  %v5619_v63 = vld [vmem:[%s5870_s8 + $0xd8] sm:$0xff] }
 0x410   : > { %v4035_v10 = vadd.f32 %v4034_v61, %v7224_v47  ;;  %v5400_v27 = vpop.f32.mrb[26].mxu1  ;;  %v5620_v47 = vld [vmem:[%s5870_s8 + $0xc8] sm:$0xff] }
 0x411   : > { %v4091_v2 = vadd.f32 %v5617_v50, %v4043_v59  ;;  %v4046_v41 = vadd.f32 %v5400_v27, %v7233_v4  ;;  %v4037_v19 = vpop.f32.mrb[27].mxu1 }
 0x412   : > { %v4089_v62 = vadd.f32 %v5618_v31, %v4035_v10  ;;  %v4038_v12 = vadd.f32 %v4037_v19, %v7227_v26 }
 0x413   : > { %4123 = vst [vmem:[%s7250_s15 + $0xd0] sm:$0xff] %v4091_v2  ;;  %v4092_v25 = vadd.f32 %v5619_v63, %v4046_v41 }
 0x414   : > { %4121 = vst [vmem:[%s7250_s15 + $0xc0] sm:$0xff] %v4089_v62  ;;  %v4090_v56 = vadd.f32 %v5620_v47, %v4038_v12 }
 0x415   : > { %4124 = vst [vmem:[%s7250_s15 + $0xd8] sm:$0xff] %v4092_v25 }
 0x416   : > { %4122 = vst [vmem:[%s7250_s15 + $0xc8] sm:$0xff] %v4090_v56  ;;  %v5403_v4 = vpop.f32.mrb[28].mxu1 }
 0x417   : > { %v4059_v37 = vadd.f32 %v5403_v4, %v7254_v30  ;;  %v4050_v14 = vpop.f32.mrb[29].mxu1 }
 0x418   : > { %v4051_v57 = vadd.f32 %v4050_v14, %v7237_v36  ;;  %v5404_v26 = vpop.f32.mrb[30].mxu1  ;;  %v5623_v36 = vld [vmem:[%s5870_s8 + $0xf8] sm:$0xff] }
 0x419   : > { %v4095_v52 = vadd.f32 %v5621_v40, %v4059_v37  ;;  %v4062_v23 = vadd.f32 %v5404_v26, %v7259_v51  ;;  %v4053_v18 = vpop.f32.mrb[31].mxu1  ;;  %v5624_v51 = vld [vmem:[%s5870_s8 + $0xe8] sm:$0xff] }
 0x41a   : > { %v4093_v32 = vadd.f32 %v5622_v9, %v4051_v57  ;;  %v4054_v30 = vadd.f32 %v4053_v18, %v7242_v42 }
 0x41b   : > { %4127 = vst [vmem:[%s7250_s15 + $0xf0] sm:$0xff] %v4095_v52  ;;  %v4096_v8 = vadd.f32 %v5623_v36, %v4062_v23 }
 0x41c   : > { %4125 = vst [vmem:[%s7250_s15 + $0xe0] sm:$0xff] %v4093_v32  ;;  %v4094_v21 = vadd.f32 %v5624_v51, %v4054_v30 }
 0x41d   : > { %4128 = vst [vmem:[%s7250_s15 + $0xf8] sm:$0xff] %v4096_v8 }
 0x41e   : > { %4126 = vst [vmem:[%s7250_s15 + $0xe8] sm:$0xff] %v4094_v21 }
 0x41f   : > { %5638 = shalt.err (!%p5635_p3)
}
 0x420   : > { %s5639_s8 = scalar_lea.hbm %s7347_s22, 4096  ;;  %s5643_s12 = scalar_lea.hbm %s7403_s5, 8192 }
 0x421   : > { %p5640_p4 = scmp.ne.s32.totalorder %s7347_s22, %s5639_s8  ;;  %p5644_p9 = scmp.lt.u32.totalorder %s7347_s22, %s7403_s5 }
 0x422   : > { %p5645_p10 = scmp.lt.u32.totalorder %s5643_s12, %s5639_s8  ;;  %p5647_p12 = scmp.lt.u32.totalorder %s5639_s8, %s7347_s22 }
 0x423   : > { %p5641_p7 = pnand %p5640_p4, %p5762_p5 }
 0x424   : > { %p5646_p11 = por %p5645_p10, %p5644_p9 }
 0x425   : > { %p5642_p8 = pneg %p5641_p7 }
 0x426   : > { %p5648_p13 = por %p5647_p12, %p5646_p11 }
 0x428   : > { %p5649_p0 = pnand %p5648_p13, %p5642_p8 }
 0x42a   : > { %5652 = shalt.err (!%p5649_p0)
}
 0x42b   : > { %s5692_s15 = smov 128   ;;  %s5693_s16 = smov 8  }
 0x42c   : > { %5405 = dma.vmem_to_hbm [thread:$0]  (%p5762_p5), %s7349_s17, 4096, %s7347_s22, %s7357_s26, %s5692_s15, %s5692_s15, %s5693_s16  }
 0x42d PF: > { %p5411_p1 = scmp.ge.s32.totalorder %s5687_s21, 2  ;;  %s4158_s23 = sand.u32 1, %s5675_s18  }
 0x42e   : > { %s4159_s25 = scalar_lea.sflag [#allocation4], %s4158_s23 }
 0x42f   : > { %p5408_p2 = pnand %p5411_p1, %p5766_p6 }
 0x431   : > { %5670 = dma.done.wait (!%p5408_p2), %s4159_s25, 4096  }
 0x432   : > { %5672 = vsyncadd (!%p5408_p2), %s4159_s25, 4294963200  ;;  %p15_p3 = scmp.ge.s32.totalorder %s5749_s24, 4   ;;  %s7406_s18 = smov %s5679_s19 }
 0x433   : > { %s7407_s19 = smov %s5683_s20  ;;  %s7408_s20 = smov %s5760_s27 }
 0x434   : > { %s7409_s21 = smov %s5749_s24  ;;  %17 = sbr.rel (!%p15_p3) target bundleno = 3 (0x3), region = 78 }
 0x43b   :  { %4164 = vsyncpa [#allocation4], 1 }
 0x43c   :  { %4166 = vsyncpa [#allocation4 + $0x1], 1 }

</bundles_post_ra>
